<compile_context>
chip_gen: v7x
topology: tpu7x:2x2x1
jax: 0.10.0
libtpu: 0.0.40
codegen_flags: <defaults>
</compile_context>

<pallas_src>
import functools
import numpy as np
import jax
import jax.numpy as jnp
from jax.experimental import pallas as pl
from jax.experimental.pallas import tpu as pltpu

_BN_EPS = 1e-5


def _round_up(x, m):
    return (x + m - 1) // m * m


# ----------------------------------------------------------------------------
# Fused DoubleConv kernel: (3x3 conv -> BN(batch stats) -> ReLU) x 2
# Lane-dense layout: channels on sublanes, flattened padded-frame spatial on
# lanes.  Frame index = n*(H+2)*(W+2) + a*(W+2) + b.
# ----------------------------------------------------------------------------
def _double_conv_kernel(x_ref, mask_ref, w1_ref, g1_ref, be1_ref,
                        w2_ref, g2_ref, be2_ref, o_ref, hpad_ref,
                        *, offsets, rows, shift, inv_m):
    """
      x_ref   : (Cin_p, Rext)    bf16  zero-padded input frames (spatial on lanes)
      mask_ref: (1, rows)        f32   1.0 where the lane is a real output pixel
      wX_ref  : (Cout, 9*Cin_p)  bf16  im2col weights, col = tap*Cin_p + cin
      gX/beX  : (Cout, 1)        f32   BN affine params
      o_ref   : (Cout, rows)     f32   second conv output (frame layout)
      hpad_ref: (Cout_p, Rext)   bf16  VMEM re-padded intermediate for conv #2
    """
    cout = o_ref.shape[0]
    cout_p, rext = hpad_ref.shape
    # Hoist the (1, rows) -> (cout, rows) mask broadcast once per kernel
    # (JAX does not CSE broadcast_in_dim).
    mask = jnp.broadcast_to(mask_ref[...], (cout, rows))

    def conv_bn_relu(src_ref, w_ref, g_ref, be_ref):
        # 3x3 conv: in-VMEM im2col (9 lane-shifted views stacked along K) and
        # ONE MXU matmul with K = 9*Cin_p (no accumulator RMW through VMEM).
        cols = jnp.concatenate(
            [src_ref[:, off:off + rows] for off in offsets], axis=0)
        acc = jnp.dot(w_ref[...], cols,
                      preferred_element_type=jnp.float32)      # (cout, rows) f32
        # BatchNorm batch statistics over valid pixels only (one-pass, f32).
        am = acc * mask
        s1 = jnp.sum(am, axis=1, keepdims=True)                # lane (XLU) reduce
        s2 = jnp.sum(am * am, axis=1, keepdims=True)
        mean = s1 * inv_m
        var = jnp.maximum(s2 * inv_m - mean * mean, 0.0)
        scale = g_ref[...] * jax.lax.rsqrt(var + _BN_EPS)
        shift_v = be_ref[...] - mean * scale
        # normalize + ReLU; mask zeroes the frame-padding lanes so the
        # re-padded intermediate keeps a correct zero ring.
        return jnp.maximum(acc * scale + shift_v, 0.0) * mask

    h1 = conv_bn_relu(x_ref, w1_ref, g1_ref, be1_ref)

    # Re-pad h1 into the zero-ringed frame layout for conv #2 (lane offset
    # shift = (W+2)+1 moves pixel (h, w) to frame position (h+1, w+1)).
    # Only the two small boundary lane ranges need explicit zeroing; the
    # interior padding ring is already zero because h1 is masked.
    hpad_ref[:, 0:shift] = jnp.zeros((cout_p, shift), hpad_ref.dtype)
    hpad_ref[:, shift + rows:rext] = jnp.zeros(
        (cout_p, rext - shift - rows), hpad_ref.dtype)
    if cout_p > cout:   # static; never taken for multiple-of-8 channel counts
        hpad_ref[cout:cout_p, :] = jnp.zeros((cout_p - cout, rext),
                                             hpad_ref.dtype)
    hpad_ref[0:cout, shift:shift + rows] = h1.astype(hpad_ref.dtype)

    o_ref[...] = conv_bn_relu(hpad_ref, w2_ref, g2_ref, be2_ref)


def _valid_pixel_mask(n, h, w):
    """(1, n*(h+2)*(w+2)) f32: 1.0 at flattened-frame lanes that are real pixels."""
    wp = w + 2
    f = (h + 2) * wp
    idx = np.arange(n * f)
    q = idx % f
    hh = q // wp
    ww = q % wp
    m = ((hh < h) & (ww < w)).astype(np.float32)
    return jnp.asarray(m.reshape(1, -1))


def _prep_conv_w(w, cin_p):
    """torch (Cout, Cin, 3, 3) -> (Cout, 9*cin_p) bf16, column = tap*cin_p + cin."""
    cout, cin = w.shape[0], w.shape[1]
    wt = jnp.transpose(w, (2, 3, 1, 0)).reshape(9, cin, cout)   # [tap, cin, cout]
    wt = jnp.pad(wt, ((0, 0), (0, cin_p - cin), (0, 0)))
    return jnp.transpose(wt, (2, 0, 1)).reshape(cout, 9 * cin_p).astype(jnp.bfloat16)


def double_conv(x, p):
    """x: (Cin, N, H, W) f32 channel-major -> (Cout, N, H, W).  One pallas_call."""
    Cin, N, H, W = x.shape
    Cout = p["w1"].shape[0]
    Cin_p = _round_up(Cin, 8)
    Cout_p = _round_up(Cout, 8)
    Wp = W + 2
    F = (H + 2) * Wp
    R = N * F
    tail = 2 * Wp + 2                    # largest tap offset
    shift = Wp + 1                       # re-centering offset for conv #2
    Rext = R + tail
    offsets = tuple(dh * Wp + dw for dh in range(3) for dw in range(3))

    # Pad channels -> Cin_p, add the 1-pixel spatial ring, flatten each padded
    # frame along the lane axis (lane-dense layout), extend with a zero tail.
    xp = jnp.pad(x, ((0, Cin_p - Cin), (0, 0), (1, 1), (1, 1)))
    x2 = jnp.pad(xp.reshape(Cin_p, R), ((0, 0), (0, tail))).astype(jnp.bfloat16)

    mask = _valid_pixel_mask(N, H, W)                      # (1, R) f32
    w1 = _prep_conv_w(p["w1"], Cin_p)                      # (Cout, 9*Cin_p) bf16
    w2 = _prep_conv_w(p["w2"], Cout_p)                     # (Cout, 9*Cout_p) bf16
    g1 = p["g1"].reshape(Cout, 1).astype(jnp.float32)
    be1 = p["be1"].reshape(Cout, 1).astype(jnp.float32)
    g2 = p["g2"].reshape(Cout, 1).astype(jnp.float32)
    be2 = p["be2"].reshape(Cout, 1).astype(jnp.float32)
    # NOTE: conv biases b1/b2 are intentionally unused: they are exactly
    # cancelled by the (training-mode) BatchNorm mean subtraction.

    # Whole-tensor single-tile kernel: guard the VMEM footprint
    # (v7x: 64 MiB physical / 32 MiB default scoped per TensorCore).
    vmem_bytes = (2 * (x2.size * 2 + Cout * R * 4)         # in/out (+ headroom)
                  + mask.size * 4 + (w1.size + w2.size) * 2
                  + Cout_p * Rext * 2                      # hpad scratch
                  + 9 * max(Cin_p, Cout_p) * R * 2         # in-kernel im2col
                  + 4 * Cout * R * 4)                      # f32 temporaries
    assert vmem_bytes < 40 * 1024 * 1024, (
        "DoubleConv too large for the single-tile VMEM plan; switch to the "
        "gridded row-block plan (see TODO below).")
    # TODO(synk): for production sizes, grid over frame/row blocks (carry
    # per-channel sum/sumsq across an 'arbitrary' axis, two-pass BN) with a
    # leading 'parallel' axis over N so v7x's second TensorCore is used and
    # DMA is double-buffered.

    kernel = functools.partial(_double_conv_kernel, offsets=offsets, rows=R,
                               shift=shift, inv_m=1.0 / float(N * H * W))

    out = pl.pallas_call(
        kernel,
        out_shape=jax.ShapeDtypeStruct((Cout, R), jnp.float32),
        scratch_shapes=[pltpu.VMEM((Cout_p, Rext), jnp.bfloat16)],
        compiler_params=pltpu.CompilerParams(
            vmem_limit_bytes=48 * 1024 * 1024),
    )(x2, mask, w1, g1, be1, w2, g2, be2)

    # Drop frame-padding lanes (lanes map to (n, a, b) of the (H+2, W+2) frame).
    # TODO(synk): emit a compact (Cout, N*H*W) output from the kernel (needs an
    # in-kernel lane compaction) to skip this XLA slice.
    return out.reshape(Cout, N, H + 2, Wp)[:, :, :H, :W]


# ----------------------------------------------------------------------------
# Lane-dense matmul + bias kernel (ConvTranspose2d 2x2 / final 1x1 conv)
#   out (M, S) = W (M, K) @ X (K, S) + bias (M, 1)      (spatial S on lanes)
# ----------------------------------------------------------------------------
def _matmul_bias_kernel(a_ref, b_ref, bias_ref, o_ref):
    o_ref[...] = (jnp.dot(a_ref[...], b_ref[...],
                          preferred_element_type=jnp.float32) + bias_ref[...])


def matmul_bias(A, B, bias):
    """Single VMEM-resident Pallas call; bf16 operands, f32 accumulate."""
    M = A.shape[0]
    S = B.shape[1]
    return pl.pallas_call(
        _matmul_bias_kernel,
        out_shape=jax.ShapeDtypeStruct((M, S), jnp.float32),
    )(A.astype(jnp.bfloat16), B.astype(jnp.bfloat16),
      bias.astype(jnp.float32).reshape(M, 1))


def conv_transpose2x2(x, w, b):
    """ConvTranspose2d(kernel=2, stride=2).  x: (Cin, N, H, W), w: (Cin, Cout, 2, 2)."""
    Cin, N, H, W = x.shape
    Cout = w.shape[1]
    X = x.reshape(Cin, N * H * W)
    Wm = jnp.transpose(w, (1, 2, 3, 0)).reshape(Cout * 4, Cin)   # rows: (cout, kh, kw)
    y = matmul_bias(Wm, X, jnp.repeat(b, 4))                     # (Cout*4, N*H*W)
    y = y.reshape(Cout, 2, 2, N, H, W)
    # TODO(synk): the 2x-upsample interleave stays a tiny XLA transpose/reshape.
    return jnp.transpose(y, (0, 3, 4, 1, 5, 2)).reshape(Cout, N, 2 * H, 2 * W)


def conv1x1(x, w, b):
    """1x1 conv.  x: (Cin, N, H, W), w: (Cout, Cin, 1, 1)."""
    Cin, N, H, W = x.shape
    Cout = w.shape[0]
    y = matmul_bias(w.reshape(Cout, Cin), x.reshape(Cin, N * H * W), b)
    return y.reshape(Cout, N, H, W)


def maxpool2x2(x):
    # TODO(synk): fuse the 2x2 max-pool into the producing DoubleConv epilogue
    # (rows are already VMEM-resident); left to XLA for now (tiny reduction).
    C, N, H, W = x.shape
    return jnp.max(x.reshape(C, N, H // 2, 2, W // 2, 2), axis=(3, 5))


# ----------------------------------------------------------------------------
# UNET forward (NCHW in / NCHW out, channel-major (C, N, H, W) internally)
# ----------------------------------------------------------------------------
def unet_forward(x_nchw, params, num_layers):
    # NCHW -> channel-major CNHW (lane-dense internal layout: spatial on lanes).
    x = jnp.transpose(x_nchw, (1, 0, 2, 3)).astype(jnp.float32)
    xi = [double_conv(x, params["inc"])]
    # contracting path
    for l in range(num_layers - 1):
        xi.append(double_conv(maxpool2x2(xi[-1]), params["down"][l]))
    # expanding path
    for l in range(num_layers - 1):
        p = params["up"][l]
        x1 = conv_transpose2x2(xi[-1], p["up_w"], p["up_b"])
        x2 = xi[-2 - l]
        dh = x2.shape[2] - x1.shape[2]
        dw = x2.shape[3] - x1.shape[3]
        x1 = jnp.pad(x1, ((0, 0), (0, 0),
                          (dh // 2, dh - dh // 2), (dw // 2, dw - dw // 2)))
        # torch.cat([x2, x1], dim=1) == channel concat in channel-major layout
        # TODO(synk): fold the skip-concat/pad into the next DoubleConv's input prep.
        x_cat = jnp.concatenate([x2, x1], axis=0)
        xi[-1] = double_conv(x_cat, p["dc"])
    out = conv1x1(xi[-1], params["final"]["w"], params["final"]["b"])
    return jnp.transpose(out, (1, 0, 2, 3))                 # back to NCHW


# ----------------------------------------------------------------------------
# Deterministic parameter initialization (PyTorch-like shapes)
# ----------------------------------------------------------------------------
def _conv_params(key, cout, cin, kh, kw):
    k1, k2 = jax.random.split(key)
    bound = 1.0 / np.sqrt(cin * kh * kw)
    w = jax.random.uniform(k1, (cout, cin, kh, kw), jnp.float32, -bound, bound)
    b = jax.random.uniform(k2, (cout,), jnp.float32, -bound, bound)
    return w, b


def init_unet_params(key, num_classes, num_layers, features_start):
    keys = iter(jax.random.split(key, 256))

    def dc_params(cin, cout):
        w1, b1 = _conv_params(next(keys), cout, cin, 3, 3)
        w2, b2 = _conv_params(next(keys), cout, cout, 3, 3)
        # b1/b2 kept for module parity but unused (cancelled by training-mode BN).
        return dict(
            w1=w1, b1=b1, g1=jnp.ones((cout,), jnp.float32), be1=jnp.zeros((cout,), jnp.float32),
            w2=w2, b2=b2, g2=jnp.ones((cout,), jnp.float32), be2=jnp.zeros((cout,), jnp.float32),
        )

    params = {"inc": dc_params(3, features_start), "down": [], "up": []}
    feats = features_start
    for _ in range(num_layers - 1):
        params["down"].append(dc_params(feats, feats * 2))
        feats *= 2
    for _ in range(num_layers - 1):
        k1, k2 = jax.random.split(next(keys))
        bound = 1.0 / np.sqrt(feats * 2 * 2)
        up_w = jax.random.uniform(k1, (feats, feats // 2, 2, 2), jnp.float32, -bound, bound)
        up_b = jax.random.uniform(k2, (feats // 2,), jnp.float32, -bound, bound)
        params["up"].append(dict(up_w=up_w, up_b=up_b, dc=dc_params(feats, feats // 2)))
        feats //= 2
    wf, bf = _conv_params(next(keys), num_classes, feats, 1, 1)
    params["final"] = dict(w=wf, b=bf)
    return params


# ----------------------------------------------------------------------------
if __name__ == "__main__":
    num_classes, num_layers, features_start = 4, 3, 8
    key = jax.random.PRNGKey(0)
    kx, kp = jax.random.split(key)
    x = jax.random.normal(kx, (2, 3, 16, 16), jnp.float32)   # NCHW like PyTorch
    params = init_unet_params(kp, num_classes, num_layers, features_start)

    fwd = jax.jit(functools.partial(unet_forward, num_layers=num_layers))
    out = fwd(x, params)
    jax.block_until_ready(out)
    assert out.shape == (2, num_classes, 16, 16), out.shape
    assert bool(jnp.all(jnp.isfinite(out)))
    print("KERNEL_OK")
</pallas_src>

<mosaic_0001>
module attributes {stable_mosaic.version = 11 : i64} {
  func.func @_double_conv_kernel(%arg0: memref<8x686xbf16, #tpu.memory_space<vmem>>, %arg1: memref<1x648xf32, #tpu.memory_space<vmem>>, %arg2: memref<8x72xbf16, #tpu.memory_space<vmem>>, %arg3: memref<8x1xf32, #tpu.memory_space<vmem>>, %arg4: memref<8x1xf32, #tpu.memory_space<vmem>>, %arg5: memref<8x72xbf16, #tpu.memory_space<vmem>>, %arg6: memref<8x1xf32, #tpu.memory_space<vmem>>, %arg7: memref<8x1xf32, #tpu.memory_space<vmem>>, %arg8: memref<8x648xf32, #tpu.memory_space<vmem>>, %arg9: memref<8x686xbf16, #tpu.memory_space<vmem>>) attributes {dimension_semantics = [], scalar_prefetch = 0 : i64, scratch_operands = 1 : i64, tpu.core_type = #tpu.core_type<tc>} {
    %c0 = arith.constant 0 : index
    %c0_0 = arith.constant 0 : index
    %0 = vector.load %arg1[%c0, %c0_0] : memref<1x648xf32, #tpu.memory_space<vmem>>, vector<1x648xf32>
    %1 = vector.shape_cast %0 : vector<1x648xf32> to vector<1x648xf32>
    %2 = vector.broadcast %1 : vector<1x648xf32> to vector<8x648xf32>
    %c0_1 = arith.constant 0 : index
    %c0_2 = arith.constant 0 : index
    %3 = vector.load %arg0[%c0_1, %c0_2] : memref<8x686xbf16, #tpu.memory_space<vmem>>, vector<8x648xbf16>
    %c0_3 = arith.constant 0 : index
    %c1 = arith.constant 1 : index
    %4 = vector.load %arg0[%c0_3, %c1] : memref<8x686xbf16, #tpu.memory_space<vmem>>, vector<8x648xbf16>
    %c0_4 = arith.constant 0 : index
    %c2 = arith.constant 2 : index
    %5 = vector.load %arg0[%c0_4, %c2] : memref<8x686xbf16, #tpu.memory_space<vmem>>, vector<8x648xbf16>
    %c0_5 = arith.constant 0 : index
    %c18 = arith.constant 18 : index
    %6 = vector.load %arg0[%c0_5, %c18] : memref<8x686xbf16, #tpu.memory_space<vmem>>, vector<8x648xbf16>
    %c0_6 = arith.constant 0 : index
    %c19 = arith.constant 19 : index
    %7 = vector.load %arg0[%c0_6, %c19] : memref<8x686xbf16, #tpu.memory_space<vmem>>, vector<8x648xbf16>
    %c0_7 = arith.constant 0 : index
    %c20 = arith.constant 20 : index
    %8 = vector.load %arg0[%c0_7, %c20] : memref<8x686xbf16, #tpu.memory_space<vmem>>, vector<8x648xbf16>
    %c0_8 = arith.constant 0 : index
    %c36 = arith.constant 36 : index
    %9 = vector.load %arg0[%c0_8, %c36] : memref<8x686xbf16, #tpu.memory_space<vmem>>, vector<8x648xbf16>
    %c0_9 = arith.constant 0 : index
    %c37 = arith.constant 37 : index
    %10 = vector.load %arg0[%c0_9, %c37] : memref<8x686xbf16, #tpu.memory_space<vmem>>, vector<8x648xbf16>
    %c0_10 = arith.constant 0 : index
    %c38 = arith.constant 38 : index
    %11 = vector.load %arg0[%c0_10, %c38] : memref<8x686xbf16, #tpu.memory_space<vmem>>, vector<8x648xbf16>
    %12 = tpu.concatenate %3, %4, %5, %6, %7, %8, %9, %10, %11 in 0 : vector<8x648xbf16>, vector<8x648xbf16>, vector<8x648xbf16>, vector<8x648xbf16>, vector<8x648xbf16>, vector<8x648xbf16>, vector<8x648xbf16>, vector<8x648xbf16>, vector<8x648xbf16> -> vector<72x648xbf16>
    %c0_11 = arith.constant 0 : index
    %c0_12 = arith.constant 0 : index
    %13 = vector.load %arg2[%c0_11, %c0_12] : memref<8x72xbf16, #tpu.memory_space<vmem>>, vector<8x72xbf16>
    %cst = arith.constant dense<0.000000e+00> : vector<8x648xf32>
    %14 = tpu.matmul %13, %12, %cst {dimension_numbers = #tpu.dot_dimension_numbers<[1], [0], [0], [1], [0, 0, 1, 1], [], []>} : vector<8x72xbf16>, vector<72x648xbf16>, vector<8x648xf32> -> vector<8x648xf32>
    %15 = arith.mulf %14, %2 : vector<8x648xf32>
    %cst_13 = arith.constant dense<0.000000e+00> : vector<8xf32>
    %16 = vector.multi_reduction <add>, %15, %cst_13 [1] : vector<8x648xf32> to vector<8xf32>
    %17 = vector.shape_cast %16 : vector<8xf32> to vector<8x1xf32>
    %18 = arith.mulf %15, %15 : vector<8x648xf32>
    %cst_14 = arith.constant dense<0.000000e+00> : vector<8xf32>
    %19 = vector.multi_reduction <add>, %18, %cst_14 [1] : vector<8x648xf32> to vector<8xf32>
    %20 = vector.shape_cast %19 : vector<8xf32> to vector<8x1xf32>
    %cst_15 = arith.constant 0.001953125 : f32
    %21 = vector.broadcast %cst_15 : f32 to vector<8x1xf32>
    %22 = arith.mulf %17, %21 : vector<8x1xf32>
    %cst_16 = arith.constant 0.001953125 : f32
    %23 = vector.broadcast %cst_16 : f32 to vector<8x1xf32>
    %24 = arith.mulf %20, %23 : vector<8x1xf32>
    %25 = arith.mulf %22, %22 : vector<8x1xf32>
    %26 = arith.subf %24, %25 : vector<8x1xf32>
    %cst_17 = arith.constant 0.000000e+00 : f32
    %27 = vector.broadcast %cst_17 : f32 to vector<8x1xf32>
    %28 = arith.maximumf %26, %27 : vector<8x1xf32>
    %c0_18 = arith.constant 0 : index
    %c0_19 = arith.constant 0 : index
    %29 = vector.load %arg3[%c0_18, %c0_19] : memref<8x1xf32, #tpu.memory_space<vmem>>, vector<8x1xf32>
    %cst_20 = arith.constant 9.99999974E-6 : f32
    %30 = vector.broadcast %cst_20 : f32 to vector<8x1xf32>
    %31 = arith.addf %28, %30 : vector<8x1xf32>
    %32 = math.rsqrt %31 : vector<8x1xf32>
    %33 = arith.mulf %29, %32 : vector<8x1xf32>
    %c0_21 = arith.constant 0 : index
    %c0_22 = arith.constant 0 : index
    %34 = vector.load %arg4[%c0_21, %c0_22] : memref<8x1xf32, #tpu.memory_space<vmem>>, vector<8x1xf32>
    %35 = arith.mulf %22, %33 : vector<8x1xf32>
    %36 = arith.subf %34, %35 : vector<8x1xf32>
    %37 = vector.broadcast %33 : vector<8x1xf32> to vector<8x648xf32>
    %38 = arith.mulf %14, %37 : vector<8x648xf32>
    %39 = vector.broadcast %36 : vector<8x1xf32> to vector<8x648xf32>
    %40 = arith.addf %38, %39 : vector<8x648xf32>
    %cst_23 = arith.constant 0.000000e+00 : f32
    %41 = vector.broadcast %cst_23 : f32 to vector<8x648xf32>
    %42 = arith.maximumf %40, %41 : vector<8x648xf32>
    %43 = arith.mulf %42, %2 : vector<8x648xf32>
    %cst_24 = arith.constant 0.000000e+00 : bf16
    %44 = vector.broadcast %cst_24 : bf16 to vector<8x19xbf16>
    %c0_25 = arith.constant 0 : index
    %c0_26 = arith.constant 0 : index
    %45 = vector.load %arg9[%c0_25, %c0_26] : memref<8x686xbf16, #tpu.memory_space<vmem>>, vector<8x19xbf16>
    tpu.vector_store %arg9[%c0_25, %c0_26], %44 {strides = array<i32>} : memref<8x686xbf16, #tpu.memory_space<vmem>>, vector<8x19xbf16>,
    %cst_27 = arith.constant 0.000000e+00 : bf16
    %46 = vector.broadcast %cst_27 : bf16 to vector<8x19xbf16>
    %c0_28 = arith.constant 0 : index
    %c667 = arith.constant 667 : index
    %47 = vector.load %arg9[%c0_28, %c667] : memref<8x686xbf16, #tpu.memory_space<vmem>>, vector<8x19xbf16>
    tpu.vector_store %arg9[%c0_28, %c667], %46 {strides = array<i32>} : memref<8x686xbf16, #tpu.memory_space<vmem>>, vector<8x19xbf16>,
    %48 = arith.truncf %43 : vector<8x648xf32> to vector<8x648xbf16>
    %c0_29 = arith.constant 0 : index
    %c19_30 = arith.constant 19 : index
    %49 = vector.load %arg9[%c0_29, %c19_30] : memref<8x686xbf16, #tpu.memory_space<vmem>>, vector<8x648xbf16>
    tpu.vector_store %arg9[%c0_29, %c19_30], %48 {strides = array<i32>} : memref<8x686xbf16, #tpu.memory_space<vmem>>, vector<8x648xbf16>,
    %c0_31 = arith.constant 0 : index
    %c0_32 = arith.constant 0 : index
    %50 = vector.load %arg9[%c0_31, %c0_32] : memref<8x686xbf16, #tpu.memory_space<vmem>>, vector<8x648xbf16>
    %c0_33 = arith.constant 0 : index
    %c1_34 = arith.constant 1 : index
    %51 = vector.load %arg9[%c0_33, %c1_34] : memref<8x686xbf16, #tpu.memory_space<vmem>>, vector<8x648xbf16>
    %c0_35 = arith.constant 0 : index
    %c2_36 = arith.constant 2 : index
    %52 = vector.load %arg9[%c0_35, %c2_36] : memref<8x686xbf16, #tpu.memory_space<vmem>>, vector<8x648xbf16>
    %c0_37 = arith.constant 0 : index
    %c18_38 = arith.constant 18 : index
    %53 = vector.load %arg9[%c0_37, %c18_38] : memref<8x686xbf16, #tpu.memory_space<vmem>>, vector<8x648xbf16>
    %c0_39 = arith.constant 0 : index
    %c19_40 = arith.constant 19 : index
    %54 = vector.load %arg9[%c0_39, %c19_40] : memref<8x686xbf16, #tpu.memory_space<vmem>>, vector<8x648xbf16>
    %c0_41 = arith.constant 0 : index
    %c20_42 = arith.constant 20 : index
    %55 = vector.load %arg9[%c0_41, %c20_42] : memref<8x686xbf16, #tpu.memory_space<vmem>>, vector<8x648xbf16>
    %c0_43 = arith.constant 0 : index
    %c36_44 = arith.constant 36 : index
    %56 = vector.load %arg9[%c0_43, %c36_44] : memref<8x686xbf16, #tpu.memory_space<vmem>>, vector<8x648xbf16>
    %c0_45 = arith.constant 0 : index
    %c37_46 = arith.constant 37 : index
    %57 = vector.load %arg9[%c0_45, %c37_46] : memref<8x686xbf16, #tpu.memory_space<vmem>>, vector<8x648xbf16>
    %c0_47 = arith.constant 0 : index
    %c38_48 = arith.constant 38 : index
    %58 = vector.load %arg9[%c0_47, %c38_48] : memref<8x686xbf16, #tpu.memory_space<vmem>>, vector<8x648xbf16>
    %59 = tpu.concatenate %50, %51, %52, %53, %54, %55, %56, %57, %58 in 0 : vector<8x648xbf16>, vector<8x648xbf16>, vector<8x648xbf16>, vector<8x648xbf16>, vector<8x648xbf16>, vector<8x648xbf16>, vector<8x648xbf16>, vector<8x648xbf16>, vector<8x648xbf16> -> vector<72x648xbf16>
    %c0_49 = arith.constant 0 : index
    %c0_50 = arith.constant 0 : index
    %60 = vector.load %arg5[%c0_49, %c0_50] : memref<8x72xbf16, #tpu.memory_space<vmem>>, vector<8x72xbf16>
    %cst_51 = arith.constant dense<0.000000e+00> : vector<8x648xf32>
    %61 = tpu.matmul %60, %59, %cst_51 {dimension_numbers = #tpu.dot_dimension_numbers<[1], [0], [0], [1], [0, 0, 1, 1], [], []>} : vector<8x72xbf16>, vector<72x648xbf16>, vector<8x648xf32> -> vector<8x648xf32>
    %62 = arith.mulf %61, %2 : vector<8x648xf32>
    %cst_52 = arith.constant dense<0.000000e+00> : vector<8xf32>
    %63 = vector.multi_reduction <add>, %62, %cst_52 [1] : vector<8x648xf32> to vector<8xf32>
    %64 = vector.shape_cast %63 : vector<8xf32> to vector<8x1xf32>
    %65 = arith.mulf %62, %62 : vector<8x648xf32>
    %cst_53 = arith.constant dense<0.000000e+00> : vector<8xf32>
    %66 = vector.multi_reduction <add>, %65, %cst_53 [1] : vector<8x648xf32> to vector<8xf32>
    %67 = vector.shape_cast %66 : vector<8xf32> to vector<8x1xf32>
    %cst_54 = arith.constant 0.001953125 : f32
    %68 = vector.broadcast %cst_54 : f32 to vector<8x1xf32>
    %69 = arith.mulf %64, %68 : vector<8x1xf32>
    %cst_55 = arith.constant 0.001953125 : f32
    %70 = vector.broadcast %cst_55 : f32 to vector<8x1xf32>
    %71 = arith.mulf %67, %70 : vector<8x1xf32>
    %72 = arith.mulf %69, %69 : vector<8x1xf32>
    %73 = arith.subf %71, %72 : vector<8x1xf32>
    %cst_56 = arith.constant 0.000000e+00 : f32
    %74 = vector.broadcast %cst_56 : f32 to vector<8x1xf32>
    %75 = arith.maximumf %73, %74 : vector<8x1xf32>
    %c0_57 = arith.constant 0 : index
    %c0_58 = arith.constant 0 : index
    %76 = vector.load %arg6[%c0_57, %c0_58] : memref<8x1xf32, #tpu.memory_space<vmem>>, vector<8x1xf32>
    %cst_59 = arith.constant 9.99999974E-6 : f32
    %77 = vector.broadcast %cst_59 : f32 to vector<8x1xf32>
    %78 = arith.addf %75, %77 : vector<8x1xf32>
    %79 = math.rsqrt %78 : vector<8x1xf32>
    %80 = arith.mulf %76, %79 : vector<8x1xf32>
    %c0_60 = arith.constant 0 : index
    %c0_61 = arith.constant 0 : index
    %81 = vector.load %arg7[%c0_60, %c0_61] : memref<8x1xf32, #tpu.memory_space<vmem>>, vector<8x1xf32>
    %82 = arith.mulf %69, %80 : vector<8x1xf32>
    %83 = arith.subf %81, %82 : vector<8x1xf32>
    %84 = vector.broadcast %80 : vector<8x1xf32> to vector<8x648xf32>
    %85 = arith.mulf %61, %84 : vector<8x648xf32>
    %86 = vector.broadcast %83 : vector<8x1xf32> to vector<8x648xf32>
    %87 = arith.addf %85, %86 : vector<8x648xf32>
    %cst_62 = arith.constant 0.000000e+00 : f32
    %88 = vector.broadcast %cst_62 : f32 to vector<8x648xf32>
    %89 = arith.maximumf %87, %88 : vector<8x648xf32>
    %90 = arith.mulf %89, %2 : vector<8x648xf32>
    %c0_63 = arith.constant 0 : index
    %c0_64 = arith.constant 0 : index
    %91 = vector.load %arg8[%c0_63, %c0_64] : memref<8x648xf32, #tpu.memory_space<vmem>>, vector<8x648xf32>
    tpu.vector_store %arg8[%c0_63, %c0_64], %90 {strides = array<i32>} : memref<8x648xf32, #tpu.memory_space<vmem>>, vector<8x648xf32>,
    return
  }
}

module attributes {stable_mosaic.version = 11 : i64} {
  func.func @_double_conv_kernel(%arg0: memref<8x222xbf16, #tpu.memory_space<vmem>>, %arg1: memref<1x200xf32, #tpu.memory_space<vmem>>, %arg2: memref<16x72xbf16, #tpu.memory_space<vmem>>, %arg3: memref<16x1xf32, #tpu.memory_space<vmem>>, %arg4: memref<16x1xf32, #tpu.memory_space<vmem>>, %arg5: memref<16x144xbf16, #tpu.memory_space<vmem>>, %arg6: memref<16x1xf32, #tpu.memory_space<vmem>>, %arg7: memref<16x1xf32, #tpu.memory_space<vmem>>, %arg8: memref<16x200xf32, #tpu.memory_space<vmem>>, %arg9: memref<16x222xbf16, #tpu.memory_space<vmem>>) attributes {dimension_semantics = [], scalar_prefetch = 0 : i64, scratch_operands = 1 : i64, tpu.core_type = #tpu.core_type<tc>} {
    %c0 = arith.constant 0 : index
    %c0_0 = arith.constant 0 : index
    %0 = vector.load %arg1[%c0, %c0_0] : memref<1x200xf32, #tpu.memory_space<vmem>>, vector<1x200xf32>
    %1 = vector.shape_cast %0 : vector<1x200xf32> to vector<1x200xf32>
    %2 = vector.broadcast %1 : vector<1x200xf32> to vector<16x200xf32>
    %c0_1 = arith.constant 0 : index
    %c0_2 = arith.constant 0 : index
    %3 = vector.load %arg0[%c0_1, %c0_2] : memref<8x222xbf16, #tpu.memory_space<vmem>>, vector<8x200xbf16>
    %c0_3 = arith.constant 0 : index
    %c1 = arith.constant 1 : index
    %4 = vector.load %arg0[%c0_3, %c1] : memref<8x222xbf16, #tpu.memory_space<vmem>>, vector<8x200xbf16>
    %c0_4 = arith.constant 0 : index
    %c2 = arith.constant 2 : index
    %5 = vector.load %arg0[%c0_4, %c2] : memref<8x222xbf16, #tpu.memory_space<vmem>>, vector<8x200xbf16>
    %c0_5 = arith.constant 0 : index
    %c10 = arith.constant 10 : index
    %6 = vector.load %arg0[%c0_5, %c10] : memref<8x222xbf16, #tpu.memory_space<vmem>>, vector<8x200xbf16>
    %c0_6 = arith.constant 0 : index
    %c11 = arith.constant 11 : index
    %7 = vector.load %arg0[%c0_6, %c11] : memref<8x222xbf16, #tpu.memory_space<vmem>>, vector<8x200xbf16>
    %c0_7 = arith.constant 0 : index
    %c12 = arith.constant 12 : index
    %8 = vector.load %arg0[%c0_7, %c12] : memref<8x222xbf16, #tpu.memory_space<vmem>>, vector<8x200xbf16>
    %c0_8 = arith.constant 0 : index
    %c20 = arith.constant 20 : index
    %9 = vector.load %arg0[%c0_8, %c20] : memref<8x222xbf16, #tpu.memory_space<vmem>>, vector<8x200xbf16>
    %c0_9 = arith.constant 0 : index
    %c21 = arith.constant 21 : index
    %10 = vector.load %arg0[%c0_9, %c21] : memref<8x222xbf16, #tpu.memory_space<vmem>>, vector<8x200xbf16>
    %c0_10 = arith.constant 0 : index
    %c22 = arith.constant 22 : index
    %11 = vector.load %arg0[%c0_10, %c22] : memref<8x222xbf16, #tpu.memory_space<vmem>>, vector<8x200xbf16>
    %12 = tpu.concatenate %3, %4, %5, %6, %7, %8, %9, %10, %11 in 0 : vector<8x200xbf16>, vector<8x200xbf16>, vector<8x200xbf16>, vector<8x200xbf16>, vector<8x200xbf16>, vector<8x200xbf16>, vector<8x200xbf16>, vector<8x200xbf16>, vector<8x200xbf16> -> vector<72x200xbf16>
    %c0_11 = arith.constant 0 : index
    %c0_12 = arith.constant 0 : index
    %13 = vector.load %arg2[%c0_11, %c0_12] : memref<16x72xbf16, #tpu.memory_space<vmem>>, vector<16x72xbf16>
    %cst = arith.constant dense<0.000000e+00> : vector<16x200xf32>
    %14 = tpu.matmul %13, %12, %cst {dimension_numbers = #tpu.dot_dimension_numbers<[1], [0], [0], [1], [0, 0, 1, 1], [], []>} : vector<16x72xbf16>, vector<72x200xbf16>, vector<16x200xf32> -> vector<16x200xf32>
    %15 = arith.mulf %14, %2 : vector<16x200xf32>
    %cst_13 = arith.constant dense<0.000000e+00> : vector<16xf32>
    %16 = vector.multi_reduction <add>, %15, %cst_13 [1] : vector<16x200xf32> to vector<16xf32>
    %17 = vector.shape_cast %16 : vector<16xf32> to vector<16x1xf32>
    %18 = arith.mulf %15, %15 : vector<16x200xf32>
    %cst_14 = arith.constant dense<0.000000e+00> : vector<16xf32>
    %19 = vector.multi_reduction <add>, %18, %cst_14 [1] : vector<16x200xf32> to vector<16xf32>
    %20 = vector.shape_cast %19 : vector<16xf32> to vector<16x1xf32>
    %cst_15 = arith.constant 7.812500e-03 : f32
    %21 = vector.broadcast %cst_15 : f32 to vector<16x1xf32>
    %22 = arith.mulf %17, %21 : vector<16x1xf32>
    %cst_16 = arith.constant 7.812500e-03 : f32
    %23 = vector.broadcast %cst_16 : f32 to vector<16x1xf32>
    %24 = arith.mulf %20, %23 : vector<16x1xf32>
    %25 = arith.mulf %22, %22 : vector<16x1xf32>
    %26 = arith.subf %24, %25 : vector<16x1xf32>
    %cst_17 = arith.constant 0.000000e+00 : f32
    %27 = vector.broadcast %cst_17 : f32 to vector<16x1xf32>
    %28 = arith.maximumf %26, %27 : vector<16x1xf32>
    %c0_18 = arith.constant 0 : index
    %c0_19 = arith.constant 0 : index
    %29 = vector.load %arg3[%c0_18, %c0_19] : memref<16x1xf32, #tpu.memory_space<vmem>>, vector<16x1xf32>
    %cst_20 = arith.constant 9.99999974E-6 : f32
    %30 = vector.broadcast %cst_20 : f32 to vector<16x1xf32>
    %31 = arith.addf %28, %30 : vector<16x1xf32>
    %32 = math.rsqrt %31 : vector<16x1xf32>
    %33 = arith.mulf %29, %32 : vector<16x1xf32>
    %c0_21 = arith.constant 0 : index
    %c0_22 = arith.constant 0 : index
    %34 = vector.load %arg4[%c0_21, %c0_22] : memref<16x1xf32, #tpu.memory_space<vmem>>, vector<16x1xf32>
    %35 = arith.mulf %22, %33 : vector<16x1xf32>
    %36 = arith.subf %34, %35 : vector<16x1xf32>
    %37 = vector.broadcast %33 : vector<16x1xf32> to vector<16x200xf32>
    %38 = arith.mulf %14, %37 : vector<16x200xf32>
    %39 = vector.broadcast %36 : vector<16x1xf32> to vector<16x200xf32>
    %40 = arith.addf %38, %39 : vector<16x200xf32>
    %cst_23 = arith.constant 0.000000e+00 : f32
    %41 = vector.broadcast %cst_23 : f32 to vector<16x200xf32>
    %42 = arith.maximumf %40, %41 : vector<16x200xf32>
    %43 = arith.mulf %42, %2 : vector<16x200xf32>
    %cst_24 = arith.constant 0.000000e+00 : bf16
    %44 = vector.broadcast %cst_24 : bf16 to vector<16x11xbf16>
    %c0_25 = arith.constant 0 : index
    %c0_26 = arith.constant 0 : index
    %45 = vector.load %arg9[%c0_25, %c0_26] : memref<16x222xbf16, #tpu.memory_space<vmem>>, vector<16x11xbf16>
    tpu.vector_store %arg9[%c0_25, %c0_26], %44 {strides = array<i32>} : memref<16x222xbf16, #tpu.memory_space<vmem>>, vector<16x11xbf16>,
    %cst_27 = arith.constant 0.000000e+00 : bf16
    %46 = vector.broadcast %cst_27 : bf16 to vector<16x11xbf16>
    %c0_28 = arith.constant 0 : index
    %c211 = arith.constant 211 : index
    %47 = vector.load %arg9[%c0_28, %c211] : memref<16x222xbf16, #tpu.memory_space<vmem>>, vector<16x11xbf16>
    tpu.vector_store %arg9[%c0_28, %c211], %46 {strides = array<i32>} : memref<16x222xbf16, #tpu.memory_space<vmem>>, vector<16x11xbf16>,
    %48 = arith.truncf %43 : vector<16x200xf32> to vector<16x200xbf16>
    %c0_29 = arith.constant 0 : index
    %c11_30 = arith.constant 11 : index
    %49 = vector.load %arg9[%c0_29, %c11_30] : memref<16x222xbf16, #tpu.memory_space<vmem>>, vector<16x200xbf16>
    tpu.vector_store %arg9[%c0_29, %c11_30], %48 {strides = array<i32>} : memref<16x222xbf16, #tpu.memory_space<vmem>>, vector<16x200xbf16>,
    %c0_31 = arith.constant 0 : index
    %c0_32 = arith.constant 0 : index
    %50 = vector.load %arg9[%c0_31, %c0_32] : memref<16x222xbf16, #tpu.memory_space<vmem>>, vector<16x200xbf16>
    %c0_33 = arith.constant 0 : index
    %c1_34 = arith.constant 1 : index
    %51 = vector.load %arg9[%c0_33, %c1_34] : memref<16x222xbf16, #tpu.memory_space<vmem>>, vector<16x200xbf16>
    %c0_35 = arith.constant 0 : index
    %c2_36 = arith.constant 2 : index
    %52 = vector.load %arg9[%c0_35, %c2_36] : memref<16x222xbf16, #tpu.memory_space<vmem>>, vector<16x200xbf16>
    %c0_37 = arith.constant 0 : index
    %c10_38 = arith.constant 10 : index
    %53 = vector.load %arg9[%c0_37, %c10_38] : memref<16x222xbf16, #tpu.memory_space<vmem>>, vector<16x200xbf16>
    %c0_39 = arith.constant 0 : index
    %c11_40 = arith.constant 11 : index
    %54 = vector.load %arg9[%c0_39, %c11_40] : memref<16x222xbf16, #tpu.memory_space<vmem>>, vector<16x200xbf16>
    %c0_41 = arith.constant 0 : index
    %c12_42 = arith.constant 12 : index
    %55 = vector.load %arg9[%c0_41, %c12_42] : memref<16x222xbf16, #tpu.memory_space<vmem>>, vector<16x200xbf16>
    %c0_43 = arith.constant 0 : index
    %c20_44 = arith.constant 20 : index
    %56 = vector.load %arg9[%c0_43, %c20_44] : memref<16x222xbf16, #tpu.memory_space<vmem>>, vector<16x200xbf16>
    %c0_45 = arith.constant 0 : index
    %c21_46 = arith.constant 21 : index
    %57 = vector.load %arg9[%c0_45, %c21_46] : memref<16x222xbf16, #tpu.memory_space<vmem>>, vector<16x200xbf16>
    %c0_47 = arith.constant 0 : index
    %c22_48 = arith.constant 22 : index
    %58 = vector.load %arg9[%c0_47, %c22_48] : memref<16x222xbf16, #tpu.memory_space<vmem>>, vector<16x200xbf16>
    %59 = tpu.concatenate %50, %51, %52, %53, %54, %55, %56, %57, %58 in 0 : vector<16x200xbf16>, vector<16x200xbf16>, vector<16x200xbf16>, vector<16x200xbf16>, vector<16x200xbf16>, vector<16x200xbf16>, vector<16x200xbf16>, vector<16x200xbf16>, vector<16x200xbf16> -> vector<144x200xbf16>
    %c0_49 = arith.constant 0 : index
    %c0_50 = arith.constant 0 : index
    %60 = vector.load %arg5[%c0_49, %c0_50] : memref<16x144xbf16, #tpu.memory_space<vmem>>, vector<16x144xbf16>
    %cst_51 = arith.constant dense<0.000000e+00> : vector<16x200xf32>
    %61 = tpu.matmul %60, %59, %cst_51 {dimension_numbers = #tpu.dot_dimension_numbers<[1], [0], [0], [1], [0, 0, 1, 1], [], []>} : vector<16x144xbf16>, vector<144x200xbf16>, vector<16x200xf32> -> vector<16x200xf32>
    %62 = arith.mulf %61, %2 : vector<16x200xf32>
    %cst_52 = arith.constant dense<0.000000e+00> : vector<16xf32>
    %63 = vector.multi_reduction <add>, %62, %cst_52 [1] : vector<16x200xf32> to vector<16xf32>
    %64 = vector.shape_cast %63 : vector<16xf32> to vector<16x1xf32>
    %65 = arith.mulf %62, %62 : vector<16x200xf32>
    %cst_53 = arith.constant dense<0.000000e+00> : vector<16xf32>
    %66 = vector.multi_reduction <add>, %65, %cst_53 [1] : vector<16x200xf32> to vector<16xf32>
    %67 = vector.shape_cast %66 : vector<16xf32> to vector<16x1xf32>
    %cst_54 = arith.constant 7.812500e-03 : f32
    %68 = vector.broadcast %cst_54 : f32 to vector<16x1xf32>
    %69 = arith.mulf %64, %68 : vector<16x1xf32>
    %cst_55 = arith.constant 7.812500e-03 : f32
    %70 = vector.broadcast %cst_55 : f32 to vector<16x1xf32>
    %71 = arith.mulf %67, %70 : vector<16x1xf32>
    %72 = arith.mulf %69, %69 : vector<16x1xf32>
    %73 = arith.subf %71, %72 : vector<16x1xf32>
    %cst_56 = arith.constant 0.000000e+00 : f32
    %74 = vector.broadcast %cst_56 : f32 to vector<16x1xf32>
    %75 = arith.maximumf %73, %74 : vector<16x1xf32>
    %c0_57 = arith.constant 0 : index
    %c0_58 = arith.constant 0 : index
    %76 = vector.load %arg6[%c0_57, %c0_58] : memref<16x1xf32, #tpu.memory_space<vmem>>, vector<16x1xf32>
    %cst_59 = arith.constant 9.99999974E-6 : f32
    %77 = vector.broadcast %cst_59 : f32 to vector<16x1xf32>
    %78 = arith.addf %75, %77 : vector<16x1xf32>
    %79 = math.rsqrt %78 : vector<16x1xf32>
    %80 = arith.mulf %76, %79 : vector<16x1xf32>
    %c0_60 = arith.constant 0 : index
    %c0_61 = arith.constant 0 : index
    %81 = vector.load %arg7[%c0_60, %c0_61] : memref<16x1xf32, #tpu.memory_space<vmem>>, vector<16x1xf32>
    %82 = arith.mulf %69, %80 : vector<16x1xf32>
    %83 = arith.subf %81, %82 : vector<16x1xf32>
    %84 = vector.broadcast %80 : vector<16x1xf32> to vector<16x200xf32>
    %85 = arith.mulf %61, %84 : vector<16x200xf32>
    %86 = vector.broadcast %83 : vector<16x1xf32> to vector<16x200xf32>
    %87 = arith.addf %85, %86 : vector<16x200xf32>
    %cst_62 = arith.constant 0.000000e+00 : f32
    %88 = vector.broadcast %cst_62 : f32 to vector<16x200xf32>
    %89 = arith.maximumf %87, %88 : vector<16x200xf32>
    %90 = arith.mulf %89, %2 : vector<16x200xf32>
    %c0_63 = arith.constant 0 : index
    %c0_64 = arith.constant 0 : index
    %91 = vector.load %arg8[%c0_63, %c0_64] : memref<16x200xf32, #tpu.memory_space<vmem>>, vector<16x200xf32>
    tpu.vector_store %arg8[%c0_63, %c0_64], %90 {strides = array<i32>} : memref<16x200xf32, #tpu.memory_space<vmem>>, vector<16x200xf32>,
    return
  }
}

module attributes {stable_mosaic.version = 11 : i64} {
  func.func @_double_conv_kernel(%arg0: memref<16x86xbf16, #tpu.memory_space<vmem>>, %arg1: memref<1x72xf32, #tpu.memory_space<vmem>>, %arg2: memref<32x144xbf16, #tpu.memory_space<vmem>>, %arg3: memref<32x1xf32, #tpu.memory_space<vmem>>, %arg4: memref<32x1xf32, #tpu.memory_space<vmem>>, %arg5: memref<32x288xbf16, #tpu.memory_space<vmem>>, %arg6: memref<32x1xf32, #tpu.memory_space<vmem>>, %arg7: memref<32x1xf32, #tpu.memory_space<vmem>>, %arg8: memref<32x72xf32, #tpu.memory_space<vmem>>, %arg9: memref<32x86xbf16, #tpu.memory_space<vmem>>) attributes {dimension_semantics = [], scalar_prefetch = 0 : i64, scratch_operands = 1 : i64, tpu.core_type = #tpu.core_type<tc>} {
    %c0 = arith.constant 0 : index
    %c0_0 = arith.constant 0 : index
    %0 = vector.load %arg1[%c0, %c0_0] : memref<1x72xf32, #tpu.memory_space<vmem>>, vector<1x72xf32>
    %1 = vector.shape_cast %0 : vector<1x72xf32> to vector<1x72xf32>
    %2 = vector.broadcast %1 : vector<1x72xf32> to vector<32x72xf32>
    %c0_1 = arith.constant 0 : index
    %c0_2 = arith.constant 0 : index
    %3 = vector.load %arg0[%c0_1, %c0_2] : memref<16x86xbf16, #tpu.memory_space<vmem>>, vector<16x72xbf16>
    %c0_3 = arith.constant 0 : index
    %c1 = arith.constant 1 : index
    %4 = vector.load %arg0[%c0_3, %c1] : memref<16x86xbf16, #tpu.memory_space<vmem>>, vector<16x72xbf16>
    %c0_4 = arith.constant 0 : index
    %c2 = arith.constant 2 : index
    %5 = vector.load %arg0[%c0_4, %c2] : memref<16x86xbf16, #tpu.memory_space<vmem>>, vector<16x72xbf16>
    %c0_5 = arith.constant 0 : index
    %c6 = arith.constant 6 : index
    %6 = vector.load %arg0[%c0_5, %c6] : memref<16x86xbf16, #tpu.memory_space<vmem>>, vector<16x72xbf16>
    %c0_6 = arith.constant 0 : index
    %c7 = arith.constant 7 : index
    %7 = vector.load %arg0[%c0_6, %c7] : memref<16x86xbf16, #tpu.memory_space<vmem>>, vector<16x72xbf16>
    %c0_7 = arith.constant 0 : index
    %c8 = arith.constant 8 : index
    %8 = vector.load %arg0[%c0_7, %c8] : memref<16x86xbf16, #tpu.memory_space<vmem>>, vector<16x72xbf16>
    %c0_8 = arith.constant 0 : index
    %c12 = arith.constant 12 : index
    %9 = vector.load %arg0[%c0_8, %c12] : memref<16x86xbf16, #tpu.memory_space<vmem>>, vector<16x72xbf16>
    %c0_9 = arith.constant 0 : index
    %c13 = arith.constant 13 : index
    %10 = vector.load %arg0[%c0_9, %c13] : memref<16x86xbf16, #tpu.memory_space<vmem>>, vector<16x72xbf16>
    %c0_10 = arith.constant 0 : index
    %c14 = arith.constant 14 : index
    %11 = vector.load %arg0[%c0_10, %c14] : memref<16x86xbf16, #tpu.memory_space<vmem>>, vector<16x72xbf16>
    %12 = tpu.concatenate %3, %4, %5, %6, %7, %8, %9, %10, %11 in 0 : vector<16x72xbf16>, vector<16x72xbf16>, vector<16x72xbf16>, vector<16x72xbf16>, vector<16x72xbf16>, vector<16x72xbf16>, vector<16x72xbf16>, vector<16x72xbf16>, vector<16x72xbf16> -> vector<144x72xbf16>
    %c0_11 = arith.constant 0 : index
    %c0_12 = arith.constant 0 : index
    %13 = vector.load %arg2[%c0_11, %c0_12] : memref<32x144xbf16, #tpu.memory_space<vmem>>, vector<32x144xbf16>
    %cst = arith.constant dense<0.000000e+00> : vector<32x72xf32>
    %14 = tpu.matmul %13, %12, %cst {dimension_numbers = #tpu.dot_dimension_numbers<[1], [0], [0], [1], [0, 0, 1, 1], [], []>} : vector<32x144xbf16>, vector<144x72xbf16>, vector<32x72xf32> -> vector<32x72xf32>
    %15 = arith.mulf %14, %2 : vector<32x72xf32>
    %cst_13 = arith.constant dense<0.000000e+00> : vector<32xf32>
    %16 = vector.multi_reduction <add>, %15, %cst_13 [1] : vector<32x72xf32> to vector<32xf32>
    %17 = vector.shape_cast %16 : vector<32xf32> to vector<32x1xf32>
    %18 = arith.mulf %15, %15 : vector<32x72xf32>
    %cst_14 = arith.constant dense<0.000000e+00> : vector<32xf32>
    %19 = vector.multi_reduction <add>, %18, %cst_14 [1] : vector<32x72xf32> to vector<32xf32>
    %20 = vector.shape_cast %19 : vector<32xf32> to vector<32x1xf32>
    %cst_15 = arith.constant 3.125000e-02 : f32
    %21 = vector.broadcast %cst_15 : f32 to vector<32x1xf32>
    %22 = arith.mulf %17, %21 : vector<32x1xf32>
    %cst_16 = arith.constant 3.125000e-02 : f32
    %23 = vector.broadcast %cst_16 : f32 to vector<32x1xf32>
    %24 = arith.mulf %20, %23 : vector<32x1xf32>
    %25 = arith.mulf %22, %22 : vector<32x1xf32>
    %26 = arith.subf %24, %25 : vector<32x1xf32>
    %cst_17 = arith.constant 0.000000e+00 : f32
    %27 = vector.broadcast %cst_17 : f32 to vector<32x1xf32>
    %28 = arith.maximumf %26, %27 : vector<32x1xf32>
    %c0_18 = arith.constant 0 : index
    %c0_19 = arith.constant 0 : index
    %29 = vector.load %arg3[%c0_18, %c0_19] : memref<32x1xf32, #tpu.memory_space<vmem>>, vector<32x1xf32>
    %cst_20 = arith.constant 9.99999974E-6 : f32
    %30 = vector.broadcast %cst_20 : f32 to vector<32x1xf32>
    %31 = arith.addf %28, %30 : vector<32x1xf32>
    %32 = math.rsqrt %31 : vector<32x1xf32>
    %33 = arith.mulf %29, %32 : vector<32x1xf32>
    %c0_21 = arith.constant 0 : index
    %c0_22 = arith.constant 0 : index
    %34 = vector.load %arg4[%c0_21, %c0_22] : memref<32x1xf32, #tpu.memory_space<vmem>>, vector<32x1xf32>
    %35 = arith.mulf %22, %33 : vector<32x1xf32>
    %36 = arith.subf %34, %35 : vector<32x1xf32>
    %37 = vector.broadcast %33 : vector<32x1xf32> to vector<32x72xf32>
    %38 = arith.mulf %14, %37 : vector<32x72xf32>
    %39 = vector.broadcast %36 : vector<32x1xf32> to vector<32x72xf32>
    %40 = arith.addf %38, %39 : vector<32x72xf32>
    %cst_23 = arith.constant 0.000000e+00 : f32
    %41 = vector.broadcast %cst_23 : f32 to vector<32x72xf32>
    %42 = arith.maximumf %40, %41 : vector<32x72xf32>
    %43 = arith.mulf %42, %2 : vector<32x72xf32>
    %cst_24 = arith.constant 0.000000e+00 : bf16
    %44 = vector.broadcast %cst_24 : bf16 to vector<32x7xbf16>
    %c0_25 = arith.constant 0 : index
    %c0_26 = arith.constant 0 : index
    %45 = vector.load %arg9[%c0_25, %c0_26] : memref<32x86xbf16, #tpu.memory_space<vmem>>, vector<32x7xbf16>
    tpu.vector_store %arg9[%c0_25, %c0_26], %44 {strides = array<i32>} : memref<32x86xbf16, #tpu.memory_space<vmem>>, vector<32x7xbf16>,
    %cst_27 = arith.constant 0.000000e+00 : bf16
    %46 = vector.broadcast %cst_27 : bf16 to vector<32x7xbf16>
    %c0_28 = arith.constant 0 : index
    %c79 = arith.constant 79 : index
    %47 = vector.load %arg9[%c0_28, %c79] : memref<32x86xbf16, #tpu.memory_space<vmem>>, vector<32x7xbf16>
    tpu.vector_store %arg9[%c0_28, %c79], %46 {strides = array<i32>} : memref<32x86xbf16, #tpu.memory_space<vmem>>, vector<32x7xbf16>,
    %48 = arith.truncf %43 : vector<32x72xf32> to vector<32x72xbf16>
    %c0_29 = arith.constant 0 : index
    %c7_30 = arith.constant 7 : index
    %49 = vector.load %arg9[%c0_29, %c7_30] : memref<32x86xbf16, #tpu.memory_space<vmem>>, vector<32x72xbf16>
    tpu.vector_store %arg9[%c0_29, %c7_30], %48 {strides = array<i32>} : memref<32x86xbf16, #tpu.memory_space<vmem>>, vector<32x72xbf16>,
    %c0_31 = arith.constant 0 : index
    %c0_32 = arith.constant 0 : index
    %50 = vector.load %arg9[%c0_31, %c0_32] : memref<32x86xbf16, #tpu.memory_space<vmem>>, vector<32x72xbf16>
    %c0_33 = arith.constant 0 : index
    %c1_34 = arith.constant 1 : index
    %51 = vector.load %arg9[%c0_33, %c1_34] : memref<32x86xbf16, #tpu.memory_space<vmem>>, vector<32x72xbf16>
    %c0_35 = arith.constant 0 : index
    %c2_36 = arith.constant 2 : index
    %52 = vector.load %arg9[%c0_35, %c2_36] : memref<32x86xbf16, #tpu.memory_space<vmem>>, vector<32x72xbf16>
    %c0_37 = arith.constant 0 : index
    %c6_38 = arith.constant 6 : index
    %53 = vector.load %arg9[%c0_37, %c6_38] : memref<32x86xbf16, #tpu.memory_space<vmem>>, vector<32x72xbf16>
    %c0_39 = arith.constant 0 : index
    %c7_40 = arith.constant 7 : index
    %54 = vector.load %arg9[%c0_39, %c7_40] : memref<32x86xbf16, #tpu.memory_space<vmem>>, vector<32x72xbf16>
    %c0_41 = arith.constant 0 : index
    %c8_42 = arith.constant 8 : index
    %55 = vector.load %arg9[%c0_41, %c8_42] : memref<32x86xbf16, #tpu.memory_space<vmem>>, vector<32x72xbf16>
    %c0_43 = arith.constant 0 : index
    %c12_44 = arith.constant 12 : index
    %56 = vector.load %arg9[%c0_43, %c12_44] : memref<32x86xbf16, #tpu.memory_space<vmem>>, vector<32x72xbf16>
    %c0_45 = arith.constant 0 : index
    %c13_46 = arith.constant 13 : index
    %57 = vector.load %arg9[%c0_45, %c13_46] : memref<32x86xbf16, #tpu.memory_space<vmem>>, vector<32x72xbf16>
    %c0_47 = arith.constant 0 : index
    %c14_48 = arith.constant 14 : index
    %58 = vector.load %arg9[%c0_47, %c14_48] : memref<32x86xbf16, #tpu.memory_space<vmem>>, vector<32x72xbf16>
    %59 = tpu.concatenate %50, %51, %52, %53, %54, %55, %56, %57, %58 in 0 : vector<32x72xbf16>, vector<32x72xbf16>, vector<32x72xbf16>, vector<32x72xbf16>, vector<32x72xbf16>, vector<32x72xbf16>, vector<32x72xbf16>, vector<32x72xbf16>, vector<32x72xbf16> -> vector<288x72xbf16>
    %c0_49 = arith.constant 0 : index
    %c0_50 = arith.constant 0 : index
    %60 = vector.load %arg5[%c0_49, %c0_50] : memref<32x288xbf16, #tpu.memory_space<vmem>>, vector<32x288xbf16>
    %cst_51 = arith.constant dense<0.000000e+00> : vector<32x72xf32>
    %61 = tpu.matmul %60, %59, %cst_51 {dimension_numbers = #tpu.dot_dimension_numbers<[1], [0], [0], [1], [0, 0, 1, 1], [], []>} : vector<32x288xbf16>, vector<288x72xbf16>, vector<32x72xf32> -> vector<32x72xf32>
    %62 = arith.mulf %61, %2 : vector<32x72xf32>
    %cst_52 = arith.constant dense<0.000000e+00> : vector<32xf32>
    %63 = vector.multi_reduction <add>, %62, %cst_52 [1] : vector<32x72xf32> to vector<32xf32>
    %64 = vector.shape_cast %63 : vector<32xf32> to vector<32x1xf32>
    %65 = arith.mulf %62, %62 : vector<32x72xf32>
    %cst_53 = arith.constant dense<0.000000e+00> : vector<32xf32>
    %66 = vector.multi_reduction <add>, %65, %cst_53 [1] : vector<32x72xf32> to vector<32xf32>
    %67 = vector.shape_cast %66 : vector<32xf32> to vector<32x1xf32>
    %cst_54 = arith.constant 3.125000e-02 : f32
    %68 = vector.broadcast %cst_54 : f32 to vector<32x1xf32>
    %69 = arith.mulf %64, %68 : vector<32x1xf32>
    %cst_55 = arith.constant 3.125000e-02 : f32
    %70 = vector.broadcast %cst_55 : f32 to vector<32x1xf32>
    %71 = arith.mulf %67, %70 : vector<32x1xf32>
    %72 = arith.mulf %69, %69 : vector<32x1xf32>
    %73 = arith.subf %71, %72 : vector<32x1xf32>
    %cst_56 = arith.constant 0.000000e+00 : f32
    %74 = vector.broadcast %cst_56 : f32 to vector<32x1xf32>
    %75 = arith.maximumf %73, %74 : vector<32x1xf32>
    %c0_57 = arith.constant 0 : index
    %c0_58 = arith.constant 0 : index
    %76 = vector.load %arg6[%c0_57, %c0_58] : memref<32x1xf32, #tpu.memory_space<vmem>>, vector<32x1xf32>
    %cst_59 = arith.constant 9.99999974E-6 : f32
    %77 = vector.broadcast %cst_59 : f32 to vector<32x1xf32>
    %78 = arith.addf %75, %77 : vector<32x1xf32>
    %79 = math.rsqrt %78 : vector<32x1xf32>
    %80 = arith.mulf %76, %79 : vector<32x1xf32>
    %c0_60 = arith.constant 0 : index
    %c0_61 = arith.constant 0 : index
    %81 = vector.load %arg7[%c0_60, %c0_61] : memref<32x1xf32, #tpu.memory_space<vmem>>, vector<32x1xf32>
    %82 = arith.mulf %69, %80 : vector<32x1xf32>
    %83 = arith.subf %81, %82 : vector<32x1xf32>
    %84 = vector.broadcast %80 : vector<32x1xf32> to vector<32x72xf32>
    %85 = arith.mulf %61, %84 : vector<32x72xf32>
    %86 = vector.broadcast %83 : vector<32x1xf32> to vector<32x72xf32>
    %87 = arith.addf %85, %86 : vector<32x72xf32>
    %cst_62 = arith.constant 0.000000e+00 : f32
    %88 = vector.broadcast %cst_62 : f32 to vector<32x72xf32>
    %89 = arith.maximumf %87, %88 : vector<32x72xf32>
    %90 = arith.mulf %89, %2 : vector<32x72xf32>
    %c0_63 = arith.constant 0 : index
    %c0_64 = arith.constant 0 : index
    %91 = vector.load %arg8[%c0_63, %c0_64] : memref<32x72xf32, #tpu.memory_space<vmem>>, vector<32x72xf32>
    tpu.vector_store %arg8[%c0_63, %c0_64], %90 {strides = array<i32>} : memref<32x72xf32, #tpu.memory_space<vmem>>, vector<32x72xf32>,
    return
  }
}

module attributes {stable_mosaic.version = 11 : i64} {
  func.func @_matmul_bias_kernel(%arg0: memref<64x32xbf16, #tpu.memory_space<vmem>>, %arg1: memref<32x32xbf16, #tpu.memory_space<vmem>>, %arg2: memref<64x1xf32, #tpu.memory_space<vmem>>, %arg3: memref<64x32xf32, #tpu.memory_space<vmem>>) attributes {dimension_semantics = [], scalar_prefetch = 0 : i64, scratch_operands = 0 : i64, tpu.core_type = #tpu.core_type<tc>} {
    %c0 = arith.constant 0 : index
    %c0_0 = arith.constant 0 : index
    %0 = vector.load %arg0[%c0, %c0_0] : memref<64x32xbf16, #tpu.memory_space<vmem>>, vector<64x32xbf16>
    %c0_1 = arith.constant 0 : index
    %c0_2 = arith.constant 0 : index
    %1 = vector.load %arg1[%c0_1, %c0_2] : memref<32x32xbf16, #tpu.memory_space<vmem>>, vector<32x32xbf16>
    %cst = arith.constant dense<0.000000e+00> : vector<64x32xf32>
    %2 = tpu.matmul %0, %1, %cst {dimension_numbers = #tpu.dot_dimension_numbers<[1], [0], [0], [1], [0, 0, 1, 1], [], []>} : vector<64x32xbf16>, vector<32x32xbf16>, vector<64x32xf32> -> vector<64x32xf32>
    %c0_3 = arith.constant 0 : index
    %c0_4 = arith.constant 0 : index
    %3 = vector.load %arg2[%c0_3, %c0_4] : memref<64x1xf32, #tpu.memory_space<vmem>>, vector<64x1xf32>
    %4 = vector.broadcast %3 : vector<64x1xf32> to vector<64x32xf32>
    %5 = arith.addf %2, %4 : vector<64x32xf32>
    %c0_5 = arith.constant 0 : index
    %c0_6 = arith.constant 0 : index
    %6 = vector.load %arg3[%c0_5, %c0_6] : memref<64x32xf32, #tpu.memory_space<vmem>>, vector<64x32xf32>
    tpu.vector_store %arg3[%c0_5, %c0_6], %5 {strides = array<i32>} : memref<64x32xf32, #tpu.memory_space<vmem>>, vector<64x32xf32>,
    return
  }
}

module attributes {stable_mosaic.version = 11 : i64} {
  func.func @_double_conv_kernel(%arg0: memref<32x222xbf16, #tpu.memory_space<vmem>>, %arg1: memref<1x200xf32, #tpu.memory_space<vmem>>, %arg2: memref<16x288xbf16, #tpu.memory_space<vmem>>, %arg3: memref<16x1xf32, #tpu.memory_space<vmem>>, %arg4: memref<16x1xf32, #tpu.memory_space<vmem>>, %arg5: memref<16x144xbf16, #tpu.memory_space<vmem>>, %arg6: memref<16x1xf32, #tpu.memory_space<vmem>>, %arg7: memref<16x1xf32, #tpu.memory_space<vmem>>, %arg8: memref<16x200xf32, #tpu.memory_space<vmem>>, %arg9: memref<16x222xbf16, #tpu.memory_space<vmem>>) attributes {dimension_semantics = [], scalar_prefetch = 0 : i64, scratch_operands = 1 : i64, tpu.core_type = #tpu.core_type<tc>} {
    %c0 = arith.constant 0 : index
    %c0_0 = arith.constant 0 : index
    %0 = vector.load %arg1[%c0, %c0_0] : memref<1x200xf32, #tpu.memory_space<vmem>>, vector<1x200xf32>
    %1 = vector.shape_cast %0 : vector<1x200xf32> to vector<1x200xf32>
    %2 = vector.broadcast %1 : vector<1x200xf32> to vector<16x200xf32>
    %c0_1 = arith.constant 0 : index
    %c0_2 = arith.constant 0 : index
    %3 = vector.load %arg0[%c0_1, %c0_2] : memref<32x222xbf16, #tpu.memory_space<vmem>>, vector<32x200xbf16>
    %c0_3 = arith.constant 0 : index
    %c1 = arith.constant 1 : index
    %4 = vector.load %arg0[%c0_3, %c1] : memref<32x222xbf16, #tpu.memory_space<vmem>>, vector<32x200xbf16>
    %c0_4 = arith.constant 0 : index
    %c2 = arith.constant 2 : index
    %5 = vector.load %arg0[%c0_4, %c2] : memref<32x222xbf16, #tpu.memory_space<vmem>>, vector<32x200xbf16>
    %c0_5 = arith.constant 0 : index
    %c10 = arith.constant 10 : index
    %6 = vector.load %arg0[%c0_5, %c10] : memref<32x222xbf16, #tpu.memory_space<vmem>>, vector<32x200xbf16>
    %c0_6 = arith.constant 0 : index
    %c11 = arith.constant 11 : index
    %7 = vector.load %arg0[%c0_6, %c11] : memref<32x222xbf16, #tpu.memory_space<vmem>>, vector<32x200xbf16>
    %c0_7 = arith.constant 0 : index
    %c12 = arith.constant 12 : index
    %8 = vector.load %arg0[%c0_7, %c12] : memref<32x222xbf16, #tpu.memory_space<vmem>>, vector<32x200xbf16>
    %c0_8 = arith.constant 0 : index
    %c20 = arith.constant 20 : index
    %9 = vector.load %arg0[%c0_8, %c20] : memref<32x222xbf16, #tpu.memory_space<vmem>>, vector<32x200xbf16>
    %c0_9 = arith.constant 0 : index
    %c21 = arith.constant 21 : index
    %10 = vector.load %arg0[%c0_9, %c21] : memref<32x222xbf16, #tpu.memory_space<vmem>>, vector<32x200xbf16>
    %c0_10 = arith.constant 0 : index
    %c22 = arith.constant 22 : index
    %11 = vector.load %arg0[%c0_10, %c22] : memref<32x222xbf16, #tpu.memory_space<vmem>>, vector<32x200xbf16>
    %12 = tpu.concatenate %3, %4, %5, %6, %7, %8, %9, %10, %11 in 0 : vector<32x200xbf16>, vector<32x200xbf16>, vector<32x200xbf16>, vector<32x200xbf16>, vector<32x200xbf16>, vector<32x200xbf16>, vector<32x200xbf16>, vector<32x200xbf16>, vector<32x200xbf16> -> vector<288x200xbf16>
    %c0_11 = arith.constant 0 : index
    %c0_12 = arith.constant 0 : index
    %13 = vector.load %arg2[%c0_11, %c0_12] : memref<16x288xbf16, #tpu.memory_space<vmem>>, vector<16x288xbf16>
    %cst = arith.constant dense<0.000000e+00> : vector<16x200xf32>
    %14 = tpu.matmul %13, %12, %cst {dimension_numbers = #tpu.dot_dimension_numbers<[1], [0], [0], [1], [0, 0, 1, 1], [], []>} : vector<16x288xbf16>, vector<288x200xbf16>, vector<16x200xf32> -> vector<16x200xf32>
    %15 = arith.mulf %14, %2 : vector<16x200xf32>
    %cst_13 = arith.constant dense<0.000000e+00> : vector<16xf32>
    %16 = vector.multi_reduction <add>, %15, %cst_13 [1] : vector<16x200xf32> to vector<16xf32>
    %17 = vector.shape_cast %16 : vector<16xf32> to vector<16x1xf32>
    %18 = arith.mulf %15, %15 : vector<16x200xf32>
    %cst_14 = arith.constant dense<0.000000e+00> : vector<16xf32>
    %19 = vector.multi_reduction <add>, %18, %cst_14 [1] : vector<16x200xf32> to vector<16xf32>
    %20 = vector.shape_cast %19 : vector<16xf32> to vector<16x1xf32>
    %cst_15 = arith.constant 7.812500e-03 : f32
    %21 = vector.broadcast %cst_15 : f32 to vector<16x1xf32>
    %22 = arith.mulf %17, %21 : vector<16x1xf32>
    %cst_16 = arith.constant 7.812500e-03 : f32
    %23 = vector.broadcast %cst_16 : f32 to vector<16x1xf32>
    %24 = arith.mulf %20, %23 : vector<16x1xf32>
    %25 = arith.mulf %22, %22 : vector<16x1xf32>
    %26 = arith.subf %24, %25 : vector<16x1xf32>
    %cst_17 = arith.constant 0.000000e+00 : f32
    %27 = vector.broadcast %cst_17 : f32 to vector<16x1xf32>
    %28 = arith.maximumf %26, %27 : vector<16x1xf32>
    %c0_18 = arith.constant 0 : index
    %c0_19 = arith.constant 0 : index
    %29 = vector.load %arg3[%c0_18, %c0_19] : memref<16x1xf32, #tpu.memory_space<vmem>>, vector<16x1xf32>
    %cst_20 = arith.constant 9.99999974E-6 : f32
    %30 = vector.broadcast %cst_20 : f32 to vector<16x1xf32>
    %31 = arith.addf %28, %30 : vector<16x1xf32>
    %32 = math.rsqrt %31 : vector<16x1xf32>
    %33 = arith.mulf %29, %32 : vector<16x1xf32>
    %c0_21 = arith.constant 0 : index
    %c0_22 = arith.constant 0 : index
    %34 = vector.load %arg4[%c0_21, %c0_22] : memref<16x1xf32, #tpu.memory_space<vmem>>, vector<16x1xf32>
    %35 = arith.mulf %22, %33 : vector<16x1xf32>
    %36 = arith.subf %34, %35 : vector<16x1xf32>
    %37 = vector.broadcast %33 : vector<16x1xf32> to vector<16x200xf32>
    %38 = arith.mulf %14, %37 : vector<16x200xf32>
    %39 = vector.broadcast %36 : vector<16x1xf32> to vector<16x200xf32>
    %40 = arith.addf %38, %39 : vector<16x200xf32>
    %cst_23 = arith.constant 0.000000e+00 : f32
    %41 = vector.broadcast %cst_23 : f32 to vector<16x200xf32>
    %42 = arith.maximumf %40, %41 : vector<16x200xf32>
    %43 = arith.mulf %42, %2 : vector<16x200xf32>
    %cst_24 = arith.constant 0.000000e+00 : bf16
    %44 = vector.broadcast %cst_24 : bf16 to vector<16x11xbf16>
    %c0_25 = arith.constant 0 : index
    %c0_26 = arith.constant 0 : index
    %45 = vector.load %arg9[%c0_25, %c0_26] : memref<16x222xbf16, #tpu.memory_space<vmem>>, vector<16x11xbf16>
    tpu.vector_store %arg9[%c0_25, %c0_26], %44 {strides = array<i32>} : memref<16x222xbf16, #tpu.memory_space<vmem>>, vector<16x11xbf16>,
    %cst_27 = arith.constant 0.000000e+00 : bf16
    %46 = vector.broadcast %cst_27 : bf16 to vector<16x11xbf16>
    %c0_28 = arith.constant 0 : index
    %c211 = arith.constant 211 : index
    %47 = vector.load %arg9[%c0_28, %c211] : memref<16x222xbf16, #tpu.memory_space<vmem>>, vector<16x11xbf16>
    tpu.vector_store %arg9[%c0_28, %c211], %46 {strides = array<i32>} : memref<16x222xbf16, #tpu.memory_space<vmem>>, vector<16x11xbf16>,
    %48 = arith.truncf %43 : vector<16x200xf32> to vector<16x200xbf16>
    %c0_29 = arith.constant 0 : index
    %c11_30 = arith.constant 11 : index
    %49 = vector.load %arg9[%c0_29, %c11_30] : memref<16x222xbf16, #tpu.memory_space<vmem>>, vector<16x200xbf16>
    tpu.vector_store %arg9[%c0_29, %c11_30], %48 {strides = array<i32>} : memref<16x222xbf16, #tpu.memory_space<vmem>>, vector<16x200xbf16>,
    %c0_31 = arith.constant 0 : index
    %c0_32 = arith.constant 0 : index
    %50 = vector.load %arg9[%c0_31, %c0_32] : memref<16x222xbf16, #tpu.memory_space<vmem>>, vector<16x200xbf16>
    %c0_33 = arith.constant 0 : index
    %c1_34 = arith.constant 1 : index
    %51 = vector.load %arg9[%c0_33, %c1_34] : memref<16x222xbf16, #tpu.memory_space<vmem>>, vector<16x200xbf16>
    %c0_35 = arith.constant 0 : index
    %c2_36 = arith.constant 2 : index
    %52 = vector.load %arg9[%c0_35, %c2_36] : memref<16x222xbf16, #tpu.memory_space<vmem>>, vector<16x200xbf16>
    %c0_37 = arith.constant 0 : index
    %c10_38 = arith.constant 10 : index
    %53 = vector.load %arg9[%c0_37, %c10_38] : memref<16x222xbf16, #tpu.memory_space<vmem>>, vector<16x200xbf16>
    %c0_39 = arith.constant 0 : index
    %c11_40 = arith.constant 11 : index
    %54 = vector.load %arg9[%c0_39, %c11_40] : memref<16x222xbf16, #tpu.memory_space<vmem>>, vector<16x200xbf16>
    %c0_41 = arith.constant 0 : index
    %c12_42 = arith.constant 12 : index
    %55 = vector.load %arg9[%c0_41, %c12_42] : memref<16x222xbf16, #tpu.memory_space<vmem>>, vector<16x200xbf16>
    %c0_43 = arith.constant 0 : index
    %c20_44 = arith.constant 20 : index
    %56 = vector.load %arg9[%c0_43, %c20_44] : memref<16x222xbf16, #tpu.memory_space<vmem>>, vector<16x200xbf16>
    %c0_45 = arith.constant 0 : index
    %c21_46 = arith.constant 21 : index
    %57 = vector.load %arg9[%c0_45, %c21_46] : memref<16x222xbf16, #tpu.memory_space<vmem>>, vector<16x200xbf16>
    %c0_47 = arith.constant 0 : index
    %c22_48 = arith.constant 22 : index
    %58 = vector.load %arg9[%c0_47, %c22_48] : memref<16x222xbf16, #tpu.memory_space<vmem>>, vector<16x200xbf16>
    %59 = tpu.concatenate %50, %51, %52, %53, %54, %55, %56, %57, %58 in 0 : vector<16x200xbf16>, vector<16x200xbf16>, vector<16x200xbf16>, vector<16x200xbf16>, vector<16x200xbf16>, vector<16x200xbf16>, vector<16x200xbf16>, vector<16x200xbf16>, vector<16x200xbf16> -> vector<144x200xbf16>
    %c0_49 = arith.constant 0 : index
    %c0_50 = arith.constant 0 : index
    %60 = vector.load %arg5[%c0_49, %c0_50] : memref<16x144xbf16, #tpu.memory_space<vmem>>, vector<16x144xbf16>
    %cst_51 = arith.constant dense<0.000000e+00> : vector<16x200xf32>
    %61 = tpu.matmul %60, %59, %cst_51 {dimension_numbers = #tpu.dot_dimension_numbers<[1], [0], [0], [1], [0, 0, 1, 1], [], []>} : vector<16x144xbf16>, vector<144x200xbf16>, vector<16x200xf32> -> vector<16x200xf32>
    %62 = arith.mulf %61, %2 : vector<16x200xf32>
    %cst_52 = arith.constant dense<0.000000e+00> : vector<16xf32>
    %63 = vector.multi_reduction <add>, %62, %cst_52 [1] : vector<16x200xf32> to vector<16xf32>
    %64 = vector.shape_cast %63 : vector<16xf32> to vector<16x1xf32>
    %65 = arith.mulf %62, %62 : vector<16x200xf32>
    %cst_53 = arith.constant dense<0.000000e+00> : vector<16xf32>
    %66 = vector.multi_reduction <add>, %65, %cst_53 [1] : vector<16x200xf32> to vector<16xf32>
    %67 = vector.shape_cast %66 : vector<16xf32> to vector<16x1xf32>
    %cst_54 = arith.constant 7.812500e-03 : f32
    %68 = vector.broadcast %cst_54 : f32 to vector<16x1xf32>
    %69 = arith.mulf %64, %68 : vector<16x1xf32>
    %cst_55 = arith.constant 7.812500e-03 : f32
    %70 = vector.broadcast %cst_55 : f32 to vector<16x1xf32>
    %71 = arith.mulf %67, %70 : vector<16x1xf32>
    %72 = arith.mulf %69, %69 : vector<16x1xf32>
    %73 = arith.subf %71, %72 : vector<16x1xf32>
    %cst_56 = arith.constant 0.000000e+00 : f32
    %74 = vector.broadcast %cst_56 : f32 to vector<16x1xf32>
    %75 = arith.maximumf %73, %74 : vector<16x1xf32>
    %c0_57 = arith.constant 0 : index
    %c0_58 = arith.constant 0 : index
    %76 = vector.load %arg6[%c0_57, %c0_58] : memref<16x1xf32, #tpu.memory_space<vmem>>, vector<16x1xf32>
    %cst_59 = arith.constant 9.99999974E-6 : f32
    %77 = vector.broadcast %cst_59 : f32 to vector<16x1xf32>
    %78 = arith.addf %75, %77 : vector<16x1xf32>
    %79 = math.rsqrt %78 : vector<16x1xf32>
    %80 = arith.mulf %76, %79 : vector<16x1xf32>
    %c0_60 = arith.constant 0 : index
    %c0_61 = arith.constant 0 : index
    %81 = vector.load %arg7[%c0_60, %c0_61] : memref<16x1xf32, #tpu.memory_space<vmem>>, vector<16x1xf32>
    %82 = arith.mulf %69, %80 : vector<16x1xf32>
    %83 = arith.subf %81, %82 : vector<16x1xf32>
    %84 = vector.broadcast %80 : vector<16x1xf32> to vector<16x200xf32>
    %85 = arith.mulf %61, %84 : vector<16x200xf32>
    %86 = vector.broadcast %83 : vector<16x1xf32> to vector<16x200xf32>
    %87 = arith.addf %85, %86 : vector<16x200xf32>
    %cst_62 = arith.constant 0.000000e+00 : f32
    %88 = vector.broadcast %cst_62 : f32 to vector<16x200xf32>
    %89 = arith.maximumf %87, %88 : vector<16x200xf32>
    %90 = arith.mulf %89, %2 : vector<16x200xf32>
    %c0_63 = arith.constant 0 : index
    %c0_64 = arith.constant 0 : index
    %91 = vector.load %arg8[%c0_63, %c0_64] : memref<16x200xf32, #tpu.memory_space<vmem>>, vector<16x200xf32>
    tpu.vector_store %arg8[%c0_63, %c0_64], %90 {strides = array<i32>} : memref<16x200xf32, #tpu.memory_space<vmem>>, vector<16x200xf32>,
    return
  }
}

module attributes {stable_mosaic.version = 11 : i64} {
  func.func @_matmul_bias_kernel(%arg0: memref<32x16xbf16, #tpu.memory_space<vmem>>, %arg1: memref<16x128xbf16, #tpu.memory_space<vmem>>, %arg2: memref<32x1xf32, #tpu.memory_space<vmem>>, %arg3: memref<32x128xf32, #tpu.memory_space<vmem>>) attributes {dimension_semantics = [], scalar_prefetch = 0 : i64, scratch_operands = 0 : i64, tpu.core_type = #tpu.core_type<tc>} {
    %c0 = arith.constant 0 : index
    %c0_0 = arith.constant 0 : index
    %0 = vector.load %arg0[%c0, %c0_0] : memref<32x16xbf16, #tpu.memory_space<vmem>>, vector<32x16xbf16>
    %c0_1 = arith.constant 0 : index
    %c0_2 = arith.constant 0 : index
    %1 = vector.load %arg1[%c0_1, %c0_2] : memref<16x128xbf16, #tpu.memory_space<vmem>>, vector<16x128xbf16>
    %cst = arith.constant dense<0.000000e+00> : vector<32x128xf32>
    %2 = tpu.matmul %0, %1, %cst {dimension_numbers = #tpu.dot_dimension_numbers<[1], [0], [0], [1], [0, 0, 1, 1], [], []>} : vector<32x16xbf16>, vector<16x128xbf16>, vector<32x128xf32> -> vector<32x128xf32>
    %c0_3 = arith.constant 0 : index
    %c0_4 = arith.constant 0 : index
    %3 = vector.load %arg2[%c0_3, %c0_4] : memref<32x1xf32, #tpu.memory_space<vmem>>, vector<32x1xf32>
    %4 = vector.broadcast %3 : vector<32x1xf32> to vector<32x128xf32>
    %5 = arith.addf %2, %4 : vector<32x128xf32>
    %c0_5 = arith.constant 0 : index
    %c0_6 = arith.constant 0 : index
    %6 = vector.load %arg3[%c0_5, %c0_6] : memref<32x128xf32, #tpu.memory_space<vmem>>, vector<32x128xf32>
    tpu.vector_store %arg3[%c0_5, %c0_6], %5 {strides = array<i32>} : memref<32x128xf32, #tpu.memory_space<vmem>>, vector<32x128xf32>,
    return
  }
}

module attributes {stable_mosaic.version = 11 : i64} {
  func.func @_double_conv_kernel(%arg0: memref<16x686xbf16, #tpu.memory_space<vmem>>, %arg1: memref<1x648xf32, #tpu.memory_space<vmem>>, %arg2: memref<8x144xbf16, #tpu.memory_space<vmem>>, %arg3: memref<8x1xf32, #tpu.memory_space<vmem>>, %arg4: memref<8x1xf32, #tpu.memory_space<vmem>>, %arg5: memref<8x72xbf16, #tpu.memory_space<vmem>>, %arg6: memref<8x1xf32, #tpu.memory_space<vmem>>, %arg7: memref<8x1xf32, #tpu.memory_space<vmem>>, %arg8: memref<8x648xf32, #tpu.memory_space<vmem>>, %arg9: memref<8x686xbf16, #tpu.memory_space<vmem>>) attributes {dimension_semantics = [], scalar_prefetch = 0 : i64, scratch_operands = 1 : i64, tpu.core_type = #tpu.core_type<tc>} {
    %c0 = arith.constant 0 : index
    %c0_0 = arith.constant 0 : index
    %0 = vector.load %arg1[%c0, %c0_0] : memref<1x648xf32, #tpu.memory_space<vmem>>, vector<1x648xf32>
    %1 = vector.shape_cast %0 : vector<1x648xf32> to vector<1x648xf32>
    %2 = vector.broadcast %1 : vector<1x648xf32> to vector<8x648xf32>
    %c0_1 = arith.constant 0 : index
    %c0_2 = arith.constant 0 : index
    %3 = vector.load %arg0[%c0_1, %c0_2] : memref<16x686xbf16, #tpu.memory_space<vmem>>, vector<16x648xbf16>
    %c0_3 = arith.constant 0 : index
    %c1 = arith.constant 1 : index
    %4 = vector.load %arg0[%c0_3, %c1] : memref<16x686xbf16, #tpu.memory_space<vmem>>, vector<16x648xbf16>
    %c0_4 = arith.constant 0 : index
    %c2 = arith.constant 2 : index
    %5 = vector.load %arg0[%c0_4, %c2] : memref<16x686xbf16, #tpu.memory_space<vmem>>, vector<16x648xbf16>
    %c0_5 = arith.constant 0 : index
    %c18 = arith.constant 18 : index
    %6 = vector.load %arg0[%c0_5, %c18] : memref<16x686xbf16, #tpu.memory_space<vmem>>, vector<16x648xbf16>
    %c0_6 = arith.constant 0 : index
    %c19 = arith.constant 19 : index
    %7 = vector.load %arg0[%c0_6, %c19] : memref<16x686xbf16, #tpu.memory_space<vmem>>, vector<16x648xbf16>
    %c0_7 = arith.constant 0 : index
    %c20 = arith.constant 20 : index
    %8 = vector.load %arg0[%c0_7, %c20] : memref<16x686xbf16, #tpu.memory_space<vmem>>, vector<16x648xbf16>
    %c0_8 = arith.constant 0 : index
    %c36 = arith.constant 36 : index
    %9 = vector.load %arg0[%c0_8, %c36] : memref<16x686xbf16, #tpu.memory_space<vmem>>, vector<16x648xbf16>
    %c0_9 = arith.constant 0 : index
    %c37 = arith.constant 37 : index
    %10 = vector.load %arg0[%c0_9, %c37] : memref<16x686xbf16, #tpu.memory_space<vmem>>, vector<16x648xbf16>
    %c0_10 = arith.constant 0 : index
    %c38 = arith.constant 38 : index
    %11 = vector.load %arg0[%c0_10, %c38] : memref<16x686xbf16, #tpu.memory_space<vmem>>, vector<16x648xbf16>
    %12 = tpu.concatenate %3, %4, %5, %6, %7, %8, %9, %10, %11 in 0 : vector<16x648xbf16>, vector<16x648xbf16>, vector<16x648xbf16>, vector<16x648xbf16>, vector<16x648xbf16>, vector<16x648xbf16>, vector<16x648xbf16>, vector<16x648xbf16>, vector<16x648xbf16> -> vector<144x648xbf16>
    %c0_11 = arith.constant 0 : index
    %c0_12 = arith.constant 0 : index
    %13 = vector.load %arg2[%c0_11, %c0_12] : memref<8x144xbf16, #tpu.memory_space<vmem>>, vector<8x144xbf16>
    %cst = arith.constant dense<0.000000e+00> : vector<8x648xf32>
    %14 = tpu.matmul %13, %12, %cst {dimension_numbers = #tpu.dot_dimension_numbers<[1], [0], [0], [1], [0, 0, 1, 1], [], []>} : vector<8x144xbf16>, vector<144x648xbf16>, vector<8x648xf32> -> vector<8x648xf32>
    %15 = arith.mulf %14, %2 : vector<8x648xf32>
    %cst_13 = arith.constant dense<0.000000e+00> : vector<8xf32>
    %16 = vector.multi_reduction <add>, %15, %cst_13 [1] : vector<8x648xf32> to vector<8xf32>
    %17 = vector.shape_cast %16 : vector<8xf32> to vector<8x1xf32>
    %18 = arith.mulf %15, %15 : vector<8x648xf32>
    %cst_14 = arith.constant dense<0.000000e+00> : vector<8xf32>
    %19 = vector.multi_reduction <add>, %18, %cst_14 [1] : vector<8x648xf32> to vector<8xf32>
    %20 = vector.shape_cast %19 : vector<8xf32> to vector<8x1xf32>
    %cst_15 = arith.constant 0.001953125 : f32
    %21 = vector.broadcast %cst_15 : f32 to vector<8x1xf32>
    %22 = arith.mulf %17, %21 : vector<8x1xf32>
    %cst_16 = arith.constant 0.001953125 : f32
    %23 = vector.broadcast %cst_16 : f32 to vector<8x1xf32>
    %24 = arith.mulf %20, %23 : vector<8x1xf32>
    %25 = arith.mulf %22, %22 : vector<8x1xf32>
    %26 = arith.subf %24, %25 : vector<8x1xf32>
    %cst_17 = arith.constant 0.000000e+00 : f32
    %27 = vector.broadcast %cst_17 : f32 to vector<8x1xf32>
    %28 = arith.maximumf %26, %27 : vector<8x1xf32>
    %c0_18 = arith.constant 0 : index
    %c0_19 = arith.constant 0 : index
    %29 = vector.load %arg3[%c0_18, %c0_19] : memref<8x1xf32, #tpu.memory_space<vmem>>, vector<8x1xf32>
    %cst_20 = arith.constant 9.99999974E-6 : f32
    %30 = vector.broadcast %cst_20 : f32 to vector<8x1xf32>
    %31 = arith.addf %28, %30 : vector<8x1xf32>
    %32 = math.rsqrt %31 : vector<8x1xf32>
    %33 = arith.mulf %29, %32 : vector<8x1xf32>
    %c0_21 = arith.constant 0 : index
    %c0_22 = arith.constant 0 : index
    %34 = vector.load %arg4[%c0_21, %c0_22] : memref<8x1xf32, #tpu.memory_space<vmem>>, vector<8x1xf32>
    %35 = arith.mulf %22, %33 : vector<8x1xf32>
    %36 = arith.subf %34, %35 : vector<8x1xf32>
    %37 = vector.broadcast %33 : vector<8x1xf32> to vector<8x648xf32>
    %38 = arith.mulf %14, %37 : vector<8x648xf32>
    %39 = vector.broadcast %36 : vector<8x1xf32> to vector<8x648xf32>
    %40 = arith.addf %38, %39 : vector<8x648xf32>
    %cst_23 = arith.constant 0.000000e+00 : f32
    %41 = vector.broadcast %cst_23 : f32 to vector<8x648xf32>
    %42 = arith.maximumf %40, %41 : vector<8x648xf32>
    %43 = arith.mulf %42, %2 : vector<8x648xf32>
    %cst_24 = arith.constant 0.000000e+00 : bf16
    %44 = vector.broadcast %cst_24 : bf16 to vector<8x19xbf16>
    %c0_25 = arith.constant 0 : index
    %c0_26 = arith.constant 0 : index
    %45 = vector.load %arg9[%c0_25, %c0_26] : memref<8x686xbf16, #tpu.memory_space<vmem>>, vector<8x19xbf16>
    tpu.vector_store %arg9[%c0_25, %c0_26], %44 {strides = array<i32>} : memref<8x686xbf16, #tpu.memory_space<vmem>>, vector<8x19xbf16>,
    %cst_27 = arith.constant 0.000000e+00 : bf16
    %46 = vector.broadcast %cst_27 : bf16 to vector<8x19xbf16>
    %c0_28 = arith.constant 0 : index
    %c667 = arith.constant 667 : index
    %47 = vector.load %arg9[%c0_28, %c667] : memref<8x686xbf16, #tpu.memory_space<vmem>>, vector<8x19xbf16>
    tpu.vector_store %arg9[%c0_28, %c667], %46 {strides = array<i32>} : memref<8x686xbf16, #tpu.memory_space<vmem>>, vector<8x19xbf16>,
    %48 = arith.truncf %43 : vector<8x648xf32> to vector<8x648xbf16>
    %c0_29 = arith.constant 0 : index
    %c19_30 = arith.constant 19 : index
    %49 = vector.load %arg9[%c0_29, %c19_30] : memref<8x686xbf16, #tpu.memory_space<vmem>>, vector<8x648xbf16>
    tpu.vector_store %arg9[%c0_29, %c19_30], %48 {strides = array<i32>} : memref<8x686xbf16, #tpu.memory_space<vmem>>, vector<8x648xbf16>,
    %c0_31 = arith.constant 0 : index
    %c0_32 = arith.constant 0 : index
    %50 = vector.load %arg9[%c0_31, %c0_32] : memref<8x686xbf16, #tpu.memory_space<vmem>>, vector<8x648xbf16>
    %c0_33 = arith.constant 0 : index
    %c1_34 = arith.constant 1 : index
    %51 = vector.load %arg9[%c0_33, %c1_34] : memref<8x686xbf16, #tpu.memory_space<vmem>>, vector<8x648xbf16>
    %c0_35 = arith.constant 0 : index
    %c2_36 = arith.constant 2 : index
    %52 = vector.load %arg9[%c0_35, %c2_36] : memref<8x686xbf16, #tpu.memory_space<vmem>>, vector<8x648xbf16>
    %c0_37 = arith.constant 0 : index
    %c18_38 = arith.constant 18 : index
    %53 = vector.load %arg9[%c0_37, %c18_38] : memref<8x686xbf16, #tpu.memory_space<vmem>>, vector<8x648xbf16>
    %c0_39 = arith.constant 0 : index
    %c19_40 = arith.constant 19 : index
    %54 = vector.load %arg9[%c0_39, %c19_40] : memref<8x686xbf16, #tpu.memory_space<vmem>>, vector<8x648xbf16>
    %c0_41 = arith.constant 0 : index
    %c20_42 = arith.constant 20 : index
    %55 = vector.load %arg9[%c0_41, %c20_42] : memref<8x686xbf16, #tpu.memory_space<vmem>>, vector<8x648xbf16>
    %c0_43 = arith.constant 0 : index
    %c36_44 = arith.constant 36 : index
    %56 = vector.load %arg9[%c0_43, %c36_44] : memref<8x686xbf16, #tpu.memory_space<vmem>>, vector<8x648xbf16>
    %c0_45 = arith.constant 0 : index
    %c37_46 = arith.constant 37 : index
    %57 = vector.load %arg9[%c0_45, %c37_46] : memref<8x686xbf16, #tpu.memory_space<vmem>>, vector<8x648xbf16>
    %c0_47 = arith.constant 0 : index
    %c38_48 = arith.constant 38 : index
    %58 = vector.load %arg9[%c0_47, %c38_48] : memref<8x686xbf16, #tpu.memory_space<vmem>>, vector<8x648xbf16>
    %59 = tpu.concatenate %50, %51, %52, %53, %54, %55, %56, %57, %58 in 0 : vector<8x648xbf16>, vector<8x648xbf16>, vector<8x648xbf16>, vector<8x648xbf16>, vector<8x648xbf16>, vector<8x648xbf16>, vector<8x648xbf16>, vector<8x648xbf16>, vector<8x648xbf16> -> vector<72x648xbf16>
    %c0_49 = arith.constant 0 : index
    %c0_50 = arith.constant 0 : index
    %60 = vector.load %arg5[%c0_49, %c0_50] : memref<8x72xbf16, #tpu.memory_space<vmem>>, vector<8x72xbf16>
    %cst_51 = arith.constant dense<0.000000e+00> : vector<8x648xf32>
    %61 = tpu.matmul %60, %59, %cst_51 {dimension_numbers = #tpu.dot_dimension_numbers<[1], [0], [0], [1], [0, 0, 1, 1], [], []>} : vector<8x72xbf16>, vector<72x648xbf16>, vector<8x648xf32> -> vector<8x648xf32>
    %62 = arith.mulf %61, %2 : vector<8x648xf32>
    %cst_52 = arith.constant dense<0.000000e+00> : vector<8xf32>
    %63 = vector.multi_reduction <add>, %62, %cst_52 [1] : vector<8x648xf32> to vector<8xf32>
    %64 = vector.shape_cast %63 : vector<8xf32> to vector<8x1xf32>
    %65 = arith.mulf %62, %62 : vector<8x648xf32>
    %cst_53 = arith.constant dense<0.000000e+00> : vector<8xf32>
    %66 = vector.multi_reduction <add>, %65, %cst_53 [1] : vector<8x648xf32> to vector<8xf32>
    %67 = vector.shape_cast %66 : vector<8xf32> to vector<8x1xf32>
    %cst_54 = arith.constant 0.001953125 : f32
    %68 = vector.broadcast %cst_54 : f32 to vector<8x1xf32>
    %69 = arith.mulf %64, %68 : vector<8x1xf32>
    %cst_55 = arith.constant 0.001953125 : f32
    %70 = vector.broadcast %cst_55 : f32 to vector<8x1xf32>
    %71 = arith.mulf %67, %70 : vector<8x1xf32>
    %72 = arith.mulf %69, %69 : vector<8x1xf32>
    %73 = arith.subf %71, %72 : vector<8x1xf32>
    %cst_56 = arith.constant 0.000000e+00 : f32
    %74 = vector.broadcast %cst_56 : f32 to vector<8x1xf32>
    %75 = arith.maximumf %73, %74 : vector<8x1xf32>
    %c0_57 = arith.constant 0 : index
    %c0_58 = arith.constant 0 : index
    %76 = vector.load %arg6[%c0_57, %c0_58] : memref<8x1xf32, #tpu.memory_space<vmem>>, vector<8x1xf32>
    %cst_59 = arith.constant 9.99999974E-6 : f32
    %77 = vector.broadcast %cst_59 : f32 to vector<8x1xf32>
    %78 = arith.addf %75, %77 : vector<8x1xf32>
    %79 = math.rsqrt %78 : vector<8x1xf32>
    %80 = arith.mulf %76, %79 : vector<8x1xf32>
    %c0_60 = arith.constant 0 : index
    %c0_61 = arith.constant 0 : index
    %81 = vector.load %arg7[%c0_60, %c0_61] : memref<8x1xf32, #tpu.memory_space<vmem>>, vector<8x1xf32>
    %82 = arith.mulf %69, %80 : vector<8x1xf32>
    %83 = arith.subf %81, %82 : vector<8x1xf32>
    %84 = vector.broadcast %80 : vector<8x1xf32> to vector<8x648xf32>
    %85 = arith.mulf %61, %84 : vector<8x648xf32>
    %86 = vector.broadcast %83 : vector<8x1xf32> to vector<8x648xf32>
    %87 = arith.addf %85, %86 : vector<8x648xf32>
    %cst_62 = arith.constant 0.000000e+00 : f32
    %88 = vector.broadcast %cst_62 : f32 to vector<8x648xf32>
    %89 = arith.maximumf %87, %88 : vector<8x648xf32>
    %90 = arith.mulf %89, %2 : vector<8x648xf32>
    %c0_63 = arith.constant 0 : index
    %c0_64 = arith.constant 0 : index
    %91 = vector.load %arg8[%c0_63, %c0_64] : memref<8x648xf32, #tpu.memory_space<vmem>>, vector<8x648xf32>
    tpu.vector_store %arg8[%c0_63, %c0_64], %90 {strides = array<i32>} : memref<8x648xf32, #tpu.memory_space<vmem>>, vector<8x648xf32>,
    return
  }
}

module attributes {stable_mosaic.version = 11 : i64} {
  func.func @_matmul_bias_kernel(%arg0: memref<4x8xbf16, #tpu.memory_space<vmem>>, %arg1: memref<8x512xbf16, #tpu.memory_space<vmem>>, %arg2: memref<4x1xf32, #tpu.memory_space<vmem>>, %arg3: memref<4x512xf32, #tpu.memory_space<vmem>>) attributes {dimension_semantics = [], scalar_prefetch = 0 : i64, scratch_operands = 0 : i64, tpu.core_type = #tpu.core_type<tc>} {
    %c0 = arith.constant 0 : index
    %c0_0 = arith.constant 0 : index
    %0 = vector.load %arg0[%c0, %c0_0] : memref<4x8xbf16, #tpu.memory_space<vmem>>, vector<4x8xbf16>
    %c0_1 = arith.constant 0 : index
    %c0_2 = arith.constant 0 : index
    %1 = vector.load %arg1[%c0_1, %c0_2] : memref<8x512xbf16, #tpu.memory_space<vmem>>, vector<8x512xbf16>
    %cst = arith.constant dense<0.000000e+00> : vector<4x512xf32>
    %2 = tpu.matmul %0, %1, %cst {dimension_numbers = #tpu.dot_dimension_numbers<[1], [0], [0], [1], [0, 0, 1, 1], [], []>} : vector<4x8xbf16>, vector<8x512xbf16>, vector<4x512xf32> -> vector<4x512xf32>
    %c0_3 = arith.constant 0 : index
    %c0_4 = arith.constant 0 : index
    %3 = vector.load %arg2[%c0_3, %c0_4] : memref<4x1xf32, #tpu.memory_space<vmem>>, vector<4x1xf32>
    %4 = vector.broadcast %3 : vector<4x1xf32> to vector<4x512xf32>
    %5 = arith.addf %2, %4 : vector<4x512xf32>
    %c0_5 = arith.constant 0 : index
    %c0_6 = arith.constant 0 : index
    %6 = vector.load %arg3[%c0_5, %c0_6] : memref<4x512xf32, #tpu.memory_space<vmem>>, vector<4x512xf32>
    tpu.vector_store %arg3[%c0_5, %c0_6], %5 {strides = array<i32>} : memref<4x512xf32, #tpu.memory_space<vmem>>, vector<4x512xf32>,
    return
  }
}

</mosaic_0001>

<bundles_post_ra>
// kernel: unet_forward.8
= control target key start
LH: loop header
LB: loop body
LE: loop exit
PB: predicated region body
PF: predicated region fallthrough
CT: control target
= control target key end

     0   :  { %s1129_s9 = smov 127   ;;  %s1130_s10 = smov 126   ;;  %v1137_v8 = vmov 0   ;;  %vm92_vm0 = vcmask 1039360   ;;  %vm224_vm1 = vcmask 1043456   ;;  %vm110_vm2 = vcmask 1031168   ;;  %s1725_s0 = inlined_call_operand.vmem [shape: bf16[8,686], index: 0, kind: input, shape index: {}]   ;;  %s1726_s2 = inlined_call_operand.vmem [shape: bf16[8,72], index: 2, kind: input, shape index: {}]   ;;  %s1727_s1 = inlined_call_operand.vmem [shape: f32[1,648], index: 1, kind: input, shape index: {}]   ;;  %s1728_s3 = inlined_call_operand.vmem [shape: f32[8,1], index: 3, kind: input, shape index: {}]   ;;  %s1729_s4 = inlined_call_operand.vmem [shape: f32[8,1], index: 4, kind: input, shape index: {}]   ;;  %s1730_s5 = inlined_call_operand.vmem [shape: bf16[8,72], index: 5, kind: input, shape index: {}]   ;;  %s1731_s6 = inlined_call_operand.vmem [shape: f32[8,1], index: 6, kind: input, shape index: {}]   ;;  %s1732_s7 = inlined_call_operand.vmem [shape: f32[8,1], index: 7, kind: input, shape index: {}]   ;;  %s1733_s8 = inlined_call_operand.vmem [shape: f32[8,648], index: 8, kind: output, shape index: {}]  }
   0x1   :  { %v62_v0 = vld [vmem:[%s1725_s0] sm:$0xff]  ;;  %v63_v1 = vld [vmem:[%s1725_s0 + $0x8] sm:$0xff]  ;;  %s1131_s11 = smov 110   ;;  %s1132_s12 = smov 109   ;;  %v64_v6 = vld [vmem:[%s1725_s0 + $0x10] sm:$0xff]  ;;  %376 = vmatprep.mubr.bf16.mxu0 %v1137_v8  ;;  %417 = vmatprep.mubr.bf16.mxu1 %v1137_v8  ;;  %vm128_vm3 = vcmask 900096  }
   0x2   :  { %v1190_v2 = vcombine.high %v62_v0, %v62_v0  ;;  %v1192_v3 = vcombine.low %v62_v0, %v62_v0  ;;  %v1198_v4 = vcombine.low %v63_v1, %v63_v1  ;;  %s1133_s13 = smov 108   ;;  %s1134_s14 = smov 92   ;;  %v1236_v5 = vcombine.high %v63_v1, %v63_v1  ;;  %1113 = vset.pattern.permute.xlu0 %v1137_v8  ;;  %v1363_v1 = vld [vmem:[%s1726_s2] sm:$0xf] }
   0x3   :  { %s1135_s15 = smov 91   ;;  %v1245_v7 = vcombine.low %v64_v6, %v64_v6  ;;  %s1136_s18 = smov 90   ;;  %1114 = vset.pattern.permute.xlu1 %v1137_v8  ;;  %v1267_v9 = vcombine.high %v64_v6, %v64_v6  ;;  %vm146_vm4 = vcmask 891904   ;;  %vm164_vm5 = vcmask 883712  }
   0x4   :  { %82 = vrot.lane.b32.xlu0 %v1190_v2, %s1129_s9  ;;  %80 = vrot.lane.b32.xlu1 %v1192_v3, %s1129_s9  ;;  %vm182_vm6 = vcmask 752640   ;;  %vm200_vm7 = vcmask 744448   ;;  %vm218_vm8 = vcmask 736256   ;;  %vm322_vm9 = vcmask 588800  }
   0x5   :  { %vm1734_vm10 = vcmask 64512   ;;  %vm542_vm11 = vcmask 150528   ;;  %vm544_vm12 = vcmask 371928   ;;  %vm586_vm13 = vcmask 1043608  }
   0x6   :  { %543 = vst.msk [vmem:[#allocation2] sm:$0xf] %vm542_vm11, %v1137_v8  ;;  %vm587_vm14 = vcmask 1047556   ;;  %vm576_vm15 = vcmask 154624  }
   0x7   :  { %545 = vst.msk [vmem:[#allocation2 + $0x14] sm:$0xf] %vm544_vm12, %v1137_v8  ;;  %vm588_vm11 = vmor %vm587_vm14, %vm586_vm13 }
   0x8   :  { %84 = vrot.lane.b32.xlu0 %v1198_v4, %s1129_s9  ;;  %100 = vrot.lane.b32.xlu1 %v1190_v2, %s1130_s10 }
   0xc   :  { %102 = vrot.lane.b32.xlu0 %v1198_v4, %s1130_s10  ;;  %118 = vrot.lane.b32.xlu1 %v1190_v2, %s1131_s11 }
  0x10   :  { %120 = vrot.lane.b32.xlu0 %v1198_v4, %s1131_s11  ;;  %98 = vrot.lane.b32.xlu1 %v1192_v3, %s1130_s10 }
  0x14   :  { %116 = vrot.lane.b32.xlu0 %v1192_v3, %s1131_s11  ;;  %136 = vrot.lane.b32.xlu1 %v1190_v2, %s1132_s12 }
  0x18   :  { %138 = vrot.lane.b32.xlu0 %v1198_v4, %s1132_s12  ;;  %154 = vrot.lane.b32.xlu1 %v1190_v2, %s1133_s13 }
  0x1c   :  { %156 = vrot.lane.b32.xlu0 %v1198_v4, %s1133_s13  ;;  %134 = vrot.lane.b32.xlu1 %v1192_v3, %s1132_s12 }
  0x20   :  { %152 = vrot.lane.b32.xlu0 %v1192_v3, %s1133_s13  ;;  %172 = vrot.lane.b32.xlu1 %v1190_v2, %s1134_s14 }
  0x24   :  { %174 = vrot.lane.b32.xlu0 %v1198_v4, %s1134_s14  ;;  %190 = vrot.lane.b32.xlu1 %v1190_v2, %s1135_s15 }
  0x28   :  { %192 = vrot.lane.b32.xlu0 %v1198_v4, %s1135_s15  ;;  %170 = vrot.lane.b32.xlu1 %v1192_v3, %s1134_s14 }
  0x2c   :  { %188 = vrot.lane.b32.xlu0 %v1192_v3, %s1135_s15  ;;  %86 = vrot.lane.b32.xlu1 %v1236_v5, %s1129_s9 }
  0x30   :  { %88 = vrot.lane.b32.xlu0 %v1245_v7, %s1129_s9  ;;  %206 = vrot.lane.b32.xlu1 %v1192_v3, %s1136_s18 }
  0x34   :  { %208 = vrot.lane.b32.xlu0 %v1190_v2, %s1136_s18  ;;  %210 = vrot.lane.b32.xlu1 %v1198_v4, %s1136_s18 }
  0x38   :  { %104 = vrot.lane.b32.xlu0 %v1236_v5, %s1130_s10  ;;  %106 = vrot.lane.b32.xlu1 %v1245_v7, %s1130_s10 }
  0x3c   :  { %122 = vrot.lane.b32.xlu0 %v1236_v5, %s1131_s11  ;;  %124 = vrot.lane.b32.xlu1 %v1245_v7, %s1131_s11 }
  0x40   :  { %90 = vrot.lane.b32.xlu0 %v1267_v9, %s1129_s9  ;;  %140 = vrot.lane.b32.xlu1 %v1236_v5, %s1132_s12 }
  0x44   :  { %142 = vrot.lane.b32.xlu0 %v1245_v7, %s1132_s12  ;;  %158 = vrot.lane.b32.xlu1 %v1236_v5, %s1133_s13 }
  0x48   :  { %160 = vrot.lane.b32.xlu0 %v1245_v7, %s1133_s13  ;;  %108 = vrot.lane.b32.xlu1 %v1267_v9, %s1130_s10 }
  0x4c   :  { %126 = vrot.lane.b32.xlu0 %v1267_v9, %s1131_s11  ;;  %176 = vrot.lane.b32.xlu1 %v1236_v5, %s1134_s14 }
  0x50   :  { %178 = vrot.lane.b32.xlu0 %v1245_v7, %s1134_s14  ;;  %194 = vrot.lane.b32.xlu1 %v1236_v5, %s1135_s15 }
  0x54   :  { %196 = vrot.lane.b32.xlu0 %v1245_v7, %s1135_s15  ;;  %144 = vrot.lane.b32.xlu1 %v1267_v9, %s1132_s12 }
  0x58   :  { %162 = vrot.lane.b32.xlu0 %v1267_v9, %s1133_s13  ;;  %180 = vrot.lane.b32.xlu1 %v1267_v9, %s1134_s14 }
  0x5c   :  { %198 = vrot.lane.b32.xlu0 %v1267_v9, %s1135_s15  ;;  %212 = vrot.lane.b32.xlu1 %v1236_v5, %s1136_s18 }
  0x60   :  { %214 = vrot.lane.b32.xlu0 %v1245_v7, %s1136_s18  ;;  %216 = vrot.lane.b32.xlu1 %v1267_v9, %s1136_s18 }
  0x76   :  { %v83_v10 = vpop.permute.xlu0 %82  ;;  %v81_v11 = vpop.permute.xlu1 %80 }
  0x77   :  { %v93_v12 = vsel %vm92_vm0, %v81_v11, %v83_v10 }
  0x78   :  { %v227_v17 = vsel %vm224_vm1, %v1192_v3, %v93_v12 }
  0x7a   :  { %v85_v13 = vpop.permute.xlu0 %84  ;;  %v101_v14 = vpop.permute.xlu1 %100 }
  0x7b   :  { %v94_v15 = vsel %vm92_vm0, %v83_v10, %v85_v13 }
  0x7c   :  { %v231_v16 = vsel %vm224_vm1, %v1190_v2, %v94_v15 }
  0x7d   :  { %344 = vmatprep.subr.bf16.mxu0 %v231_v16 }
  0x7e   :  { %v1311_v18 = vpop.permute.xlu0 %102  ;;  %345 = vmatpush1.bf16.msra.mxu0 %v227_v17  ;;  %v119_v19 = vpop.permute.xlu1 %118 }
  0x7f   :  { %v112_v22 = vsel %vm110_vm2, %v101_v14, %v1311_v18 }
  0x82   :  { %v1313_v20 = vpop.permute.xlu0 %120  ;;  %v99_v21 = vpop.permute.xlu1 %98 }
  0x83   :  { %v130_v23 = vsel %vm128_vm3, %v119_v19, %v1313_v20  ;;  %v111_v27 = vsel %vm110_vm2, %v99_v21, %v101_v14 }
  0x84   :  { %v255_v24 = vsel %vm224_vm1, %v112_v22, %v130_v23 }
  0x85   :  { %346 = vmatprep.subr.bf16.mxu0 %v255_v24 }
  0x86   :  { %v117_v25 = vpop.permute.xlu0 %116  ;;  %v137_v26 = vpop.permute.xlu1 %136 }
  0x87   :  { %v129_v28 = vsel %vm128_vm3, %v117_v25, %v119_v19 }
  0x88   :  { %v251_v29 = vsel %vm224_vm1, %v111_v27, %v129_v28 }
  0x89   :  { %347 = vmatpush1.bf16.msra.mxu0 %v251_v29 }
  0x8a   :  { %v1323_v30 = vpop.permute.xlu0 %138  ;;  %v155_v31 = vpop.permute.xlu1 %154 }
  0x8b   :  { %v148_v34 = vsel %vm146_vm4, %v137_v26, %v1323_v30 }
  0x8e   :  { %v1325_v32 = vpop.permute.xlu0 %156  ;;  %v135_v33 = vpop.permute.xlu1 %134 }
  0x8f   :  { %v166_v35 = vsel %vm164_vm5, %v155_v31, %v1325_v32  ;;  %v147_v39 = vsel %vm146_vm4, %v135_v33, %v137_v26 }
  0x90   :  { %v279_v36 = vsel %vm224_vm1, %v148_v34, %v166_v35 }
  0x91   :  { %348 = vmatprep.subr.bf16.mxu0 %v279_v36 }
  0x92   :  { %v153_v37 = vpop.permute.xlu0 %152  ;;  %v173_v38 = vpop.permute.xlu1 %172 }
  0x93   :  { %v165_v40 = vsel %vm164_vm5, %v153_v37, %v155_v31 }
  0x94   :  { %v275_v41 = vsel %vm224_vm1, %v147_v39, %v165_v40 }
  0x95   :  { %349 = vmatpush1.bf16.msra.mxu0 %v275_v41 }
  0x96   :  { %v1335_v42 = vpop.permute.xlu0 %174  ;;  %v191_v43 = vpop.permute.xlu1 %190 }
  0x97   :  { %v184_v46 = vsel %vm182_vm6, %v173_v38, %v1335_v42 }
  0x9a   :  { %v1337_v44 = vpop.permute.xlu0 %192  ;;  %v171_v45 = vpop.permute.xlu1 %170 }
  0x9b   :  { %v202_v47 = vsel %vm200_vm7, %v191_v43, %v1337_v44  ;;  %v183_v51 = vsel %vm182_vm6, %v171_v45, %v173_v38 }
  0x9c   :  { %v303_v48 = vsel %vm224_vm1, %v184_v46, %v202_v47 }
  0x9d   :  { %350 = vmatprep.subr.bf16.mxu0 %v303_v48 }
  0x9e   :  { %v189_v49 = vpop.permute.xlu0 %188  ;;  %v87_v50 = vpop.permute.xlu1 %86 }
  0x9f   :  { %v201_v52 = vsel %vm200_vm7, %v189_v49, %v191_v43  ;;  %v95_v54 = vsel %vm92_vm0, %v85_v13, %v87_v50 }
  0xa0   :  { %v299_v53 = vsel %vm224_vm1, %v183_v51, %v201_v52  ;;  %v235_v59 = vsel %vm224_vm1, %v1198_v4, %v95_v54 }
  0xa1   :  { %351 = vmatpush1.bf16.msra.mxu0 %v299_v53 }
  0xa2   :  { %v89_v55 = vpop.permute.xlu0 %88  ;;  %v207_v56 = vpop.permute.xlu1 %206 }
  0xa3   :  { %v96_v57 = vsel %vm92_vm0, %v87_v50, %v89_v55 }
  0xa4   :  { %v239_v58 = vsel %vm224_vm1, %v1236_v5, %v96_v57 }
  0xa5   :  { %385 = vmatprep.subr.bf16.mxu1 %v239_v58 }
  0xa6   :  { %v209_v60 = vpop.permute.xlu0 %208  ;;  %386 = vmatpush1.bf16.msra.mxu1 %v235_v59  ;;  %v1353_v61 = vpop.permute.xlu1 %210 }
  0xa7   :  { %v219_v62 = vsel %vm218_vm8, %v207_v56, %v209_v60  ;;  %v220_v63 = vsel %vm218_vm8, %v209_v60, %v1353_v61 }
  0xa8   :  { %1079 = vmatprep.subr.msk.bf16.mxu0 %vm224_vm1, %v220_v63  ;;  %v327_v0 = vsel %vm224_vm1, %v219_v62, 0 }
  0xa9   :  { %353 = vmatpush1.bf16.msra.mxu0 %v327_v0 }
  0xaa   :  { %v105_v2 = vpop.permute.xlu0 %104  ;;  %v107_v3 = vpop.permute.xlu1 %106 }
  0xab   :  { %v113_v6 = vsel %vm110_vm2, %v1311_v18, %v105_v2  ;;  %v114_v10 = vsel %vm110_vm2, %v105_v2, %v107_v3 }
  0xac   :  { %1080 = vmatmul.mubr.msk.bf16.vlgmr.msra.gmra.mrb[0].mxu0 %vm322_vm9, %v1363_v1 }
  0xad   :  { %458 = vmatprep.mubr.bf16.mxu0 %v1137_v8 }
  0xae   :  { %v123_v4 = vpop.permute.xlu0 %122  ;;  %v125_v5 = vpop.permute.xlu1 %124 }
  0xaf   :  { %v131_v11 = vsel %vm128_vm3, %v1313_v20, %v123_v4  ;;  %v132_v12 = vsel %vm128_vm3, %v123_v4, %v125_v5 }
  0xb0   :  { %v263_v13 = vsel %vm224_vm1, %v114_v10, %v132_v12  ;;  %v259_v14 = vsel %vm224_vm1, %v113_v6, %v131_v11 }
  0xb1   :  { %387 = vmatprep.subr.bf16.mxu1 %v263_v13 }
  0xb2   :  { %v91_v15 = vpop.permute.xlu0 %90  ;;  %388 = vmatpush1.bf16.msra.mxu1 %v259_v14  ;;  %v141_v16 = vpop.permute.xlu1 %140 }
  0xb3   :  { %v97_v17 = vsel %vm92_vm0, %v89_v55, %v91_v15  ;;  %v247_v18 = vsel %vm224_vm1, %v1267_v9, %v91_v15  ;;  %v149_v27 = vsel %vm146_vm4, %v1323_v30, %v141_v16 }
  0xb4   :  { %426 = vmatprep.subr.bf16.mxu0 %v247_v18  ;;  %v243_v19 = vsel %vm224_vm1, %v1245_v7, %v97_v17 }
  0xb5   :  { %427 = vmatpush1.bf16.msra.mxu0 %v243_v19 }
  0xb6   :  { %v143_v20 = vpop.permute.xlu0 %142  ;;  %v159_v21 = vpop.permute.xlu1 %158 }
  0xb7   :  { %v167_v22 = vsel %vm164_vm5, %v1325_v32, %v159_v21  ;;  %v150_v25 = vsel %vm146_vm4, %v141_v16, %v143_v20 }
  0xb8   :  { %v283_v7 = vsel %vm224_vm1, %v149_v27, %v167_v22 }
  0xba   :  { %v161_v23 = vpop.permute.xlu0 %160  ;;  %v109_v24 = vpop.permute.xlu1 %108 }
  0xbb   :  { %v168_v26 = vsel %vm164_vm5, %v159_v21, %v161_v23  ;;  %v115_v31 = vsel %vm110_vm2, %v107_v3, %v109_v24  ;;  %v30_v3 = vld [vmem:[%s1727_s1] sm:$0x3f] }
  0xbc   :  { %v287_v9 = vsel %vm224_vm1, %v150_v25, %v168_v26 }
  0xbd   :  { %389 = vmatprep.subr.bf16.mxu1 %v287_v9 }
  0xbe   :  { %v127_v28 = vpop.permute.xlu0 %126  ;;  %390 = vmatpush1.bf16.msra.mxu1 %v283_v7  ;;  %v177_v29 = vpop.permute.xlu1 %176 }
  0xbf   :  { %v133_v32 = vsel %vm128_vm3, %v125_v5, %v127_v28  ;;  %v271_v33 = vsel %vm224_vm1, %v109_v24, %v127_v28  ;;  %v185_v41 = vsel %vm182_vm6, %v1335_v42, %v177_v29 }
  0xc0   :  { %428 = vmatprep.subr.bf16.mxu0 %v271_v33  ;;  %v267_v34 = vsel %vm224_vm1, %v115_v31, %v133_v32 }
  0xc1   :  { %429 = vmatpush1.bf16.msra.mxu0 %v267_v34 }
  0xc2   :  { %v179_v35 = vpop.permute.xlu0 %178  ;;  %v195_v30 = vpop.permute.xlu1 %194 }
  0xc3   :  { %v203_v36 = vsel %vm200_vm7, %v1337_v44, %v195_v30  ;;  %v186_v39 = vsel %vm182_vm6, %v177_v29, %v179_v35 }
  0xc4   :  { %v307_v45 = vsel %vm224_vm1, %v185_v41, %v203_v36 }
  0xc6   :  { %v197_v37 = vpop.permute.xlu0 %196  ;;  %v145_v38 = vpop.permute.xlu1 %144 }
  0xc7   :  { %v204_v40 = vsel %vm200_vm7, %v195_v30, %v197_v37  ;;  %v151_v48 = vsel %vm146_vm4, %v143_v20, %v145_v38 }
  0xc8   :  { %v311_v43 = vsel %vm224_vm1, %v186_v39, %v204_v40 }
  0xc9   :  { %391 = vmatprep.subr.bf16.mxu1 %v311_v43 }
  0xca   :  { %v163_v46 = vpop.permute.xlu0 %162  ;;  %392 = vmatpush1.bf16.msra.mxu1 %v307_v45  ;;  %v181_v47 = vpop.permute.xlu1 %180 }
  0xcb   :  { %v169_v44 = vsel %vm164_vm5, %v161_v23, %v163_v46  ;;  %v295_v49 = vsel %vm224_vm1, %v145_v38, %v163_v46  ;;  %v187_v52 = vsel %vm182_vm6, %v179_v35, %v181_v47 }
  0xcc   :  { %430 = vmatprep.subr.bf16.mxu0 %v295_v49  ;;  %v291_v50 = vsel %vm224_vm1, %v151_v48, %v169_v44 }
  0xcd   :  { %431 = vmatpush1.bf16.msra.mxu0 %v291_v50 }
  0xce   :  { %v199_v51 = vpop.permute.xlu0 %198  ;;  %v213_v42 = vpop.permute.xlu1 %212 }
  0xcf   :  { %v205_v53 = vsel %vm200_vm7, %v197_v37, %v199_v51  ;;  %v319_v54 = vsel %vm224_vm1, %v181_v47, %v199_v51  ;;  %v221_v56 = vsel %vm218_vm8, %v1353_v61, %v213_v42  ;;  %v32_v61 = vlaneseq }
  0xd0   :  { %432 = vmatprep.subr.bf16.mxu0 %v319_v54  ;;  %v315_v55 = vsel %vm224_vm1, %v187_v52, %v205_v53  ;;  %v333_v63 = vsel %vm224_vm1, %v221_v56, 0 }
  0xd1   :  { %433 = vmatpush1.bf16.msra.mxu0 %v315_v55  ;;  %v33_v0 = vshrl.u32 %v32_v61, 7 }
  0xd2   :  { %v215_v57 = vpop.permute.xlu0 %214  ;;  %v217_v58 = vpop.permute.xlu1 %216 }
  0xd3   :  { %v222_v59 = vsel %vm218_vm8, %v213_v42, %v215_v57  ;;  %v223_v60 = vsel %vm218_vm8, %v215_v57, %v217_v58  ;;  %1083 = vmatprep.subr.msk.bf16.mxu0 %vm224_vm1, %v217_v58  ;;  %v34_v2 = vsub.s32 0, %v33_v0  ;;  %v38_v4 = vsub.s32 1, %v33_v0 }
  0xd4   :  { %v339_v62 = vsel %vm224_vm1, %v223_v60, 0  ;;  %1081 = vmatprep.subr.msk.bf16.mxu1 %vm224_vm1, %v222_v59  ;;  %v42_v19 = vsub.s32 2, %v33_v0  ;;  %v50_v20 = vsub.s32 4, %v33_v0  ;;  %v46_v21 = vsub.s32 3, %v33_v0  ;;  %v501_v59 = vld [vmem:[%s1728_s3] sm:$0xff]  ;;  %s1138_s3 = smov 19  }
  0xd5   :  { %394 = vmatpush1.bf16.msra.mxu1 %v333_v63  ;;  %435 = vmatpush1.bf16.msra.mxu0 %v339_v62  ;;  %v1426_v5 = vrot.slane %v30_v3, %v34_v2  ;;  %v1428_v6 = vrot.slane %v30_v3, %v38_v4  ;;  %v54_v22 = vsub.s32 5, %v33_v0  ;;  %v505_v63 = vld [vmem:[%s1729_s4] sm:$0xff] }
  0xd6   :  { %v1438_v23 = vrot.slane %v30_v3, %v42_v19  ;;  %v1440_v24 = vrot.slane %v30_v3, %v50_v20  ;;  %v1442_v25 = vrot.slane %v30_v3, %v46_v21 }
  0xd7   :  { %v1444_v26 = vrot.slane %v30_v3, %v54_v22 }
  0xd8   :  { %1082 = vmatmul.mubr.msk.bf16.vlgmr.msra.gmra.mrb[0].mxu1 %vm322_vm9, %v1363_v1  ;;  %1084 = vmatmul.mubr.msk.bf16.vlgmr.msra.gmra.mrb[4].mxu0 %vm322_vm9, %v1363_v1 }
  0xd9   :  { %898 = vmatprep.mubr.bf16.mxu1 %v1137_v8  ;;  %939 = vmatprep.mubr.bf16.mxu0 %v1137_v8 }
 0x17f   :  { %v1430_v10 = vpop.f32.mrb[0].mxu0 }
 0x180   :  { %v467_v1 = vmul.f32 %v1430_v10, %v1426_v5  ;;  %v1434_v11 = vpop.f32.mrb[1].mxu0 }
 0x181   :  { %v468_v12 = vmul.f32 %v1434_v11, %v1428_v6  ;;  %v382_v13 = vpop.f32.mrb[2].mxu0 }
 0x182   :  { %v482_v14 = vmul.f32 %v467_v1, %v467_v1  ;;  %v383_v15 = vpop.f32.mrb[3].mxu0 }
 0x183   :  { %v473_v16 = vadd.f32 %v468_v12, %v467_v1  ;;  %v483_v17 = vmul.f32 %v468_v12, %v468_v12 }
 0x185   :  { %v488_v18 = vadd.f32 %v483_v17, %v482_v14 }
 0x1ab   :  { %v419_v27 = vpop.f32.mrb[0].mxu1  ;;  %v460_v9 = vpop.f32.mrb[4].mxu0 }
 0x1ac   :  { %v469_v7 = vmul.f32 %v419_v27, %v1438_v23  ;;  %v421_v28 = vpop.f32.mrb[1].mxu1  ;;  %v471_v29 = vmul.f32 %v460_v9, %v1440_v24  ;;  %v462_v31 = vpop.f32.mrb[5].mxu0 }
 0x1ad   :  { %v470_v32 = vmul.f32 %v421_v28, %v1442_v25  ;;  %v423_v33 = vpop.f32.mrb[2].mxu1  ;;  %v472_v34 = vmul.f32 %v462_v31, %v1444_v26  ;;  %v464_v35 = vpop.f32.mrb[6].mxu0 }
 0x1ae   :  { %v474_v30 = vadd.f32 %v473_v16, %v469_v7  ;;  %v484_v36 = vmul.f32 %v469_v7, %v469_v7  ;;  %v424_v37 = vpop.f32.mrb[3].mxu1  ;;  %v465_v38 = vpop.f32.mrb[7].mxu0  ;;  %v486_v45 = vmul.f32 %v471_v29, %v471_v29 }
 0x1af   :  { %v485_v39 = vmul.f32 %v470_v32, %v470_v32  ;;  %v487_v40 = vmul.f32 %v472_v34, %v472_v34  ;;  %v478_v46 = vsel %vm1734_vm10, %v472_v34, 0.0 }
 0x1b0   :  { %v489_v41 = vadd.f32 %v488_v18, %v484_v36  ;;  %v475_v43 = vadd.f32 %v474_v30, %v470_v32 }
 0x1b1   :  { %v492_v44 = vsel %vm1734_vm10, %v487_v40, 0.0  ;;  %vm591_vm10 = vcmask 220164  }
 0x1b2   :  { %v476_v47 = vadd.f32 %v475_v43, %v471_v29  ;;  %v490_v48 = vadd.f32 %v489_v41, %v485_v39  ;;  %vm592_vm12 = vmor %vm591_vm10, %vm224_vm1 }
 0x1b4   :  { %v479_v49 = vadd.f32 %v478_v46, %v476_v47  ;;  %v491_v50 = vadd.f32 %v490_v48, %v486_v45 }
 0x1b6   :  { %480 = vadd.xlane.f32.xlu0 %v479_v49  ;;  %v493_v51 = vadd.f32 %v492_v44, %v491_v50 }
 0x1b8   :  { %494 = vadd.xlane.f32.xlu1 %v493_v51 }
 0x243   :  { %v481_v42 = vpop.xlane.xlu0 %480 }
 0x244   :  { %v496_v52 = vmul.f32 0.001953125, %v481_v42 }
 0x245   :  { %v495_v53 = vpop.xlane.xlu1 %494 }
 0x246   :  { %v498_v54 = vmul.f32 %v496_v52, %v496_v52  ;;  %v497_v55 = vmul.f32 0.001953125, %v495_v53 }
 0x248   :  { %v499_v56 = vsub.f32 %v497_v55, %v498_v54 }
 0x24a   :  { %v500_v57 = vmax.f32 %v499_v56, 0.0 }
 0x24c   :  { %v502_v58 = vadd.f32 1e-05, %v500_v57 }
 0x24e   :  { %1125 = vrsqrt.f32 %v502_v58 }
 0x258   :  { %v1126_v60 = vpop.eup %1125 }
 0x259   :  { %v504_v62 = vmul.f32 %v1126_v60, %v501_v59 }
 0x25b   :  { %510 = vperm.xlu0 %1113, %v504_v62   ;;  %v506_v61 = vmul.f32 %v504_v62, %v496_v52 }
 0x25d   :  { %v507_v0 = vsub.f32 %v505_v63, %v506_v61 }
 0x25f   :  { %521 = vperm.xlu1 %1114, %v507_v0  }
 0x2da   :  { %v511_v2 = vpop.permute.xlu0 %510 }
 0x2db   :  { %v513_v3 = vmul.f32 %v511_v2, %v1430_v10  ;;  %v514_v4 = vmul.f32 %v511_v2, %v1434_v11  ;;  %v515_v1 = vmul.f32 %v511_v2, %v419_v27  ;;  %v516_v12 = vmul.f32 %v511_v2, %v421_v28 }
 0x2dc   :  { %v517_v14 = vmul.f32 %v511_v2, %v460_v9  ;;  %v518_v15 = vmul.f32 %v511_v2, %v462_v31 }
 0x2de   :  { %v522_v13 = vpop.permute.xlu1 %521 }
 0x2df   :  { %v524_v16 = vadd.f32 %v522_v13, %v513_v3  ;;  %v525_v17 = vadd.f32 %v522_v13, %v514_v4  ;;  %v526_v18 = vadd.f32 %v522_v13, %v515_v1  ;;  %v527_v19 = vadd.f32 %v522_v13, %v516_v12 }
 0x2e0   :  { %v528_v20 = vadd.f32 %v522_v13, %v517_v14  ;;  %v529_v21 = vadd.f32 %v522_v13, %v518_v15 }
 0x2e1   :  { %v530_v22 = vmax.f32 %v524_v16, 0.0  ;;  %v531_v7 = vmax.f32 %v525_v17, 0.0  ;;  %v532_v29 = vmax.f32 %v526_v18, 0.0  ;;  %v533_v32 = vmax.f32 %v527_v19, 0.0 }
 0x2e2   :  { %v534_v33 = vmax.f32 %v528_v20, 0.0  ;;  %v535_v34 = vmax.f32 %v529_v21, 0.0 }
 0x2e3   :  { %v536_v10 = vmul.f32 %v530_v22, %v1426_v5  ;;  %v537_v11 = vmul.f32 %v531_v7, %v1428_v6  ;;  %v538_v27 = vmul.f32 %v532_v29, %v1438_v23  ;;  %v539_v9 = vmul.f32 %v533_v32, %v1442_v25 }
 0x2e4   :  { %v540_v28 = vmul.f32 %v534_v33, %v1440_v24  ;;  %v541_v31 = vmul.f32 %v535_v34, %v1444_v26 }
 0x2e5   :  { %v1100_v35 = vpack.c.bf16 %v537_v11, %v536_v10  ;;  %v1101_v30 = vpack.c.bf16 %v539_v9, %v538_v27 }
 0x2e6   :  { %v1102_v36 = vpack.c.bf16 %v541_v31, %v540_v28 }
 0x2e7   :  { %567 = vrot.lane.b32.xlu1 %v1100_v35, %s1138_s3 }
 0x2eb   :  { %569 = vrot.lane.b32.xlu1 %v1101_v30, %s1138_s3 }
 0x2ef   :  { %571 = vrot.lane.b32.xlu1 %v1102_v36, %s1138_s3 }
 0x359   :  { %v568_v37 = vpop.permute.xlu1 %567 }
 0x35a   :  { %v573_v38 = vrot.slane %v568_v37, 4 }
 0x35c   :  { %v577_v39 = vsel %vm576_vm15, %v573_v38, %v568_v37 }
 0x35d   :  { %589 = vst.msk [vmem:[#allocation2] sm:$0xff] %vm588_vm11, %v577_v39  ;;  %v570_v40 = vpop.permute.xlu1 %569 }
 0x35e   :  { %v574_v41 = vrot.slane %v570_v40, 4 }
 0x360   :  { %v579_v43 = vsel %vm224_vm1, %v573_v38, %v574_v41 }
 0x361   :  { %v580_v45 = vsel %vm576_vm15, %v579_v43, %v570_v40  ;;  %v572_v46 = vpop.permute.xlu1 %571 }
 0x362   :  { %v575_v47 = vrot.slane %v572_v46, 4  ;;  %v1502_v42 = vcombine.low %v580_v45, %v580_v45  ;;  %v1520_v52 = vcombine.high %v580_v45, %v580_v45 }
 0x364   :  { %v594_v48 = vld [vmem:[#allocation2] sm:$0xff]  ;;  %v581_v44 = vsel %vm224_vm1, %v574_v41, %v575_v47 }
 0x365   :  { %v1473_v49 = vcombine.high %v594_v48, %v594_v48  ;;  %v582_v50 = vsel %vm576_vm15, %v581_v44, %v572_v46  ;;  %v1480_v51 = vcombine.low %v594_v48, %v594_v48 }
 0x366   :  { %593 = vst.msk [vmem:[#allocation2 + $0x10] sm:$0xff] %vm592_vm12, %v582_v50 }
 0x367   :  { %631 = vrot.lane.b32.xlu0 %v1473_v49, %s1130_s10  ;;  %614 = vrot.lane.b32.xlu1 %v1473_v49, %s1129_s9 }
 0x36b   :  { %648 = vrot.lane.b32.xlu0 %v1473_v49, %s1131_s11  ;;  %612 = vrot.lane.b32.xlu1 %v1480_v51, %s1129_s9 }
 0x36d   :  { %v596_v53 = vld [vmem:[#allocation2 + $0x10] sm:$0xff] }
 0x36e   :  { %v1530_v54 = vcombine.low %v596_v53, %v596_v53  ;;  %v1548_v55 = vcombine.high %v596_v53, %v596_v53 }
 0x36f   :  { %629 = vrot.lane.b32.xlu0 %v1480_v51, %s1130_s10  ;;  %646 = vrot.lane.b32.xlu1 %v1480_v51, %s1131_s11 }
 0x373   :  { %665 = vrot.lane.b32.xlu0 %v1473_v49, %s1132_s12  ;;  %680 = vrot.lane.b32.xlu1 %v1480_v51, %s1133_s13 }
 0x377   :  { %682 = vrot.lane.b32.xlu0 %v1473_v49, %s1133_s13  ;;  %714 = vrot.lane.b32.xlu1 %v1480_v51, %s1135_s15 }
 0x37b   :  { %663 = vrot.lane.b32.xlu0 %v1480_v51, %s1132_s12  ;;  %733 = vrot.lane.b32.xlu1 %v1473_v49, %s1136_s18 }
 0x37f   :  { %699 = vrot.lane.b32.xlu0 %v1473_v49, %s1134_s14  ;;  %616 = vrot.lane.b32.xlu1 %v1502_v42, %s1129_s9 }
 0x383   :  { %716 = vrot.lane.b32.xlu0 %v1473_v49, %s1135_s15  ;;  %633 = vrot.lane.b32.xlu1 %v1502_v42, %s1130_s10 }
 0x387   :  { %697 = vrot.lane.b32.xlu0 %v1480_v51, %s1134_s14  ;;  %650 = vrot.lane.b32.xlu1 %v1502_v42, %s1131_s11 }
 0x38b   :  { %731 = vrot.lane.b32.xlu0 %v1480_v51, %s1136_s18  ;;  %667 = vrot.lane.b32.xlu1 %v1502_v42, %s1132_s12 }
 0x38f   :  { %618 = vrot.lane.b32.xlu0 %v1520_v52, %s1129_s9  ;;  %684 = vrot.lane.b32.xlu1 %v1502_v42, %s1133_s13 }
 0x393   :  { %735 = vrot.lane.b32.xlu0 %v1502_v42, %s1136_s18  ;;  %701 = vrot.lane.b32.xlu1 %v1502_v42, %s1134_s14 }
 0x397   :  { %718 = vrot.lane.b32.xlu1 %v1502_v42, %s1135_s15  ;;  %637 = vrot.lane.b32.xlu0 %v1530_v54, %s1130_s10 }
 0x39b   :  { %654 = vrot.lane.b32.xlu0 %v1530_v54, %s1131_s11  ;;  %620 = vrot.lane.b32.xlu1 %v1530_v54, %s1129_s9 }
 0x39f   :  { %669 = vrot.lane.b32.xlu0 %v1520_v52, %s1132_s12  ;;  %635 = vrot.lane.b32.xlu1 %v1520_v52, %s1130_s10 }
 0x3a3   :  { %686 = vrot.lane.b32.xlu0 %v1520_v52, %s1133_s13  ;;  %652 = vrot.lane.b32.xlu1 %v1520_v52, %s1131_s11 }
 0x3a7   :  { %639 = vrot.lane.b32.xlu0 %v1548_v55, %s1130_s10  ;;  %622 = vrot.lane.b32.xlu1 %v1548_v55, %s1129_s9 }
 0x3ab   :  { %703 = vrot.lane.b32.xlu0 %v1520_v52, %s1134_s14  ;;  %671 = vrot.lane.b32.xlu1 %v1530_v54, %s1132_s12 }
 0x3af   :  { %720 = vrot.lane.b32.xlu0 %v1520_v52, %s1135_s15  ;;  %688 = vrot.lane.b32.xlu1 %v1530_v54, %s1133_s13 }
 0x3b3   :  { %673 = vrot.lane.b32.xlu0 %v1548_v55, %s1132_s12  ;;  %656 = vrot.lane.b32.xlu1 %v1548_v55, %s1131_s11 }
 0x3b7   :  { %707 = vrot.lane.b32.xlu0 %v1548_v55, %s1134_s14  ;;  %705 = vrot.lane.b32.xlu1 %v1530_v54, %s1134_s14 }
 0x3bb   :  { %737 = vrot.lane.b32.xlu0 %v1520_v52, %s1136_s18  ;;  %722 = vrot.lane.b32.xlu1 %v1530_v54, %s1135_s15 }
 0x3bf   :  { %741 = vrot.lane.b32.xlu0 %v1548_v55, %s1136_s18  ;;  %690 = vrot.lane.b32.xlu1 %v1548_v55, %s1133_s13 }
 0x3c3   :  { %724 = vrot.lane.b32.xlu1 %v1548_v55, %s1135_s15 }
 0x3c7   :  { %739 = vrot.lane.b32.xlu1 %v1530_v54, %s1136_s18 }
 0x3d9   :  { %v632_v56 = vpop.permute.xlu0 %631  ;;  %v615_v57 = vpop.permute.xlu1 %614 }
 0x3dd   :  { %v649_v58 = vpop.permute.xlu0 %648  ;;  %v613_v59 = vpop.permute.xlu1 %612 }
 0x3de   :  { %v624_v1 = vsel %vm92_vm0, %v613_v59, %v615_v57 }
 0x3df   :  { %v750_v16 = vsel %vm224_vm1, %v1480_v51, %v624_v1 }
 0x3e1   :  { %v630_v60 = vpop.permute.xlu0 %629  ;;  %v647_v62 = vpop.permute.xlu1 %646 }
 0x3e2   :  { %v641_v19 = vsel %vm110_vm2, %v630_v60, %v632_v56  ;;  %v658_v20 = vsel %vm128_vm3, %v647_v62, %v649_v58 }
 0x3e3   :  { %v774_v33 = vsel %vm224_vm1, %v641_v19, %v658_v20 }
 0x3e5   :  { %v666_v63 = vpop.permute.xlu0 %665  ;;  %v681_v61 = vpop.permute.xlu1 %680 }
 0x3e9   :  { %v683_v0 = vpop.permute.xlu0 %682  ;;  %v715_v2 = vpop.permute.xlu1 %714 }
 0x3ea   :  { %v692_v35 = vsel %vm164_vm5, %v681_v61, %v683_v0 }
 0x3ed   :  { %v664_v3 = vpop.permute.xlu0 %663  ;;  %v734_v4 = vpop.permute.xlu1 %733 }
 0x3ee   :  { %v675_v11 = vsel %vm146_vm4, %v664_v3, %v666_v63 }
 0x3ef   :  { %v798_v36 = vsel %vm224_vm1, %v675_v11, %v692_v35 }
 0x3f1   :  { %v700_v12 = vpop.permute.xlu0 %699  ;;  %v617_v13 = vpop.permute.xlu1 %616 }
 0x3f2   :  { %v625_v14 = vsel %vm92_vm0, %v615_v57, %v617_v13 }
 0x3f3   :  { %v754_v15 = vsel %vm224_vm1, %v1473_v49, %v625_v14 }
 0x3f4   :  { %866 = vmatprep.subr.bf16.mxu1 %v754_v15 }
 0x3f5   :  { %v717_v17 = vpop.permute.xlu0 %716  ;;  %867 = vmatpush1.bf16.msra.mxu1 %v750_v16  ;;  %v634_v18 = vpop.permute.xlu1 %633 }
 0x3f6   :  { %v642_v7 = vsel %vm110_vm2, %v632_v56, %v634_v18  ;;  %v726_v46 = vsel %vm200_vm7, %v715_v2, %v717_v17 }
 0x3f9   :  { %v698_v21 = vpop.permute.xlu0 %697  ;;  %v651_v22 = vpop.permute.xlu1 %650 }
 0x3fa   :  { %v659_v29 = vsel %vm128_vm3, %v649_v58, %v651_v22  ;;  %v709_v39 = vsel %vm182_vm6, %v698_v21, %v700_v12 }
 0x3fb   :  { %v778_v32 = vsel %vm224_vm1, %v642_v7, %v659_v29  ;;  %v822_v48 = vsel %vm224_vm1, %v709_v39, %v726_v46 }
 0x3fc   :  { %868 = vmatprep.subr.bf16.mxu1 %v778_v32 }
 0x3fd   :  { %v732_v34 = vpop.permute.xlu0 %731  ;;  %869 = vmatpush1.bf16.msra.mxu1 %v774_v33  ;;  %v1594_v10 = vpop.permute.xlu1 %667 }
 0x3fe   :  { %v676_v28 = vsel %vm146_vm4, %v666_v63, %v1594_v10  ;;  %v743_v44 = vsel %vm218_vm8, %v732_v34, %v734_v4  ;;  %v1631_v63 = vld [vmem:[%s1730_s5] sm:$0xf] }
 0x3ff   :  { %v849_v58 = vsel %vm224_vm1, %v743_v44, 0 }
 0x401   :  { %v619_v27 = vpop.permute.xlu0 %618  ;;  %v685_v9 = vpop.permute.xlu1 %684 }
 0x402   :  { %v693_v31 = vsel %vm164_vm5, %v683_v0, %v685_v9  ;;  %v626_v49 = vsel %vm92_vm0, %v617_v13, %v619_v27 }
 0x403   :  { %v802_v30 = vsel %vm224_vm1, %v676_v28, %v693_v31  ;;  %v758_v59 = vsel %vm224_vm1, %v1502_v42, %v626_v49 }
 0x404   :  { %870 = vmatprep.subr.bf16.mxu1 %v802_v30 }
 0x405   :  { %v1603_v37 = vpop.permute.xlu0 %735  ;;  %871 = vmatpush1.bf16.msra.mxu1 %v798_v36  ;;  %v1605_v38 = vpop.permute.xlu1 %701 }
 0x406   :  { %v710_v43 = vsel %vm182_vm6, %v700_v12, %v1605_v38  ;;  %v744_v50 = vsel %vm218_vm8, %v734_v4, %v1603_v37 }
 0x409   :  { %v638_v40 = vpop.permute.xlu0 %637  ;;  %v1608_v41 = vpop.permute.xlu1 %718 }
 0x40a   :  { %v727_v45 = vsel %vm200_vm7, %v717_v17, %v1608_v41 }
 0x40b   :  { %v826_v47 = vsel %vm224_vm1, %v710_v43, %v727_v45 }
 0x40c   :  { %872 = vmatprep.subr.bf16.mxu1 %v826_v47 }
 0x40d   :  { %v655_v51 = vpop.permute.xlu0 %654  ;;  %873 = vmatpush1.bf16.msra.mxu1 %v822_v48  ;;  %v621_v53 = vpop.permute.xlu1 %620 }
 0x40e   :  { %v627_v56 = vsel %vm92_vm0, %v619_v27, %v621_v53  ;;  %1094 = vmatprep.subr.msk.bf16.mxu1 %vm224_vm1, %v744_v50 }
 0x40f   :  { %v762_v57 = vsel %vm224_vm1, %v1520_v52, %v627_v56 }
 0x410   :  { %907 = vmatprep.subr.bf16.mxu0 %v762_v57 }
 0x411   :  { %v670_v60 = vpop.permute.xlu0 %669  ;;  %875 = vmatpush1.bf16.msra.mxu1 %v849_v58  ;;  %908 = vmatpush1.bf16.msra.mxu0 %v758_v59  ;;  %v636_v62 = vpop.permute.xlu1 %635 }
 0x412   :  { %v643_v0 = vsel %vm110_vm2, %v634_v18, %v636_v62  ;;  %v644_v42 = vsel %vm110_vm2, %v636_v62, %v638_v40  ;;  %v677_v7 = vsel %vm146_vm4, %v1594_v10, %v670_v60 }
 0x414   :  { %1095 = vmatmul.mubr.msk.bf16.vlgmr.msra.gmra.mrb[4].mxu1 %vm322_vm9, %v1631_v63 }
 0x415   :  { %v687_v61 = vpop.permute.xlu0 %686  ;;  %v653_v52 = vpop.permute.xlu1 %652  ;;  %980 = vmatprep.mubr.bf16.mxu1 %v1137_v8 }
 0x416   :  { %v660_v2 = vsel %vm128_vm3, %v651_v22, %v653_v52  ;;  %v661_v3 = vsel %vm128_vm3, %v653_v52, %v655_v51  ;;  %v694_v18 = vsel %vm164_vm5, %v685_v9, %v687_v61 }
 0x417   :  { %v786_v4 = vsel %vm224_vm1, %v644_v42, %v661_v3  ;;  %v782_v1 = vsel %vm224_vm1, %v643_v0, %v660_v2  ;;  %v806_v29 = vsel %vm224_vm1, %v677_v7, %v694_v18 }
 0x418   :  { %909 = vmatprep.subr.bf16.mxu0 %v786_v4 }
 0x419   :  { %v640_v12 = vpop.permute.xlu0 %639  ;;  %910 = vmatpush1.bf16.msra.mxu0 %v782_v1  ;;  %v623_v13 = vpop.permute.xlu1 %622 }
 0x41a   :  { %v628_v14 = vsel %vm92_vm0, %v621_v53, %v623_v13  ;;  %v770_v8 = vsel %vm224_vm1, %v1548_v55, %v623_v13  ;;  %v645_v32 = vsel %vm110_vm2, %v638_v40, %v640_v12  ;;  %vm1735_vm0 = vcmask 64512  }
 0x41b   :  { %948 = vmatprep.subr.bf16.mxu1 %v770_v8  ;;  %v766_v15 = vsel %vm224_vm1, %v1530_v54, %v628_v14  ;;  %vm1737_vm2 = vmmov %vm1735_vm0 }
 0x41c   :  { %949 = vmatpush1.bf16.msra.mxu1 %v766_v15 }
 0x41d   :  { %v704_v16 = vpop.permute.xlu0 %703  ;;  %v672_v17 = vpop.permute.xlu1 %671 }
 0x41e   :  { %v678_v21 = vsel %vm146_vm4, %v670_v60, %v672_v17  ;;  %v711_v36 = vsel %vm182_vm6, %v1605_v38, %v704_v16 }
 0x421   :  { %v721_v19 = vpop.permute.xlu0 %720  ;;  %v689_v20 = vpop.permute.xlu1 %688 }
 0x422   :  { %v695_v22 = vsel %vm164_vm5, %v687_v61, %v689_v20  ;;  %v728_v28 = vsel %vm200_vm7, %v1608_v41, %v721_v19 }
 0x423   :  { %v810_v55 = vsel %vm224_vm1, %v678_v21, %v695_v22  ;;  %v830_v40 = vsel %vm224_vm1, %v711_v36, %v728_v28 }
 0x424   :  { %911 = vmatprep.subr.bf16.mxu0 %v810_v55 }
 0x425   :  { %912 = vmatpush1.bf16.msra.mxu0 %v806_v29  ;;  %v657_v54 = vpop.permute.xlu1 %656  ;;  %v674_v33 = vpop.permute.xlu0 %673 }
 0x426   :  { %v662_v34 = vsel %vm128_vm3, %v655_v51, %v657_v54  ;;  %v794_v11 = vsel %vm224_vm1, %v640_v12, %v657_v54  ;;  %v679_v45 = vsel %vm146_vm4, %v672_v17, %v674_v33 }
 0x427   :  { %950 = vmatprep.subr.bf16.mxu1 %v794_v11  ;;  %v790_v27 = vsel %vm224_vm1, %v645_v32, %v662_v34 }
 0x428   :  { %951 = vmatpush1.bf16.msra.mxu1 %v790_v27 }
 0x429   :  { %v706_v9 = vpop.permute.xlu1 %705  ;;  %v708_v10 = vpop.permute.xlu0 %707 }
 0x42a   :  { %v712_v35 = vsel %vm182_vm6, %v704_v16, %v706_v9  ;;  %v713_v38 = vsel %vm182_vm6, %v706_v9, %v708_v10 }
 0x42d   :  { %v723_v31 = vpop.permute.xlu1 %722  ;;  %v738_v46 = vpop.permute.xlu0 %737 }
 0x42e   :  { %v729_v30 = vsel %vm200_vm7, %v721_v19, %v723_v31  ;;  %v745_v53 = vsel %vm218_vm8, %v1603_v37, %v738_v46 }
 0x42f   :  { %v834_v39 = vsel %vm224_vm1, %v712_v35, %v729_v30  ;;  %v855_v60 = vsel %vm224_vm1, %v745_v53, 0 }
 0x430   :  { %913 = vmatprep.subr.bf16.mxu0 %v834_v39 }
 0x431   :  { %914 = vmatpush1.bf16.msra.mxu0 %v830_v40  ;;  %v691_v43 = vpop.permute.xlu1 %690  ;;  %v742_v56 = vpop.permute.xlu0 %741 }
 0x432   :  { %v696_v41 = vsel %vm164_vm5, %v689_v20, %v691_v43  ;;  %v818_v47 = vsel %vm224_vm1, %v674_v33, %v691_v43 }
 0x433   :  { %952 = vmatprep.subr.bf16.mxu1 %v818_v47  ;;  %v814_v48 = vsel %vm224_vm1, %v679_v45, %v696_v41  ;;  %v1022_v47 = vld [vmem:[%s1731_s6] sm:$0xff] }
 0x434   :  { %953 = vmatpush1.bf16.msra.mxu1 %v814_v48 }
 0x435   :  { %v725_v44 = vpop.permute.xlu1 %724 }
 0x436   :  { %v730_v49 = vsel %vm200_vm7, %v723_v31, %v725_v44  ;;  %v842_v50 = vsel %vm224_vm1, %v708_v10, %v725_v44 }
 0x437   :  { %954 = vmatprep.subr.bf16.mxu1 %v842_v50  ;;  %v838_v51 = vsel %vm224_vm1, %v713_v38, %v730_v49  ;;  %v1026_v38 = vld [vmem:[%s1732_s7] sm:$0xff] }
 0x438   :  { %955 = vmatpush1.bf16.msra.mxu1 %v838_v51 }
 0x439   :  { %1098 = vmatprep.subr.msk.bf16.mxu1 %vm224_vm1, %v742_v56  ;;  %v740_v57 = vpop.permute.xlu1 %739 }
 0x43a   :  { %v746_v58 = vsel %vm218_vm8, %v738_v46, %v740_v57  ;;  %v747_v59 = vsel %vm218_vm8, %v740_v57, %v742_v56 }
 0x43b   :  { %v861_v62 = vsel %vm224_vm1, %v747_v59, 0  ;;  %1096 = vmatprep.subr.msk.bf16.mxu0 %vm224_vm1, %v746_v58  ;;  %vm1736_vm1 = vmmov %vm1735_vm0 }
 0x43c   :  { %916 = vmatpush1.bf16.msra.mxu0 %v855_v60  ;;  %957 = vmatpush1.bf16.msra.mxu1 %v861_v62 }
 0x43f   :  { %1097 = vmatmul.mubr.msk.bf16.vlgmr.msra.gmra.mrb[8].mxu0 %vm322_vm9, %v1631_v63  ;;  %1099 = vmatmul.mubr.msk.bf16.vlgmr.msra.gmra.mrb[8].mxu1 %vm322_vm9, %v1631_v63 }
 0x4e7   :  { %v900_v37 = vpop.f32.mrb[4].mxu1 }
 0x4e8   :  { %v989_v61 = vmul.f32 %v900_v37, %v1426_v5  ;;  %v902_v52 = vpop.f32.mrb[5].mxu1 }
 0x4e9   :  { %v990_v0 = vmul.f32 %v902_v52, %v1428_v6  ;;  %v904_v42 = vpop.f32.mrb[6].mxu1 }
 0x4ea   :  { %v1003_v2 = vmul.f32 %v989_v61, %v989_v61  ;;  %v905_v3 = vpop.f32.mrb[7].mxu1 }
 0x4eb   :  { %v995_v4 = vadd.f32 %v990_v0, %v989_v61  ;;  %v1004_v1 = vmul.f32 %v990_v0, %v990_v0 }
 0x4ed   :  { %v1009_v12 = vadd.f32 %v1004_v1, %v1003_v2 }
 0x512   :  { %v941_v13 = vpop.f32.mrb[8].mxu0  ;;  %v982_v14 = vpop.f32.mrb[8].mxu1 }
 0x513   :  { %v991_v8 = vmul.f32 %v941_v13, %v1438_v23  ;;  %v943_v15 = vpop.f32.mrb[9].mxu0  ;;  %v993_v16 = vmul.f32 %v982_v14, %v1440_v24  ;;  %v984_v63 = vpop.f32.mrb[9].mxu1 }
 0x514   :  { %v992_v17 = vmul.f32 %v943_v15, %v1442_v25  ;;  %v945_v18 = vpop.f32.mrb[10].mxu0  ;;  %v994_v19 = vmul.f32 %v984_v63, %v1444_v26  ;;  %v986_v20 = vpop.f32.mrb[10].mxu1 }
 0x515   :  { %v996_v21 = vadd.f32 %v995_v4, %v991_v8  ;;  %v1005_v22 = vmul.f32 %v991_v8, %v991_v8  ;;  %v946_v7 = vpop.f32.mrb[11].mxu0  ;;  %v987_v55 = vpop.f32.mrb[11].mxu1  ;;  %v1007_v34 = vmul.f32 %v993_v16, %v993_v16 }
 0x516   :  { %v1006_v29 = vmul.f32 %v992_v17, %v992_v17  ;;  %v1008_v54 = vmul.f32 %v994_v19, %v994_v19  ;;  %v999_v11 = vsel %vm1735_vm0, %v994_v19, 0.0 }
 0x517   :  { %v1010_v32 = vadd.f32 %v1009_v12, %v1005_v22  ;;  %v997_v33 = vadd.f32 %v996_v21, %v992_v17 }
 0x518   :  { %v1013_v10 = vsel %vm1736_vm1, %v1008_v54, 0.0 }
 0x519   :  { %v1011_v27 = vadd.f32 %v1010_v32, %v1006_v29  ;;  %v998_v9 = vadd.f32 %v997_v33, %v993_v16 }
 0x51b   :  { %v1012_v28 = vadd.f32 %v1011_v27, %v1007_v34  ;;  %v1000_v31 = vadd.f32 %v999_v11, %v998_v9 }
 0x51d   :  { %1001 = vadd.xlane.f32.xlu1 %v1000_v31  ;;  %v1014_v35 = vadd.f32 %v1013_v10, %v1012_v28 }
 0x51f   :  { %1015 = vadd.xlane.f32.xlu0 %v1014_v35 }
 0x5aa   :  { %v1002_v30 = vpop.xlane.xlu1 %1001 }
 0x5ab   :  { %v1017_v36 = vmul.f32 0.001953125, %v1002_v30 }
 0x5ac   :  { %v1016_v39 = vpop.xlane.xlu0 %1015 }
 0x5ad   :  { %v1019_v40 = vmul.f32 %v1017_v36, %v1017_v36  ;;  %v1018_v43 = vmul.f32 0.001953125, %v1016_v39 }
 0x5af   :  { %v1020_v45 = vsub.f32 %v1018_v43, %v1019_v40 }
 0x5b1   :  { %v1021_v46 = vmax.f32 %v1020_v45, 0.0 }
 0x5b3   :  { %v1023_v41 = vadd.f32 1e-05, %v1021_v46 }
 0x5b5   :  { %1127 = vrsqrt.f32 %v1023_v41 }
 0x5bf   :  { %v1128_v48 = vpop.eup %1127 }
 0x5c0   :  { %v1025_v44 = vmul.f32 %v1128_v48, %v1022_v47 }
 0x5c2   :  { %1031 = vperm.xlu0 %1113, %v1025_v44   ;;  %v1027_v49 = vmul.f32 %v1025_v44, %v1017_v36 }
 0x5c4   :  { %v1028_v50 = vsub.f32 %v1026_v38, %v1027_v49 }
 0x5c6   :  { %1042 = vperm.xlu1 %1114, %v1028_v50  }
 0x641   :  { %v1032_v51 = vpop.permute.xlu0 %1031 }
 0x642   :  { %v1034_v53 = vmul.f32 %v1032_v51, %v900_v37  ;;  %v1035_v56 = vmul.f32 %v1032_v51, %v902_v52  ;;  %v1036_v57 = vmul.f32 %v1032_v51, %v941_v13  ;;  %v1037_v58 = vmul.f32 %v1032_v51, %v943_v15 }
 0x643   :  { %v1038_v59 = vmul.f32 %v1032_v51, %v982_v14  ;;  %v1039_v60 = vmul.f32 %v1032_v51, %v984_v63 }
 0x645   :  { %v1043_v62 = vpop.permute.xlu1 %1042 }
 0x646   :  { %v1045_v61 = vadd.f32 %v1043_v62, %v1034_v53  ;;  %v1046_v0 = vadd.f32 %v1043_v62, %v1035_v56  ;;  %v1047_v42 = vadd.f32 %v1043_v62, %v1036_v57  ;;  %v1048_v2 = vadd.f32 %v1043_v62, %v1037_v58 }
 0x647   :  { %v1049_v3 = vadd.f32 %v1043_v62, %v1038_v59  ;;  %v1050_v4 = vadd.f32 %v1043_v62, %v1039_v60 }
 0x648   :  { %v1051_v1 = vmax.f32 %v1045_v61, 0.0  ;;  %v1052_v12 = vmax.f32 %v1046_v0, 0.0  ;;  %v1053_v8 = vmax.f32 %v1047_v42, 0.0  ;;  %v1054_v16 = vmax.f32 %v1048_v2, 0.0 }
 0x649   :  { %v1055_v17 = vmax.f32 %v1049_v3, 0.0  ;;  %v1056_v18 = vmax.f32 %v1050_v4, 0.0 }
 0x64a   :  { %v1057_v37 = vmul.f32 %v1051_v1, %v1426_v5  ;;  %v1058_v52 = vmul.f32 %v1052_v12, %v1428_v6  ;;  %v1059_v13 = vmul.f32 %v1053_v8, %v1438_v23  ;;  %v1060_v14 = vmul.f32 %v1054_v16, %v1442_v25 }
 0x64b   :  { %v1061_v15 = vmul.f32 %v1055_v17, %v1440_v24  ;;  %v1062_v63 = vmul.f32 %v1056_v18, %v1444_v26 }
 0x64c   :  { %1063 = vst [vmem:[%s1733_s8] sm:$0xff] %v1057_v37  ;;  %1064 = vst [vmem:[%s1733_s8 + $0x8] sm:$0xff] %v1058_v52 }
 0x64d   :  { %1065 = vst [vmem:[%s1733_s8 + $0x10] sm:$0xff] %v1059_v13  ;;  %1066 = vst [vmem:[%s1733_s8 + $0x18] sm:$0xff] %v1060_v14 }
 0x64e   :  { %1067 = vst [vmem:[%s1733_s8 + $0x20] sm:$0xff] %v1061_v15  ;;  %1068 = vst.msk [vmem:[%s1733_s8 + $0x28] sm:$0xff] %vm1737_vm2, %v1062_v63 }

// kernel: unet_forward.9
= control target key start
LH: loop header
LB: loop body
LE: loop exit
PB: predicated region body
PF: predicated region fallthrough
CT: control target
= control target key end

     0   :  { %s537_s29 = smov 126   ;;  %s538_s30 = smov 127   ;;  %v542_v3 = vmov 0   ;;  %vm52_vm0 = vcmask 1039360   ;;  %vm96_vm1 = vcmask 1043456   ;;  %vm58_vm2 = vcmask 1031168   ;;  %s755_s0 = inlined_call_operand.vmem [shape: bf16[8,222], index: 0, kind: input, shape index: {}]   ;;  %s756_s2 = inlined_call_operand.vmem [shape: bf16[16,72], index: 2, kind: input, shape index: {}]   ;;  %s757_s1 = inlined_call_operand.vmem [shape: f32[1,200], index: 1, kind: input, shape index: {}]   ;;  %s758_s3 = inlined_call_operand.vmem [shape: f32[16,1], index: 3, kind: input, shape index: {}]   ;;  %s759_s4 = inlined_call_operand.vmem [shape: f32[16,1], index: 4, kind: input, shape index: {}]   ;;  %s760_s5 = inlined_call_operand.vmem [shape: bf16[16,144], index: 5, kind: input, shape index: {}]   ;;  %s761_s6 = inlined_call_operand.vmem [shape: f32[16,1], index: 6, kind: input, shape index: {}]   ;;  %s762_s7 = inlined_call_operand.vmem [shape: f32[16,1], index: 7, kind: input, shape index: {}]   ;;  %s763_s8 = inlined_call_operand.vmem [shape: f32[16,200], index: 8, kind: output, shape index: {}]  }
   0x1   :  { %v42_v0 = vld [vmem:[%s755_s0] sm:$0xff]  ;;  %s539_s9 = smov 118   ;;  %s540_s10 = smov 117   ;;  %178 = vmatprep.mubr.bf16.mxu0 %v542_v3  ;;  %521 = vset.pattern.permute.xlu1 %v542_v3  ;;  %vm64_vm3 = vcmask 965632   ;;  %vm70_vm4 = vcmask 957440   ;;  %vm76_vm5 = vcmask 949248   ;;  %v32_v38 = vlaneseq }
   0x2   :  { %v503_v1 = vcombine.low %v42_v0, %v42_v0  ;;  %v504_v2 = vcombine.high %v42_v0, %v42_v0  ;;  %s541_s0 = smov 116   ;;  %522 = vset.pattern.permute.xlu0 %v542_v3  ;;  %s543_s11 = smov 108   ;;  %vm82_vm6 = vcmask 883712   ;;  %vm88_vm7 = vcmask 875520   ;;  %v525_v37 = vld [vmem:[%s756_s2] sm:$0xff]  }
   0x3   :  { %s544_s12 = smov 107   ;;  %s545_s13 = smov 106   ;;  %vm94_vm8 = vcmask 867328   ;;  %vm136_vm9 = vcmask 588800   ;;  %v33_v39 = vshrl.u32 %v32_v38, 7  ;;  %vm273_vm10 = vcmask 89088  }
   0x4   :  { %54 = vrot.lane.b32.xlu1 %v503_v1, %s537_s29  ;;  %48 = vrot.lane.b32.xlu0 %v503_v1, %s538_s30  ;;  %v30_v41 = vld [vmem:[%s757_s1] sm:$0x3]  ;;  %274 = vst.msk [vmem:[#allocation2] sm:$0xff] %vm273_vm10, %v542_v3  ;;  %vm275_vm11 = vcmask 769688   ;;  %vm289_vm12 = vcmask 1047640   ;;  %vm291_vm13 = vcmask 678912  }
   0x5   :  { %v34_v40 = vsub.s32 0, %v33_v39  ;;  %v38_v42 = vsub.s32 1, %v33_v39  ;;  %276 = vst.msk [vmem:[#allocation2 + $0x8] sm:$0xff] %vm275_vm11, %v542_v3  ;;  %vm364_vm14 = vcmask 130048  }
   0x7   :  { %v639_v43 = vrot.slane %v30_v41, %v34_v40  ;;  %v641_v44 = vrot.slane %v30_v41, %v38_v42 }
   0x8   :  { %56 = vrot.lane.b32.xlu1 %v504_v2, %s537_s29  ;;  %50 = vrot.lane.b32.xlu0 %v504_v2, %s538_s30 }
   0xc   :  { %62 = vrot.lane.b32.xlu1 %v504_v2, %s539_s9  ;;  %60 = vrot.lane.b32.xlu0 %v503_v1, %s539_s9 }
  0x10   :  { %68 = vrot.lane.b32.xlu1 %v504_v2, %s540_s10  ;;  %66 = vrot.lane.b32.xlu0 %v503_v1, %s540_s10 }
  0x14   :  { %74 = vrot.lane.b32.xlu1 %v504_v2, %s541_s0  ;;  %72 = vrot.lane.b32.xlu0 %v503_v1, %s541_s0 }
  0x18   :  { %80 = vrot.lane.b32.xlu1 %v504_v2, %s543_s11  ;;  %78 = vrot.lane.b32.xlu0 %v503_v1, %s543_s11 }
  0x1c   :  { %86 = vrot.lane.b32.xlu1 %v504_v2, %s544_s12  ;;  %84 = vrot.lane.b32.xlu0 %v503_v1, %s544_s12 }
  0x20   :  { %92 = vrot.lane.b32.xlu1 %v504_v2, %s545_s13  ;;  %90 = vrot.lane.b32.xlu0 %v503_v1, %s545_s13 }
  0x76   :  { %v55_v4 = vpop.permute.xlu1 %54  ;;  %v49_v5 = vpop.permute.xlu0 %48 }
  0x7a   :  { %v57_v6 = vpop.permute.xlu1 %56  ;;  %v51_v7 = vpop.permute.xlu0 %50 }
  0x7b   :  { %v53_v8 = vsel %vm52_vm0, %v49_v5, %v51_v7  ;;  %v103_v9 = vsel %vm96_vm1, %v504_v2, %v51_v7  ;;  %v59_v13 = vsel %vm58_vm2, %v55_v4, %v57_v6 }
  0x7c   :  { %146 = vmatprep.subr.bf16.mxu0 %v103_v9  ;;  %v99_v10 = vsel %vm96_vm1, %v503_v1, %v53_v8 }
  0x7d   :  { %147 = vmatpush1.bf16.msra.mxu0 %v99_v10 }
  0x7e   :  { %v63_v11 = vpop.permute.xlu1 %62  ;;  %v61_v12 = vpop.permute.xlu0 %60 }
  0x7f   :  { %v65_v14 = vsel %vm64_vm3, %v61_v12, %v63_v11  ;;  %v111_v15 = vsel %vm96_vm1, %v57_v6, %v63_v11 }
  0x80   :  { %148 = vmatprep.subr.bf16.mxu0 %v111_v15  ;;  %v107_v16 = vsel %vm96_vm1, %v59_v13, %v65_v14 }
  0x81   :  { %149 = vmatpush1.bf16.msra.mxu0 %v107_v16 }
  0x82   :  { %v69_v17 = vpop.permute.xlu1 %68  ;;  %v67_v18 = vpop.permute.xlu0 %66 }
  0x83   :  { %v71_v21 = vsel %vm70_vm4, %v67_v18, %v69_v17  ;;  %v223_v18 = vld [vmem:[%s758_s3] sm:$0xff] }
  0x86   :  { %v75_v19 = vpop.permute.xlu1 %74  ;;  %v73_v20 = vpop.permute.xlu0 %72 }
  0x87   :  { %v77_v22 = vsel %vm76_vm5, %v73_v20, %v75_v19  ;;  %v119_v23 = vsel %vm96_vm1, %v69_v17, %v75_v19 }
  0x88   :  { %150 = vmatprep.subr.bf16.mxu0 %v119_v23  ;;  %v115_v24 = vsel %vm96_vm1, %v71_v21, %v77_v22  ;;  %v231_v21 = vld [vmem:[%s759_s4] sm:$0xff]  ;;  %v224_v22 = vld [vmem:[%s758_s3 + $0x8] sm:$0xff]  ;;  %s546_s3 = smov 11  }
  0x89   :  { %151 = vmatpush1.bf16.msra.mxu0 %v115_v24 }
  0x8a   :  { %v81_v25 = vpop.permute.xlu1 %80  ;;  %v79_v26 = vpop.permute.xlu0 %78 }
  0x8b   :  { %v83_v29 = vsel %vm82_vm6, %v79_v26, %v81_v25 }
  0x8e   :  { %v87_v27 = vpop.permute.xlu1 %86  ;;  %v85_v28 = vpop.permute.xlu0 %84 }
  0x8f   :  { %v89_v30 = vsel %vm88_vm7, %v85_v28, %v87_v27  ;;  %v127_v31 = vsel %vm96_vm1, %v81_v25, %v87_v27  ;;  %v232_v27 = vld [vmem:[%s759_s4 + $0x8] sm:$0xff] }
  0x90   :  { %152 = vmatprep.subr.bf16.mxu0 %v127_v31  ;;  %v123_v32 = vsel %vm96_vm1, %v83_v29, %v89_v30 }
  0x91   :  { %153 = vmatpush1.bf16.msra.mxu0 %v123_v32 }
  0x92   :  { %v93_v33 = vpop.permute.xlu1 %92  ;;  %v91_v34 = vpop.permute.xlu0 %90 }
  0x93   :  { %v95_v35 = vsel %vm94_vm8, %v91_v34, %v93_v33  ;;  %506 = vmatprep.subr.msk.bf16.mxu0 %vm96_vm1, %v93_v33 }
  0x94   :  { %v141_v36 = vsel %vm96_vm1, %v95_v35, 0 }
  0x95   :  { %155 = vmatpush1.bf16.msra.mxu0 %v141_v36 }
  0x98   :  { %507 = vmatmul.mubr.msk.bf16.vlgmr.msra.gmra.mrb[0].mxu0 %vm136_vm9, %v525_v37 }
 0x16b   :  { %v643_v45 = vpop.f32.mrb[0].mxu0 }
 0x16c   :  { %v189_v46 = vmul.f32 %v643_v45, %v639_v43  ;;  %v182_v47 = vpop.f32.mrb[1].mxu0 }
 0x16d   :  { %v190_v48 = vmul.f32 %v182_v47, %v641_v44  ;;  %v648_v49 = vpop.f32.mrb[2].mxu0 }
 0x16e   :  { %v191_v50 = vmul.f32 %v648_v49, %v639_v43  ;;  %v652_v51 = vpop.f32.mrb[3].mxu0  ;;  %v201_v56 = vmul.f32 %v189_v46, %v189_v46 }
 0x16f   :  { %v202_v52 = vmul.f32 %v190_v48, %v190_v48  ;;  %v192_v53 = vmul.f32 %v652_v51, %v641_v44  ;;  %v193_v54 = vsel %vm136_vm9, %v190_v48, 0.0 }
 0x170   :  { %v194_v55 = vadd.f32 %v193_v54, %v189_v46  ;;  %v203_v62 = vmul.f32 %v191_v50, %v191_v50 }
 0x171   :  { %v204_v57 = vmul.f32 %v192_v53, %v192_v53  ;;  %v197_v58 = vsel %vm136_vm9, %v192_v53, 0.0  ;;  %v205_v59 = vsel %vm136_vm9, %v202_v52, 0.0 }
 0x172   :  { %195 = vadd.xlane.f32.xlu0 %v194_v55  ;;  %v198_v60 = vadd.f32 %v197_v58, %v191_v50  ;;  %v206_v61 = vadd.f32 %v205_v59, %v201_v56  ;;  %v528_v58 = vld [vmem:[%s760_s5 + $0x4] ss:$8 sps:$4 sm:$0xff]  }
 0x173   :  { %v209_v63 = vsel %vm136_vm9, %v204_v57, 0.0  ;;  %510 = vmatprep.mubr.msk.bf16.mxu1 %vm364_vm14, %v528_v58  ;;  %v445_v58 = vld [vmem:[%s761_s6] sm:$0xff] }
 0x174   :  { %199 = vadd.xlane.f32.xlu1 %v198_v60  ;;  %v210_v0 = vadd.f32 %v209_v63, %v203_v62 }
 0x176   :  { %207 = vadd.xlane.f32.xlu0 %v206_v61 }
 0x17a   :  { %211 = vadd.xlane.f32.xlu0 %v210_v0 }
 0x1ff   :  { %v196_v1 = vpop.xlane.xlu0 %195 }
 0x200   :  { %v213_v2 = vmul.f32 0.0078125, %v196_v1 }
 0x201   :  { %v200_v4 = vpop.xlane.xlu1 %199 }
 0x202   :  { %v217_v6 = vmul.f32 %v213_v2, %v213_v2  ;;  %v214_v7 = vmul.f32 0.0078125, %v200_v4 }
 0x203   :  { %v208_v5 = vpop.xlane.xlu0 %207 }
 0x204   :  { %v215_v8 = vmul.f32 0.0078125, %v208_v5  ;;  %v218_v11 = vmul.f32 %v214_v7, %v214_v7 }
 0x206   :  { %v219_v9 = vsub.f32 %v215_v8, %v217_v6 }
 0x207   :  { %v212_v10 = vpop.xlane.xlu0 %211 }
 0x208   :  { %v221_v12 = vmax.f32 %v219_v9, 0.0  ;;  %v216_v13 = vmul.f32 0.0078125, %v212_v10 }
 0x20a   :  { %v225_v14 = vadd.f32 1e-05, %v221_v12  ;;  %v220_v15 = vsub.f32 %v216_v13, %v218_v11 }
 0x20c   :  { %529 = vrsqrt.f32 %v225_v14  ;;  %v222_v16 = vmax.f32 %v220_v15, 0.0 }
 0x20e   :  { %v226_v17 = vadd.f32 1e-05, %v222_v16 }
 0x210   :  { %531 = vrsqrt.f32 %v226_v17 }
 0x216   :  { %v530_v19 = vpop.eup %529 }
 0x217   :  { %v229_v20 = vmul.f32 %v530_v19, %v223_v18 }
 0x219   :  { %239 = vperm.xlu1 %521, %v229_v20   ;;  %v233_v23 = vmul.f32 %v229_v20, %v213_v2  ;;  %v526_v20 = vld [vmem:[%s760_s5] ss:$8 sps:$4 sm:$0xff]  }
 0x21a   :  { %v532_v24 = vpop.eup %531 }
 0x21b   :  { %v235_v25 = vsub.f32 %v231_v21, %v233_v23  ;;  %v230_v26 = vmul.f32 %v532_v24, %v224_v22 }
 0x21d   :  { %253 = vperm.xlu1 %521, %v235_v25   ;;  %244 = vperm.xlu0 %522, %v230_v26   ;;  %v234_v28 = vmul.f32 %v230_v26, %v214_v7 }
 0x21f   :  { %v236_v29 = vsub.f32 %v232_v27, %v234_v28 }
 0x221   :  { %258 = vperm.xlu1 %521, %v236_v29  }
 0x298   :  { %v240_v30 = vpop.permute.xlu1 %239 }
 0x299   :  { %v247_v31 = vmul.f32 %v240_v30, %v643_v45  ;;  %v248_v32 = vmul.f32 %v240_v30, %v182_v47 }
 0x29c   :  { %v245_v33 = vpop.permute.xlu0 %244  ;;  %v254_v34 = vpop.permute.xlu1 %253 }
 0x29d   :  { %v261_v35 = vadd.f32 %v254_v34, %v247_v31  ;;  %v262_v36 = vadd.f32 %v254_v34, %v248_v32  ;;  %v249_v37 = vmul.f32 %v245_v33, %v648_v49  ;;  %v250_v38 = vmul.f32 %v245_v33, %v652_v51 }
 0x29f   :  { %v265_v40 = vmax.f32 %v261_v35, 0.0  ;;  %v266_v41 = vmax.f32 %v262_v36, 0.0 }
 0x2a0   :  { %v259_v39 = vpop.permute.xlu1 %258 }
 0x2a1   :  { %v263_v42 = vadd.f32 %v259_v39, %v249_v37  ;;  %v264_v46 = vadd.f32 %v259_v39, %v250_v38  ;;  %v269_v45 = vmul.f32 %v265_v40, %v639_v43  ;;  %v270_v47 = vmul.f32 %v266_v41, %v641_v44 }
 0x2a3   :  { %v267_v48 = vmax.f32 %v263_v42, 0.0  ;;  %v268_v50 = vmax.f32 %v264_v46, 0.0 }
 0x2a5   :  { %v271_v52 = vmul.f32 %v267_v48, %v639_v43  ;;  %v272_v53 = vmul.f32 %v268_v50, %v641_v44 }
 0x2a7   :  { %v277_v3 = vpack.c.bf16 %v271_v52, %v269_v45  ;;  %v278_v54 = vpack.c.bf16 %v272_v53, %v270_v47 }
 0x2a9   :  { %281 = vrot.lane.b32.xlu1 %v277_v3, %s546_s3 }
 0x2ad   :  { %283 = vrot.lane.b32.xlu1 %v278_v54, %s546_s3 }
 0x31b   :  { %v282_v49 = vpop.permute.xlu1 %281 }
 0x31c   :  { %290 = vst.msk [vmem:[#allocation2] sm:$0xff] %vm289_vm12, %v282_v49 }
 0x31f   :  { %v284_v51 = vpop.permute.xlu1 %283 }
 0x320   :  { %v286_v55 = vsel %vm273_vm10, %v282_v49, %v284_v51 }
 0x321   :  { %292 = vst.msk [vmem:[#allocation2 + $0x8] sm:$0xff] %vm291_vm13, %v286_v55 }
 0x323   :  { %v293_v56 = vld [vmem:[#allocation2] sm:$0xff] }
 0x324   :  { %311 = vrot.lane.b32.xlu0 %v293_v56, %s539_s9  ;;  %297 = vrot.lane.b32.xlu1 %v293_v56, %s538_s30 }
 0x328   :  { %318 = vrot.lane.b32.xlu0 %v293_v56, %s540_s10  ;;  %304 = vrot.lane.b32.xlu1 %v293_v56, %s537_s29  ;;  %v294_v57 = vld [vmem:[#allocation2 + $0x8] sm:$0xff] }
 0x329   :  { %368 = vmatprep.subr.bf16.mxu1 %v294_v57 }
 0x32a   :  { %369 = vmatpush1.bf16.msra.mxu1 %v293_v56 }
 0x32c   :  { %325 = vrot.lane.b32.xlu0 %v293_v56, %s541_s0  ;;  %299 = vrot.lane.b32.xlu1 %v294_v57, %s538_s30 }
 0x330   :  { %332 = vrot.lane.b32.xlu0 %v293_v56, %s543_s11  ;;  %306 = vrot.lane.b32.xlu1 %v294_v57, %s537_s29 }
 0x334   :  { %339 = vrot.lane.b32.xlu0 %v293_v56, %s544_s12  ;;  %313 = vrot.lane.b32.xlu1 %v294_v57, %s539_s9 }
 0x338   :  { %346 = vrot.lane.b32.xlu0 %v293_v56, %s545_s13  ;;  %320 = vrot.lane.b32.xlu1 %v294_v57, %s540_s10 }
 0x33c   :  { %327 = vrot.lane.b32.xlu1 %v294_v57, %s541_s0 }
 0x340   :  { %334 = vrot.lane.b32.xlu1 %v294_v57, %s543_s11 }
 0x344   :  { %341 = vrot.lane.b32.xlu1 %v294_v57, %s544_s12 }
 0x348   :  { %348 = vrot.lane.b32.xlu1 %v294_v57, %s545_s13 }
 0x396   :  { %v298_v59 = vpop.permute.xlu1 %297  ;;  %v312_v61 = vpop.permute.xlu0 %311 }
 0x39a   :  { %v305_v60 = vpop.permute.xlu1 %304  ;;  %v319_v0 = vpop.permute.xlu0 %318 }
 0x39e   :  { %v300_v62 = vpop.permute.xlu1 %299  ;;  %v326_v6 = vpop.permute.xlu0 %325 }
 0x39f   :  { %370 = vmatprep.subr.bf16.mxu1 %v300_v62  ;;  %v301_v63 = vsel %vm52_vm0, %v298_v59, %v300_v62  ;;  %v446_v62 = vld [vmem:[%s761_s6 + $0x8] sm:$0xff] }
 0x3a0   :  { %371 = vmatpush1.bf16.msra.mxu1 %v301_v63 }
 0x3a2   :  { %v307_v1 = vpop.permute.xlu1 %306  ;;  %v333_v9 = vpop.permute.xlu0 %332 }
 0x3a3   :  { %372 = vmatprep.subr.bf16.mxu1 %v307_v1  ;;  %v308_v2 = vsel %vm58_vm2, %v305_v60, %v307_v1 }
 0x3a4   :  { %373 = vmatpush1.bf16.msra.mxu1 %v308_v2 }
 0x3a6   :  { %v314_v4 = vpop.permute.xlu1 %313  ;;  %v340_v14 = vpop.permute.xlu0 %339 }
 0x3a7   :  { %374 = vmatprep.subr.bf16.mxu1 %v314_v4  ;;  %v315_v5 = vsel %vm64_vm3, %v312_v61, %v314_v4  ;;  %v453_v61 = vld [vmem:[%s762_s7] sm:$0xff]  ;;  %v454_v4 = vld [vmem:[%s762_s7 + $0x8] sm:$0xff] }
 0x3a8   :  { %375 = vmatpush1.bf16.msra.mxu1 %v315_v5 }
 0x3aa   :  { %v321_v7 = vpop.permute.xlu1 %320  ;;  %v347_v17 = vpop.permute.xlu0 %346 }
 0x3ab   :  { %376 = vmatprep.subr.bf16.mxu1 %v321_v7  ;;  %v322_v8 = vsel %vm70_vm4, %v319_v0, %v321_v7 }
 0x3ac   :  { %377 = vmatpush1.bf16.msra.mxu1 %v322_v8 }
 0x3ae   :  { %v328_v10 = vpop.permute.xlu1 %327 }
 0x3af   :  { %378 = vmatprep.subr.bf16.mxu1 %v328_v10  ;;  %v329_v11 = vsel %vm76_vm5, %v326_v6, %v328_v10 }
 0x3b0   :  { %379 = vmatpush1.bf16.msra.mxu1 %v329_v11 }
 0x3b2   :  { %v335_v12 = vpop.permute.xlu1 %334 }
 0x3b3   :  { %380 = vmatprep.subr.bf16.mxu1 %v335_v12  ;;  %v336_v13 = vsel %vm82_vm6, %v333_v9, %v335_v12 }
 0x3b4   :  { %381 = vmatpush1.bf16.msra.mxu1 %v336_v13 }
 0x3b6   :  { %v342_v15 = vpop.permute.xlu1 %341 }
 0x3b7   :  { %382 = vmatprep.subr.bf16.mxu1 %v342_v15  ;;  %v343_v16 = vsel %vm88_vm7, %v340_v14, %v342_v15 }
 0x3b8   :  { %383 = vmatpush1.bf16.msra.mxu1 %v343_v16 }
 0x3ba   :  { %v349_v18 = vpop.permute.xlu1 %348 }
 0x3bb   :  { %384 = vmatprep.subr.bf16.mxu1 %v349_v18  ;;  %v350_v19 = vsel %vm94_vm8, %v347_v17, %v349_v18 }
 0x3bc   :  { %385 = vmatpush1.bf16.msra.mxu1 %v350_v19 }
 0x3bf   :  { %401 = vmatmul.mubr.bf16.vlgmr.msra.gmra.mrb[0].mxu1 %v526_v20 }
 0x492   :  { %v402_v21 = vpop.f32.mrb[0].mxu1 }
 0x493   :  { %v411_v22 = vmul.f32 %v402_v21, %v639_v43  ;;  %v404_v23 = vpop.f32.mrb[1].mxu1 }
 0x494   :  { %v412_v24 = vmul.f32 %v404_v23, %v641_v44  ;;  %v715_v25 = vpop.f32.mrb[2].mxu1 }
 0x495   :  { %v413_v26 = vmul.f32 %v715_v25, %v639_v43  ;;  %v408_v27 = vpop.f32.mrb[3].mxu1  ;;  %v423_v32 = vmul.f32 %v411_v22, %v411_v22 }
 0x496   :  { %v424_v28 = vmul.f32 %v412_v24, %v412_v24  ;;  %v414_v29 = vmul.f32 %v408_v27, %v641_v44  ;;  %v415_v30 = vsel %vm136_vm9, %v412_v24, 0.0 }
 0x497   :  { %v416_v31 = vadd.f32 %v415_v30, %v411_v22  ;;  %v425_v38 = vmul.f32 %v413_v26, %v413_v26 }
 0x498   :  { %v426_v33 = vmul.f32 %v414_v29, %v414_v29  ;;  %v419_v34 = vsel %vm136_vm9, %v414_v29, 0.0  ;;  %v427_v35 = vsel %vm136_vm9, %v424_v28, 0.0 }
 0x499   :  { %417 = vadd.xlane.f32.xlu0 %v416_v31  ;;  %v420_v36 = vadd.f32 %v419_v34, %v413_v26  ;;  %v428_v37 = vadd.f32 %v427_v35, %v423_v32 }
 0x49a   :  { %v431_v39 = vsel %vm136_vm9, %v426_v33, 0.0 }
 0x49b   :  { %421 = vadd.xlane.f32.xlu1 %v420_v36  ;;  %v432_v40 = vadd.f32 %v431_v39, %v425_v38 }
 0x49d   :  { %429 = vadd.xlane.f32.xlu0 %v428_v37 }
 0x4a1   :  { %433 = vadd.xlane.f32.xlu0 %v432_v40 }
 0x526   :  { %v418_v41 = vpop.xlane.xlu0 %417 }
 0x527   :  { %v435_v42 = vmul.f32 0.0078125, %v418_v41 }
 0x528   :  { %v422_v46 = vpop.xlane.xlu1 %421 }
 0x529   :  { %v439_v50 = vmul.f32 %v435_v42, %v435_v42  ;;  %v436_v45 = vmul.f32 0.0078125, %v422_v46 }
 0x52a   :  { %v430_v48 = vpop.xlane.xlu0 %429 }
 0x52b   :  { %v437_v47 = vmul.f32 0.0078125, %v430_v48  ;;  %v440_v3 = vmul.f32 %v436_v45, %v436_v45 }
 0x52d   :  { %v441_v52 = vsub.f32 %v437_v47, %v439_v50 }
 0x52e   :  { %v434_v53 = vpop.xlane.xlu0 %433 }
 0x52f   :  { %v443_v54 = vmax.f32 %v441_v52, 0.0  ;;  %v438_v49 = vmul.f32 0.0078125, %v434_v53 }
 0x531   :  { %v447_v51 = vadd.f32 1e-05, %v443_v54  ;;  %v442_v55 = vsub.f32 %v438_v49, %v440_v3 }
 0x533   :  { %533 = vrsqrt.f32 %v447_v51  ;;  %v444_v56 = vmax.f32 %v442_v55, 0.0 }
 0x535   :  { %v448_v57 = vadd.f32 1e-05, %v444_v56 }
 0x537   :  { %535 = vrsqrt.f32 %v448_v57 }
 0x53d   :  { %v534_v59 = vpop.eup %533 }
 0x53e   :  { %v451_v60 = vmul.f32 %v534_v59, %v445_v58 }
 0x540   :  { %461 = vperm.xlu1 %521, %v451_v60   ;;  %v455_v63 = vmul.f32 %v451_v60, %v435_v42 }
 0x541   :  { %v536_v0 = vpop.eup %535 }
 0x542   :  { %v457_v1 = vsub.f32 %v453_v61, %v455_v63  ;;  %v452_v2 = vmul.f32 %v536_v0, %v446_v62 }
 0x544   :  { %475 = vperm.xlu1 %521, %v457_v1   ;;  %466 = vperm.xlu0 %522, %v452_v2   ;;  %v456_v5 = vmul.f32 %v452_v2, %v436_v45 }
 0x546   :  { %v458_v6 = vsub.f32 %v454_v4, %v456_v5 }
 0x548   :  { %480 = vperm.xlu1 %521, %v458_v6  }
 0x5bf   :  { %v462_v7 = vpop.permute.xlu1 %461 }
 0x5c0   :  { %v469_v8 = vmul.f32 %v462_v7, %v402_v21  ;;  %v470_v9 = vmul.f32 %v462_v7, %v404_v23 }
 0x5c3   :  { %v467_v10 = vpop.permute.xlu0 %466  ;;  %v476_v11 = vpop.permute.xlu1 %475 }
 0x5c4   :  { %v483_v12 = vadd.f32 %v476_v11, %v469_v8  ;;  %v484_v13 = vadd.f32 %v476_v11, %v470_v9  ;;  %v471_v14 = vmul.f32 %v467_v10, %v715_v25  ;;  %v472_v15 = vmul.f32 %v467_v10, %v408_v27 }
 0x5c6   :  { %v487_v16 = vmax.f32 %v483_v12, 0.0  ;;  %v488_v17 = vmax.f32 %v484_v13, 0.0 }
 0x5c7   :  { %v481_v18 = vpop.permute.xlu1 %480 }
 0x5c8   :  { %v491_v19 = vmul.f32 %v487_v16, %v639_v43  ;;  %v492_v20 = vmul.f32 %v488_v17, %v641_v44  ;;  %v485_v22 = vadd.f32 %v481_v18, %v471_v14  ;;  %v486_v24 = vadd.f32 %v481_v18, %v472_v15 }
 0x5ca   :  { %495 = vst [vmem:[%s763_s8] sm:$0xff] %v491_v19  ;;  %496 = vst.msk [vmem:[%s763_s8 + $0x8] sm:$0xff] %vm136_vm9, %v492_v20  ;;  %v489_v21 = vmax.f32 %v485_v22, 0.0  ;;  %v490_v23 = vmax.f32 %v486_v24, 0.0 }
 0x5cc   :  { %v493_v25 = vmul.f32 %v489_v21, %v639_v43  ;;  %v494_v26 = vmul.f32 %v490_v23, %v641_v44 }
 0x5ce   :  { %497 = vst [vmem:[%s763_s8 + $0x10] sm:$0xff] %v493_v25  ;;  %498 = vst.msk [vmem:[%s763_s8 + $0x18] sm:$0xff] %vm136_vm9, %v494_v26 }

// kernel: unet_forward.11
= control target key start
LH: loop header
LB: loop body
LE: loop exit
PB: predicated region body
PF: predicated region fallthrough
CT: control target
= control target key end

     0   :  { %v238_v1 = vmov 0   ;;  %vm107_vm0 = vcmask 261120   ;;  %s337_s1 = inlined_call_operand.vmem [shape: bf16[32,32], index: 1, kind: input, shape index: {}]   ;;  %s338_s0 = inlined_call_operand.vmem [shape: bf16[64,32], index: 0, kind: input, shape index: {}]   ;;  %s339_s2 = inlined_call_operand.vmem [shape: f32[64,1], index: 2, kind: input, shape index: {}]   ;;  %s340_s3 = inlined_call_operand.vmem [shape: f32[64,32], index: 3, kind: output, shape index: {}]  }
   0x1   :  { %v232_v0 = vld [vmem:[%s337_s1] sm:$0xff]   ;;  %231 = vset.pattern.permute.xlu1 %v238_v1  ;;  %230 = vset.pattern.permute.xlu0 %v238_v1  ;;  %v233_v2 = vld [vmem:[%s337_s1 + $0x8] sm:$0xff]   ;;  %v235_v4 = vld [vmem:[%s338_s0 + $0x10] sm:$0xff]  }
   0x2   :  { %213 = vmatprep.subr.bf16.mxu0 %v232_v0  ;;  %225 = vmatprep.subr.bf16.mxu1 %v232_v0  ;;  %v234_v3 = vld [vmem:[%s338_s0] sm:$0xff]   ;;  %v236_v5 = vld [vmem:[%s338_s0 + $0x8] sm:$0xff]   ;;  %v237_v6 = vld [vmem:[%s338_s0 + $0x18] sm:$0xff]  }
   0x3   :  { %214 = vmatpush3.bf16.msra.mxu0 %v232_v0  ;;  %227 = vmatpush3.bf16.msra.mxu1 %v232_v0  ;;  %v29_v7 = vld [vmem:[%s339_s2 + $0x10] sm:$0xff]  ;;  %v27_v8 = vld [vmem:[%s339_s2] sm:$0xff]  ;;  %v30_v9 = vld [vmem:[%s339_s2 + $0x18] sm:$0xff] }
   0x4   :  { %215 = vmatprep.subr.bf16.mxu0 %v233_v2  ;;  %226 = vmatprep.subr.bf16.mxu1 %v233_v2  ;;  %v28_v10 = vld [vmem:[%s339_s2 + $0x8] sm:$0xff]  ;;  %v31_v12 = vld [vmem:[%s339_s2 + $0x20] sm:$0xff]  ;;  %v34_v13 = vld [vmem:[%s339_s2 + $0x38] sm:$0xff] }
   0x5   :  { %217 = vmatprep.mubr.msk.bf16.mxu0 %vm107_vm0, %v234_v3  ;;  %221 = vmatprep.mubr.msk.bf16.mxu1 %vm107_vm0, %v235_v4  ;;  %v32_v11 = vld [vmem:[%s339_s2 + $0x28] sm:$0xff]  ;;  %v33_v14 = vld [vmem:[%s339_s2 + $0x30] sm:$0xff] }
   0x6   :  { %47 = vperm.xlu1 %231, %v29_v7   ;;  %37 = vperm.xlu0 %230, %v27_v8  }
   0x7   :  { %216 = vmatpush3.bf16.msra.mxu0 %v233_v2  ;;  %228 = vmatpush3.bf16.msra.mxu1 %v233_v2 }
   0xa   :  { %218 = vmatmul.mubr.msk.bf16.vlgmr.msra.gmra.mrb[0].mxu0 %vm107_vm0, %v236_v5  ;;  %222 = vmatmul.mubr.msk.bf16.vlgmr.msra.gmra.mrb[0].mxu1 %vm107_vm0, %v237_v6 }
   0xb   :  { %52 = vperm.xlu1 %231, %v30_v9   ;;  %42 = vperm.xlu0 %230, %v28_v10  }
   0xf   :  { %62 = vperm.xlu1 %231, %v32_v11   ;;  %57 = vperm.xlu0 %230, %v31_v12  }
  0x13   :  { %72 = vperm.xlu1 %231, %v34_v13   ;;  %67 = vperm.xlu0 %230, %v33_v14  }
  0x85   :  { %v48_v15 = vpop.permute.xlu1 %47  ;;  %v38_v16 = vpop.permute.xlu0 %37 }
  0x8a   :  { %v53_v17 = vpop.permute.xlu1 %52  ;;  %v43_v18 = vpop.permute.xlu0 %42 }
  0x8e   :  { %v63_v19 = vpop.permute.xlu1 %62  ;;  %v58_v20 = vpop.permute.xlu0 %57 }
  0x92   :  { %v73_v21 = vpop.permute.xlu1 %72  ;;  %v68_v22 = vpop.permute.xlu0 %67 }
  0xdd   :  { %v219_v23 = vpop.f32.mrb[0].mxu0  ;;  %v223_v24 = vpop.f32.mrb[0].mxu1 }
  0xde   :  { %v163_v25 = vadd.f32 %v219_v23, %v48_v15  ;;  %v179_v26 = vadd.f32 %v223_v24, %v68_v22  ;;  %v154_v27 = vpop.f32.mrb[1].mxu0  ;;  %v170_v28 = vpop.f32.mrb[1].mxu1 }
  0xdf   :  { %v155_v29 = vadd.f32 %v154_v27, %v38_v16  ;;  %v171_v30 = vadd.f32 %v170_v28, %v58_v20  ;;  %v220_v31 = vpop.f32.mrb[2].mxu0  ;;  %v224_v32 = vpop.f32.mrb[2].mxu1 }
  0xe0   :  { %187 = vst.msk [vmem:[%s340_s3 + $0x10] sm:$0xff] %vm107_vm0, %v163_v25  ;;  %191 = vst.msk [vmem:[%s340_s3 + $0x30] sm:$0xff] %vm107_vm0, %v179_v26  ;;  %v166_v33 = vadd.f32 %v220_v31, %v53_v17  ;;  %v182_v34 = vadd.f32 %v224_v32, %v73_v21  ;;  %v157_v35 = vpop.f32.mrb[3].mxu0  ;;  %v173_v36 = vpop.f32.mrb[3].mxu1 }
  0xe1   :  { %185 = vst.msk [vmem:[%s340_s3] sm:$0xff] %vm107_vm0, %v155_v29  ;;  %189 = vst.msk [vmem:[%s340_s3 + $0x20] sm:$0xff] %vm107_vm0, %v171_v30  ;;  %v158_v37 = vadd.f32 %v157_v35, %v43_v18  ;;  %v174_v38 = vadd.f32 %v173_v36, %v63_v19 }
  0xe2   :  { %188 = vst.msk [vmem:[%s340_s3 + $0x18] sm:$0xff] %vm107_vm0, %v166_v33  ;;  %192 = vst.msk [vmem:[%s340_s3 + $0x38] sm:$0xff] %vm107_vm0, %v182_v34 }
  0xe3   :  { %186 = vst.msk [vmem:[%s340_s3 + $0x8] sm:$0xff] %vm107_vm0, %v158_v37  ;;  %190 = vst.msk [vmem:[%s340_s3 + $0x28] sm:$0xff] %vm107_vm0, %v174_v38 }

// kernel: unet_forward.10
= control target key start
LH: loop header
LB: loop body
LE: loop exit
PB: predicated region body
PF: predicated region fallthrough
CT: control target
= control target key end

     0   :  { %v741_v1 = vmov 0   ;;  %s742_s29 = smov 127   ;;  %s743_s30 = smov 122   ;;  %vm91_vm0 = vcmask 130048   ;;  %vm151_vm1 = vcmask 588800   ;;  %vm284_vm2 = vcmask 56320   ;;  %s1003_s0 = inlined_call_operand.vmem [shape: bf16[16,86], index: 0, kind: input, shape index: {}]   ;;  %s1004_s2 = inlined_call_operand.vmem [shape: bf16[32,144], index: 2, kind: input, shape index: {}]   ;;  %s1005_s1 = inlined_call_operand.vmem [shape: f32[1,72], index: 1, kind: input, shape index: {}]   ;;  %s1006_s3 = inlined_call_operand.vmem [shape: f32[32,1], index: 3, kind: input, shape index: {}]   ;;  %s1007_s4 = inlined_call_operand.vmem [shape: f32[32,1], index: 4, kind: input, shape index: {}]   ;;  %s1008_s5 = inlined_call_operand.vmem [shape: bf16[32,288], index: 5, kind: input, shape index: {}]   ;;  %s1009_s6 = inlined_call_operand.vmem [shape: f32[32,1], index: 6, kind: input, shape index: {}]   ;;  %s1010_s7 = inlined_call_operand.vmem [shape: f32[32,1], index: 7, kind: input, shape index: {}]   ;;  %s1011_s8 = inlined_call_operand.vmem [shape: f32[32,72], index: 8, kind: output, shape index: {}]  }
   0x1   :  { %v710_v0 = vld [vmem:[%s1003_s0] sm:$0xff]   ;;  %98 = vmatprep.subr.bf16.mxu0 %v741_v1  ;;  %708 = vset.pattern.permute.xlu1 %v741_v1  ;;  %s744_s9 = smov 126   ;;  %s745_s0 = smov 121   ;;  %v714_v12 = vld [vmem:[%s1004_s2 + $0x14] ss:$8 sps:$4 sm:$0xff]   ;;  %vm287_vm3 = vcmask 704120  }
   0x2   :  { %709 = vset.pattern.permute.xlu0 %v741_v1  ;;  %51 = vrot.lane.b32.xlu1 %v710_v0, %s743_s30  ;;  %s746_s10 = smov 120   ;;  %s747_s11 = smov 116   ;;  %v713_v2 = vld [vmem:[%s1004_s2 + $0x4] ss:$8 sps:$4 sm:$0xff]   ;;  %v711_v11 = vld [vmem:[%s1004_s2] ss:$8 sps:$4 sm:$0xff]  }
   0x3   :  { %45 = vrot.lane.b32.xlu0 %v710_v0, %s742_s29  ;;  %99 = vmatpush1.bf16.msra.mxu0 %v710_v0  ;;  %s748_s12 = smov 115   ;;  %s749_s13 = smov 114   ;;  %v716_v13 = vld [vmem:[%s1004_s2 + $0x10] ss:$8 sps:$4 sm:$0xff]   ;;  %v835_v14 = vld [vmem:[%s1005_s1] ss:$0 sm:$0xff] }
   0x4   :  { %100 = vmatprep.subr.bf16.mxu0 %v741_v1  ;;  %648 = vmatprep.mubr.msk.bf16.mxu0 %vm91_vm0, %v713_v2  ;;  %285 = vst.msk [vmem:[#allocation2] sm:$0xff] %vm284_vm2, %v741_v1  ;;  %286 = vst.msk [vmem:[#allocation2 + $0x8] sm:$0xff] %vm284_vm2, %v741_v1  ;;  %vm300_vm4 = vcmask 646200   ;;  %vm393_vm5 = vcmask 261120  }
   0x5   :  { %288 = vst.msk [vmem:[#allocation2] sm:$0xff] %vm287_vm3, %v741_v1  ;;  %289 = vst.msk [vmem:[#allocation2 + $0x8] sm:$0xff] %vm287_vm3, %v741_v1 }
   0x6   :  { %54 = vrot.lane.b32.xlu1 %v710_v0, %s745_s0 }
   0x7   :  { %48 = vrot.lane.b32.xlu0 %v710_v0, %s744_s9 }
   0xa   :  { %60 = vrot.lane.b32.xlu1 %v710_v0, %s747_s11 }
   0xb   :  { %57 = vrot.lane.b32.xlu0 %v710_v0, %s746_s10 }
   0xe   :  { %66 = vrot.lane.b32.xlu1 %v710_v0, %s749_s13 }
   0xf   :  { %63 = vrot.lane.b32.xlu0 %v710_v0, %s748_s12 }
  0x74   :  { %v52_v5 = vpop.permute.xlu1 %51 }
  0x75   :  { %v46_v3 = vpop.permute.xlu0 %45 }
  0x76   :  { %101 = vmatpush1.bf16.msra.mxu0 %v46_v3 }
  0x77   :  { %102 = vmatprep.subr.bf16.mxu0 %v741_v1 }
  0x78   :  { %v55_v6 = vpop.permute.xlu1 %54 }
  0x79   :  { %v49_v4 = vpop.permute.xlu0 %48 }
  0x7a   :  { %103 = vmatpush1.bf16.msra.mxu0 %v49_v4 }
  0x7b   :  { %104 = vmatprep.subr.bf16.mxu0 %v741_v1 }
  0x7c   :  { %v61_v8 = vpop.permute.xlu1 %60 }
  0x7d   :  { %v58_v7 = vpop.permute.xlu0 %57 }
  0x7e   :  { %105 = vmatpush1.bf16.msra.mxu0 %v52_v5 }
  0x7f   :  { %106 = vmatprep.subr.bf16.mxu0 %v741_v1 }
  0x80   :  { %v67_v10 = vpop.permute.xlu1 %66 }
  0x81   :  { %v64_v9 = vpop.permute.xlu0 %63 }
  0x82   :  { %107 = vmatpush1.bf16.msra.mxu0 %v55_v6 }
  0x83   :  { %108 = vmatprep.subr.bf16.mxu0 %v741_v1 }
  0x86   :  { %109 = vmatpush1.bf16.msra.mxu0 %v58_v7  ;;  %v200_v7 = vld [vmem:[%s1006_s3] sm:$0xff] }
  0x87   :  { %110 = vmatprep.subr.bf16.mxu0 %v741_v1 }
  0x8a   :  { %111 = vmatpush1.bf16.msra.mxu0 %v61_v8 }
  0x8b   :  { %112 = vmatprep.subr.bf16.mxu0 %v741_v1 }
  0x8e   :  { %113 = vmatpush1.bf16.msra.mxu0 %v64_v9 }
  0x8f   :  { %114 = vmatprep.subr.bf16.mxu0 %v741_v1 }
  0x92   :  { %115 = vmatpush1.bf16.msra.mxu0 %v67_v10 }
  0x95   :  { %131 = vmatmul.mubr.bf16.vlgmr.msra.gmra.mrb[0].mxu0 %v711_v11  ;;  %v216_v11 = vld [vmem:[%s1007_s4] sm:$0xff] }
  0x96   :  { %649 = vmatprep.mubr.msk.bf16.mxu0 %vm91_vm0, %v714_v12  ;;  %v201_v12 = vld [vmem:[%s1006_s3 + $0x8] sm:$0xff] }
  0x9d   :  { %139 = vmatmul.mubr.bf16.gmra.mrb[4].mxu0 %v716_v13 }
 0x168   :  { %v837_v15 = vpop.f32.mrb[0].mxu0 }
 0x169   :  { %v147_v16 = vmul.f32 %v835_v14, %v837_v15  ;;  %v134_v17 = vpop.f32.mrb[1].mxu0 }
 0x16a   :  { %v841_v18 = vpop.f32.mrb[2].mxu0 }
 0x16b   :  { %v148_v19 = vmul.f32 %v835_v14, %v841_v18  ;;  %v137_v20 = vpop.f32.mrb[3].mxu0  ;;  %v152_v21 = vsel %vm151_vm1, %v147_v16, 0.0  ;;  %v164_v22 = vmul.f32 %v147_v16, %v147_v16 }
 0x16c   :  { %153 = vadd.xlane.f32.xlu0 %v152_v21  ;;  %v217_v20 = vld [vmem:[%s1007_s4 + $0x8] sm:$0xff] }
 0x16d   :  { %v155_v23 = vsel %vm151_vm1, %v148_v19, 0.0  ;;  %v168_v24 = vsel %vm151_vm1, %v164_v22, 0.0  ;;  %v165_v25 = vmul.f32 %v148_v19, %v148_v19 }
 0x16e   :  { %156 = vadd.xlane.f32.xlu1 %v155_v23 }
 0x16f   :  { %v171_v31 = vsel %vm151_vm1, %v165_v25, 0.0 }
 0x170   :  { %169 = vadd.xlane.f32.xlu0 %v168_v24  ;;  %v848_v26 = vpop.f32.mrb[4].mxu0  ;;  %v202_v24 = vld [vmem:[%s1006_s3 + $0x10] sm:$0xff] }
 0x171   :  { %v149_v27 = vmul.f32 %v835_v14, %v848_v26  ;;  %v142_v28 = vpop.f32.mrb[5].mxu0 }
 0x172   :  { %v852_v29 = vpop.f32.mrb[6].mxu0  ;;  %v203_v28 = vld [vmem:[%s1006_s3 + $0x18] sm:$0xff]  ;;  %s750_s3 = smov 7  }
 0x173   :  { %v150_v30 = vmul.f32 %v835_v14, %v852_v29  ;;  %v158_v32 = vsel %vm151_vm1, %v149_v27, 0.0  ;;  %v145_v33 = vpop.f32.mrb[7].mxu0  ;;  %v166_v34 = vmul.f32 %v149_v27, %v149_v27 }
 0x174   :  { %172 = vadd.xlane.f32.xlu0 %v171_v31  ;;  %159 = vadd.xlane.f32.xlu1 %v158_v32  ;;  %v218_v32 = vld [vmem:[%s1007_s4 + $0x10] sm:$0xff] }
 0x175   :  { %v174_v35 = vsel %vm151_vm1, %v166_v34, 0.0  ;;  %v161_v36 = vsel %vm151_vm1, %v150_v30, 0.0  ;;  %v167_v37 = vmul.f32 %v150_v30, %v150_v30 }
 0x177   :  { %v177_v38 = vsel %vm151_vm1, %v167_v37, 0.0 }
 0x178   :  { %175 = vadd.xlane.f32.xlu1 %v174_v35  ;;  %162 = vadd.xlane.f32.xlu0 %v161_v36  ;;  %v219_v35 = vld [vmem:[%s1007_s4 + $0x18] sm:$0xff] }
 0x17c   :  { %178 = vadd.xlane.f32.xlu0 %v177_v38 }
 0x1f9   :  { %v154_v39 = vpop.xlane.xlu0 %153 }
 0x1fa   :  { %v180_v40 = vmul.f32 0.03125, %v154_v39 }
 0x1fb   :  { %v157_v41 = vpop.xlane.xlu1 %156 }
 0x1fc   :  { %v188_v43 = vmul.f32 %v180_v40, %v180_v40  ;;  %v181_v44 = vmul.f32 0.03125, %v157_v41 }
 0x1fd   :  { %v170_v42 = vpop.xlane.xlu0 %169 }
 0x1fe   :  { %v184_v45 = vmul.f32 0.03125, %v170_v42  ;;  %v189_v49 = vmul.f32 %v181_v44, %v181_v44 }
 0x200   :  { %v192_v46 = vsub.f32 %v184_v45, %v188_v43 }
 0x201   :  { %v173_v47 = vpop.xlane.xlu0 %172  ;;  %v160_v48 = vpop.xlane.xlu1 %159 }
 0x202   :  { %v196_v50 = vmax.f32 %v192_v46, 0.0  ;;  %v185_v51 = vmul.f32 0.03125, %v173_v47  ;;  %v182_v52 = vmul.f32 0.03125, %v160_v48 }
 0x204   :  { %v204_v53 = vadd.f32 1e-05, %v196_v50  ;;  %v193_v54 = vsub.f32 %v185_v51, %v189_v49  ;;  %v190_v55 = vmul.f32 %v182_v52, %v182_v52 }
 0x205   :  { %v176_v56 = vpop.xlane.xlu1 %175  ;;  %v163_v57 = vpop.xlane.xlu0 %162 }
 0x206   :  { %725 = vrsqrt.f32 %v204_v53  ;;  %v197_v58 = vmax.f32 %v193_v54, 0.0  ;;  %v186_v59 = vmul.f32 0.03125, %v176_v56  ;;  %v183_v60 = vmul.f32 0.03125, %v163_v57 }
 0x208   :  { %v205_v61 = vadd.f32 1e-05, %v197_v58  ;;  %v194_v62 = vsub.f32 %v186_v59, %v190_v55  ;;  %v191_v2 = vmul.f32 %v183_v60, %v183_v60 }
 0x209   :  { %v179_v63 = vpop.xlane.xlu0 %178 }
 0x20a   :  { %727 = vrsqrt.f32 %v205_v61  ;;  %v198_v0 = vmax.f32 %v194_v62, 0.0  ;;  %v187_v3 = vmul.f32 0.03125, %v179_v63  ;;  %v719_v62 = vld [vmem:[%s1008_s5 + $0x4] ss:$12 sps:$4 sm:$0xff]  }
 0x20b   :  { %432 = vmatprep.mubr.bf16.mxu1 %v719_v62 }
 0x20c   :  { %v206_v4 = vadd.f32 1e-05, %v198_v0  ;;  %v195_v5 = vsub.f32 %v187_v3, %v191_v2 }
 0x20e   :  { %v199_v6 = vmax.f32 %v195_v5, 0.0  ;;  %729 = vrsqrt.f32 %v206_v4 }
 0x210   :  { %v726_v8 = vpop.eup %725  ;;  %v207_v9 = vadd.f32 1e-05, %v199_v6 }
 0x211   :  { %v212_v10 = vmul.f32 %v726_v8, %v200_v7 }
 0x212   :  { %731 = vrsqrt.f32 %v207_v9 }
 0x213   :  { %230 = vperm.xlu1 %708, %v212_v10   ;;  %v220_v13 = vmul.f32 %v212_v10, %v180_v40 }
 0x214   :  { %v728_v16 = vpop.eup %727 }
 0x215   :  { %v224_v17 = vsub.f32 %v216_v11, %v220_v13  ;;  %v213_v19 = vmul.f32 %v728_v16, %v201_v12  ;;  %v717_v16 = vld [vmem:[%s1008_s5] ss:$12 sps:$4 sm:$0xff]  }
 0x217   :  { %254 = vperm.xlu1 %708, %v224_v17   ;;  %235 = vperm.xlu0 %709, %v213_v19   ;;  %v221_v21 = vmul.f32 %v213_v19, %v181_v44  ;;  %v720_v19 = vld [vmem:[%s1008_s5 + $0x1c] ss:$12 sps:$4 sm:$0xff]  }
 0x218   :  { %v730_v23 = vpop.eup %729 }
 0x219   :  { %v225_v22 = vsub.f32 %v217_v20, %v221_v21  ;;  %v214_v25 = vmul.f32 %v730_v23, %v202_v24  ;;  %v722_v21 = vld [vmem:[%s1008_s5 + $0x18] ss:$12 sps:$4 sm:$0xff]   ;;  %v724_v23 = vld [vmem:[%s1008_s5 + $0x20] ss:$12 sps:$4 sm:$0xff]  }
 0x21b   :  { %259 = vperm.xlu1 %708, %v225_v22   ;;  %v222_v31 = vmul.f32 %v214_v25, %v182_v52  ;;  %v723_v22 = vld [vmem:[%s1008_s5 + $0x8] ss:$12 sps:$4 sm:$0xff]  }
 0x21c   :  { %v732_v27 = vpop.eup %731 }
 0x21d   :  { %v215_v30 = vmul.f32 %v732_v27, %v203_v28  ;;  %v226_v33 = vsub.f32 %v218_v32, %v222_v31 }
 0x21f   :  { %240 = vperm.xlu1 %708, %v214_v25   ;;  %v223_v34 = vmul.f32 %v215_v30, %v183_v60 }
 0x221   :  { %v227_v36 = vsub.f32 %v219_v35, %v223_v34 }
 0x223   :  { %245 = vperm.xlu1 %708, %v215_v30  }
 0x227   :  { %264 = vperm.xlu1 %708, %v226_v33  }
 0x22b   :  { %269 = vperm.xlu1 %708, %v227_v36  }
 0x292   :  { %v231_v37 = vpop.permute.xlu1 %230 }
 0x293   :  { %v248_v38 = vmul.f32 %v231_v37, %v837_v15 }
 0x296   :  { %v255_v39 = vpop.permute.xlu1 %254  ;;  %v236_v40 = vpop.permute.xlu0 %235 }
 0x297   :  { %v272_v41 = vadd.f32 %v255_v39, %v248_v38  ;;  %v249_v42 = vmul.f32 %v236_v40, %v841_v18 }
 0x299   :  { %v276_v44 = vmax.f32 %v272_v41, 0.0 }
 0x29a   :  { %v260_v43 = vpop.permute.xlu1 %259 }
 0x29b   :  { %v273_v45 = vadd.f32 %v260_v43, %v249_v42  ;;  %v280_v48 = vmul.f32 %v835_v14, %v276_v44 }
 0x29d   :  { %v277_v46 = vmax.f32 %v273_v45, 0.0 }
 0x29e   :  { %v241_v47 = vpop.permute.xlu1 %240 }
 0x29f   :  { %v281_v49 = vmul.f32 %v835_v14, %v277_v46  ;;  %v250_v1 = vmul.f32 %v241_v47, %v848_v26 }
 0x2a1   :  { %v290_v50 = vpack.c.bf16 %v281_v49, %v280_v48 }
 0x2a2   :  { %v246_v51 = vpop.permute.xlu1 %245 }
 0x2a3   :  { %294 = vrot.lane.b32.xlu1 %v290_v50, %s750_s3  ;;  %v251_v53 = vmul.f32 %v246_v51, %v852_v29 }
 0x2a6   :  { %v265_v15 = vpop.permute.xlu1 %264 }
 0x2a7   :  { %v274_v52 = vadd.f32 %v265_v15, %v250_v1 }
 0x2a9   :  { %v278_v54 = vmax.f32 %v274_v52, 0.0 }
 0x2aa   :  { %v270_v18 = vpop.permute.xlu1 %269 }
 0x2ab   :  { %v275_v55 = vadd.f32 %v270_v18, %v251_v53  ;;  %v282_v57 = vmul.f32 %v835_v14, %v278_v54 }
 0x2ad   :  { %v279_v56 = vmax.f32 %v275_v55, 0.0 }
 0x2af   :  { %v283_v58 = vmul.f32 %v835_v14, %v279_v56 }
 0x2b1   :  { %v291_v59 = vpack.c.bf16 %v283_v58, %v282_v57 }
 0x2b3   :  { %296 = vrot.lane.b32.xlu1 %v291_v59, %s750_s3 }
 0x315   :  { %v295_v60 = vpop.permute.xlu1 %294 }
 0x316   :  { %301 = vst.msk [vmem:[#allocation2] sm:$0xff] %vm300_vm4, %v295_v60 }
 0x31d   :  { %v303_v61 = vld [vmem:[#allocation2] sm:$0xff] }
 0x31e   :  { %325 = vrot.lane.b32.xlu0 %v303_v61, %s745_s0 }
 0x322   :  { %331 = vrot.lane.b32.xlu0 %v303_v61, %s746_s10 }
 0x325   :  { %v297_v26 = vpop.permute.xlu1 %296 }
 0x326   :  { %302 = vst.msk [vmem:[#allocation2 + $0x8] sm:$0xff] %vm300_vm4, %v297_v26 }
 0x32d   :  { %v304_v29 = vld [vmem:[#allocation2 + $0x8] sm:$0xff] }
 0x32e   :  { %333 = vrot.lane.b32.xlu0 %v304_v29, %s746_s10  ;;  %327 = vrot.lane.b32.xlu1 %v304_v29, %s745_s0 }
 0x332   :  { %337 = vrot.lane.b32.xlu0 %v303_v61, %s747_s11  ;;  %307 = vrot.lane.b32.xlu1 %v303_v61, %s742_s29 }
 0x336   :  { %339 = vrot.lane.b32.xlu0 %v304_v29, %s747_s11  ;;  %309 = vrot.lane.b32.xlu1 %v304_v29, %s742_s29 }
 0x33a   :  { %343 = vrot.lane.b32.xlu0 %v303_v61, %s748_s12  ;;  %313 = vrot.lane.b32.xlu1 %v303_v61, %s744_s9 }
 0x33e   :  { %345 = vrot.lane.b32.xlu0 %v304_v29, %s748_s12  ;;  %315 = vrot.lane.b32.xlu1 %v304_v29, %s744_s9 }
 0x342   :  { %349 = vrot.lane.b32.xlu0 %v303_v61, %s749_s13  ;;  %319 = vrot.lane.b32.xlu1 %v303_v61, %s743_s30 }
 0x346   :  { %321 = vrot.lane.b32.xlu1 %v304_v29, %s743_s30 }
 0x34a   :  { %351 = vrot.lane.b32.xlu1 %v304_v29, %s749_s13 }
 0x390   :  { %v326_v63 = vpop.permute.xlu0 %325 }
 0x391   :  { %658 = vmatprep.subr.bf16.mxu1 %v326_v63 }
 0x392   :  { %659 = vmatpush3.bf16.msra.mxu1 %v303_v61 }
 0x394   :  { %v332_v0 = vpop.permute.xlu0 %331 }
 0x3a0   :  { %v334_v2 = vpop.permute.xlu0 %333  ;;  %v328_v3 = vpop.permute.xlu1 %327 }
 0x3a1   :  { %660 = vmatprep.subr.bf16.mxu1 %v328_v3 }
 0x3a2   :  { %661 = vmatpush3.bf16.msra.mxu1 %v304_v29 }
 0x3a3   :  { %662 = vmatprep.subr.bf16.mxu1 %v332_v0 }
 0x3a4   :  { %v338_v4 = vpop.permute.xlu0 %337  ;;  %v308_v5 = vpop.permute.xlu1 %307 }
 0x3a6   :  { %663 = vmatpush3.bf16.msra.mxu1 %v308_v5 }
 0x3a7   :  { %664 = vmatprep.subr.bf16.mxu1 %v334_v2 }
 0x3a8   :  { %v340_v6 = vpop.permute.xlu0 %339  ;;  %v310_v7 = vpop.permute.xlu1 %309 }
 0x3aa   :  { %665 = vmatpush3.bf16.msra.mxu1 %v310_v7 }
 0x3ab   :  { %666 = vmatprep.subr.bf16.mxu1 %v338_v4 }
 0x3ac   :  { %v314_v8 = vpop.permute.xlu1 %313  ;;  %v344_v9 = vpop.permute.xlu0 %343 }
 0x3ae   :  { %667 = vmatpush3.bf16.msra.mxu1 %v314_v8 }
 0x3af   :  { %668 = vmatprep.subr.bf16.mxu1 %v340_v6 }
 0x3b0   :  { %v316_v10 = vpop.permute.xlu1 %315  ;;  %v346_v11 = vpop.permute.xlu0 %345 }
 0x3b2   :  { %669 = vmatpush3.bf16.msra.mxu1 %v316_v10 }
 0x3b3   :  { %670 = vmatprep.subr.bf16.mxu1 %v344_v9 }
 0x3b4   :  { %v320_v12 = vpop.permute.xlu1 %319  ;;  %v350_v17 = vpop.permute.xlu0 %349 }
 0x3b6   :  { %671 = vmatpush3.bf16.msra.mxu1 %v320_v12 }
 0x3b7   :  { %672 = vmatprep.subr.bf16.mxu1 %v346_v11 }
 0x3b8   :  { %v322_v13 = vpop.permute.xlu1 %321 }
 0x3ba   :  { %673 = vmatpush3.bf16.msra.mxu1 %v322_v13 }
 0x3bb   :  { %690 = vmatprep.subr.bf16.mxu1 %v350_v17 }
 0x3bc   :  { %v352_v20 = vpop.permute.xlu1 %351 }
 0x3bd   :  { %433 = vmatmul.mubr.bf16.vlgmr.msra.gmra.mrb[0].mxu1 %v717_v16 }
 0x3be   :  { %691 = vmatpush3.bf16.msra.mxu1 %v350_v17  ;;  %440 = vmatprep.mubr.bf16.mxu1 %v720_v19 }
 0x3bf   :  { %692 = vmatprep.subr.bf16.mxu1 %v352_v20 }
 0x3c2   :  { %693 = vmatpush3.bf16.msra.mxu1 %v352_v20 }
 0x3c5   :  { %441 = vmatmul.mubr.bf16.gmra.mrb[4].mxu1 %v722_v21 }
 0x3c6   :  { %694 = vmatprep.mubr.msk.bf16.mxu1 %vm393_vm5, %v723_v22 }
 0x3cd   :  { %695 = vmatmul.mubr.msk.bf16.vlgmr.msra.gmra.mrb[8].mxu1 %vm393_vm5, %v724_v23 }
 0x490   :  { %v674_v24 = vpop.f32.mrb[0].mxu1 }
 0x491   :  { %v675_v25 = vpop.f32.mrb[1].mxu1 }
 0x492   :  { %v676_v27 = vadd.f32 %v675_v25, %v674_v24  ;;  %v677_v28 = vpop.f32.mrb[2].mxu1 }
 0x493   :  { %v678_v30 = vpop.f32.mrb[3].mxu1 }
 0x494   :  { %v679_v31 = vadd.f32 %v678_v30, %v677_v28 }
 0x498   :  { %v680_v32 = vpop.f32.mrb[4].mxu1 }
 0x499   :  { %v681_v33 = vpop.f32.mrb[5].mxu1 }
 0x49a   :  { %v682_v34 = vadd.f32 %v681_v33, %v680_v32  ;;  %v683_v35 = vpop.f32.mrb[6].mxu1  ;;  %v552_v33 = vld [vmem:[%s1009_s6 + $0x10] sm:$0xff] }
 0x49b   :  { %v684_v36 = vpop.f32.mrb[7].mxu1 }
 0x49c   :  { %v685_v37 = vadd.f32 %v684_v36, %v683_v35  ;;  %v551_v35 = vld [vmem:[%s1009_s6 + $0x8] sm:$0xff] }
 0x4a0   :  { %v696_v38 = vpop.f32.mrb[8].mxu1 }
 0x4a1   :  { %v931_v39 = vadd.f32 %v696_v38, %v682_v34  ;;  %v483_v40 = vpop.f32.mrb[9].mxu1 }
 0x4a2   :  { %v933_v41 = vadd.f32 %v676_v27, %v483_v40  ;;  %v697_v42 = vpop.f32.mrb[10].mxu1 }
 0x4a3   :  { %v935_v43 = vadd.f32 %v697_v42, %v685_v37  ;;  %v486_v44 = vpop.f32.mrb[11].mxu1  ;;  %v500_v45 = vmul.f32 %v835_v14, %v931_v39 }
 0x4a4   :  { %v939_v46 = vadd.f32 %v679_v31, %v486_v44  ;;  %v498_v47 = vmul.f32 %v835_v14, %v933_v41  ;;  %v550_v31 = vld [vmem:[%s1009_s6] sm:$0xff] }
 0x4a5   :  { %v508_v48 = vsel %vm151_vm1, %v500_v45, 0.0  ;;  %v501_v15 = vmul.f32 %v835_v14, %v935_v43  ;;  %v516_v53 = vmul.f32 %v500_v45, %v500_v45  ;;  %v566_v44 = vld [vmem:[%s1010_s7] sm:$0xff] }
 0x4a6   :  { %509 = vadd.xlane.f32.xlu0 %v508_v48  ;;  %v499_v49 = vmul.f32 %v835_v14, %v939_v46  ;;  %v514_v51 = vmul.f32 %v498_v47, %v498_v47  ;;  %v502_v1 = vsel %vm151_vm1, %v498_v47, 0.0  ;;  %v553_v48 = vld [vmem:[%s1009_s6 + $0x18] sm:$0xff] }
 0x4a7   :  { %v511_v18 = vsel %vm151_vm1, %v501_v15, 0.0  ;;  %v524_v55 = vsel %vm151_vm1, %v516_v53, 0.0  ;;  %v517_v57 = vmul.f32 %v501_v15, %v501_v15 }
 0x4a8   :  { %v505_v50 = vsel %vm151_vm1, %v499_v49, 0.0  ;;  %v518_v52 = vsel %vm151_vm1, %v514_v51, 0.0  ;;  %v515_v54 = vmul.f32 %v499_v49, %v499_v49 }
 0x4a9   :  { %506 = vadd.xlane.f32.xlu1 %v505_v50  ;;  %v527_v58 = vsel %vm151_vm1, %v517_v57, 0.0  ;;  %v568_v50 = vld [vmem:[%s1010_s7 + $0x10] sm:$0xff] }
 0x4aa   :  { %503 = vadd.xlane.f32.xlu0 %v502_v1  ;;  %v521_v56 = vsel %vm151_vm1, %v515_v54, 0.0  ;;  %v569_v54 = vld [vmem:[%s1010_s7 + $0x18] sm:$0xff] }
 0x4ad   :  { %519 = vadd.xlane.f32.xlu1 %v518_v52  ;;  %v567_v52 = vld [vmem:[%s1010_s7 + $0x8] sm:$0xff] }
 0x4ae   :  { %512 = vadd.xlane.f32.xlu0 %v511_v18 }
 0x4b1   :  { %525 = vadd.xlane.f32.xlu1 %v524_v55 }
 0x4b2   :  { %522 = vadd.xlane.f32.xlu0 %v521_v56 }
 0x4b6   :  { %528 = vadd.xlane.f32.xlu0 %v527_v58 }
 0x533   :  { %v510_v59 = vpop.xlane.xlu0 %509 }
 0x534   :  { %v532_v63 = vmul.f32 0.03125, %v510_v59 }
 0x536   :  { %v507_v60 = vpop.xlane.xlu1 %506  ;;  %v540_v6 = vmul.f32 %v532_v63, %v532_v63 }
 0x537   :  { %v504_v61 = vpop.xlane.xlu0 %503  ;;  %v531_v3 = vmul.f32 0.03125, %v507_v60 }
 0x538   :  { %v530_v26 = vmul.f32 0.03125, %v504_v61 }
 0x539   :  { %v539_v10 = vmul.f32 %v531_v3, %v531_v3 }
 0x53a   :  { %v538_v29 = vmul.f32 %v530_v26, %v530_v26  ;;  %v520_v62 = vpop.xlane.xlu1 %519 }
 0x53b   :  { %v534_v0 = vmul.f32 0.03125, %v520_v62  ;;  %v513_v2 = vpop.xlane.xlu0 %512 }
 0x53c   :  { %v533_v11 = vmul.f32 0.03125, %v513_v2 }
 0x53d   :  { %v542_v4 = vsub.f32 %v534_v0, %v538_v29 }
 0x53e   :  { %v526_v5 = vpop.xlane.xlu1 %525  ;;  %v541_v21 = vmul.f32 %v533_v11, %v533_v11 }
 0x53f   :  { %v546_v7 = vmax.f32 %v542_v4, 0.0  ;;  %v536_v8 = vmul.f32 0.03125, %v526_v5  ;;  %v523_v9 = vpop.xlane.xlu0 %522 }
 0x540   :  { %v535_v12 = vmul.f32 0.03125, %v523_v9 }
 0x541   :  { %v554_v13 = vadd.f32 1e-05, %v546_v7  ;;  %v544_v16 = vsub.f32 %v536_v8, %v540_v6 }
 0x542   :  { %v543_v17 = vsub.f32 %v535_v12, %v539_v10 }
 0x543   :  { %733 = vrsqrt.f32 %v554_v13  ;;  %v548_v19 = vmax.f32 %v544_v16, 0.0  ;;  %v529_v20 = vpop.xlane.xlu0 %528 }
 0x544   :  { %v547_v22 = vmax.f32 %v543_v17, 0.0  ;;  %v537_v23 = vmul.f32 0.03125, %v529_v20 }
 0x545   :  { %v556_v24 = vadd.f32 1e-05, %v548_v19 }
 0x546   :  { %v555_v25 = vadd.f32 1e-05, %v547_v22  ;;  %v545_v27 = vsub.f32 %v537_v23, %v541_v21 }
 0x547   :  { %735 = vrsqrt.f32 %v556_v24 }
 0x548   :  { %737 = vrsqrt.f32 %v555_v25  ;;  %v549_v28 = vmax.f32 %v545_v27, 0.0 }
 0x54a   :  { %v557_v30 = vadd.f32 1e-05, %v549_v28 }
 0x54c   :  { %739 = vrsqrt.f32 %v557_v30 }
 0x54d   :  { %v734_v32 = vpop.eup %733 }
 0x54e   :  { %v562_v34 = vmul.f32 %v734_v32, %v550_v31 }
 0x550   :  { %v570_v42 = vmul.f32 %v562_v34, %v530_v26 }
 0x551   :  { %v736_v36 = vpop.eup %735 }
 0x552   :  { %v738_v37 = vpop.eup %737  ;;  %v564_v38 = vmul.f32 %v736_v36, %v552_v33  ;;  %v574_v47 = vsub.f32 %v566_v44, %v570_v42 }
 0x553   :  { %v563_v40 = vmul.f32 %v738_v37, %v551_v35 }
 0x554   :  { %590 = vperm.xlu1 %708, %v564_v38   ;;  %v572_v49 = vmul.f32 %v564_v38, %v532_v63 }
 0x555   :  { %585 = vperm.xlu0 %709, %v563_v40   ;;  %v571_v1 = vmul.f32 %v563_v40, %v531_v3 }
 0x556   :  { %v740_v45 = vpop.eup %739  ;;  %v576_v15 = vsub.f32 %v568_v50, %v572_v49 }
 0x557   :  { %v565_v51 = vmul.f32 %v740_v45, %v553_v48  ;;  %v575_v53 = vsub.f32 %v567_v52, %v571_v1 }
 0x558   :  { %580 = vperm.xlu1 %708, %v562_v34  }
 0x559   :  { %604 = vperm.xlu0 %709, %v574_v47   ;;  %v573_v18 = vmul.f32 %v565_v51, %v533_v11 }
 0x55b   :  { %v577_v55 = vsub.f32 %v569_v54, %v573_v18 }
 0x55c   :  { %595 = vperm.xlu1 %708, %v565_v51  }
 0x55d   :  { %614 = vperm.xlu0 %709, %v576_v15  }
 0x560   :  { %609 = vperm.xlu1 %708, %v575_v53  }
 0x564   :  { %619 = vperm.xlu1 %708, %v577_v55  }
 0x5d3   :  { %v591_v56 = vpop.permute.xlu1 %590 }
 0x5d4   :  { %v586_v57 = vpop.permute.xlu0 %585  ;;  %v600_v26 = vmul.f32 %v591_v56, %v931_v39 }
 0x5d5   :  { %v599_v2 = vmul.f32 %v586_v57, %v939_v46 }
 0x5d7   :  { %v581_v58 = vpop.permute.xlu1 %580 }
 0x5d8   :  { %v598_v59 = vmul.f32 %v581_v58, %v933_v41  ;;  %v605_v60 = vpop.permute.xlu0 %604 }
 0x5da   :  { %v622_v61 = vadd.f32 %v605_v60, %v598_v59 }
 0x5db   :  { %v596_v29 = vpop.permute.xlu1 %595 }
 0x5dc   :  { %v626_v62 = vmax.f32 %v622_v61, 0.0  ;;  %v615_v63 = vpop.permute.xlu0 %614  ;;  %v601_v39 = vmul.f32 %v596_v29, %v935_v43 }
 0x5dd   :  { %v624_v0 = vadd.f32 %v615_v63, %v600_v26 }
 0x5de   :  { %v630_v3 = vmul.f32 %v835_v14, %v626_v62 }
 0x5df   :  { %v628_v4 = vmax.f32 %v624_v0, 0.0  ;;  %v610_v5 = vpop.permute.xlu1 %609 }
 0x5e0   :  { %634 = vst.msk [vmem:[%s1011_s8] sm:$0xff] %vm151_vm1, %v630_v3  ;;  %v623_v41 = vadd.f32 %v610_v5, %v599_v2 }
 0x5e1   :  { %v632_v6 = vmul.f32 %v835_v14, %v628_v4 }
 0x5e2   :  { %v627_v7 = vmax.f32 %v623_v41, 0.0 }
 0x5e3   :  { %636 = vst.msk [vmem:[%s1011_s8 + $0x10] sm:$0xff] %vm151_vm1, %v632_v6  ;;  %v620_v46 = vpop.permute.xlu1 %619 }
 0x5e4   :  { %v631_v8 = vmul.f32 %v835_v14, %v627_v7  ;;  %v625_v9 = vadd.f32 %v620_v46, %v601_v39 }
 0x5e6   :  { %635 = vst.msk [vmem:[%s1011_s8 + $0x8] sm:$0xff] %vm151_vm1, %v631_v8  ;;  %v629_v10 = vmax.f32 %v625_v9, 0.0 }
 0x5e8   :  { %v633_v11 = vmul.f32 %v835_v14, %v629_v10 }
 0x5ea   :  { %637 = vst.msk [vmem:[%s1011_s8 + $0x18] sm:$0xff] %vm151_vm1, %v633_v11 }

// kernel: unet_forward.13
= control target key start
LH: loop header
LB: loop body
LE: loop exit
PB: predicated region body
PF: predicated region fallthrough
CT: control target
= control target key end

     0   :  { %vm61_vm0 = vcmask 130048   ;;  %v145_v1 = vmov 0   ;;  %s201_s1 = inlined_call_operand.vmem [shape: bf16[16,128], index: 1, kind: input, shape index: {}]   ;;  %s202_s0 = inlined_call_operand.vmem [shape: bf16[32,16], index: 0, kind: input, shape index: {}]   ;;  %s203_s2 = inlined_call_operand.vmem [shape: f32[32,1], index: 2, kind: input, shape index: {}]   ;;  %s204_s3 = inlined_call_operand.vmem [shape: f32[32,128], index: 3, kind: output, shape index: {}]  }
   0x1   :  { %v142_v0 = vld [vmem:[%s201_s1] sm:$0xff]   ;;  %141 = vset.pattern.permute.xlu1 %v145_v1  ;;  %140 = vset.pattern.permute.xlu0 %v145_v1  ;;  %v144_v3 = vld [vmem:[%s202_s0 + $0x8] sm:$0xff]   ;;  %v23_v4 = vld [vmem:[%s203_s2 + $0x10] sm:$0xff] }
   0x2   :  { %v143_v2 = vld [vmem:[%s202_s0] sm:$0xff]   ;;  %133 = vmatprep.subr.bf16.mxu0 %v142_v0  ;;  %37 = vperm.xlu1 %141, %v23_v4   ;;  %v24_v6 = vld [vmem:[%s203_s2 + $0x18] sm:$0xff]  ;;  %v22_v7 = vld [vmem:[%s203_s2 + $0x8] sm:$0xff] }
   0x3   :  { %134 = vmatpush3.bf16.msra.mxu0 %v142_v0  ;;  %135 = vmatprep.mubr.msk.bf16.mxu0 %vm61_vm0, %v143_v2  ;;  %v21_v5 = vld [vmem:[%s203_s2] sm:$0xff] }
   0x4   :  { %27 = vperm.xlu0 %140, %v21_v5  }
   0x6   :  { %136 = vmatmul.mubr.msk.bf16.vlgmr.msra.gmra.mrb[0].mxu0 %vm61_vm0, %v144_v3  ;;  %42 = vperm.xlu1 %141, %v24_v6  }
   0x8   :  { %32 = vperm.xlu0 %140, %v22_v7  }
  0x81   :  { %v38_v8 = vpop.permute.xlu1 %37 }
  0x83   :  { %v28_v9 = vpop.permute.xlu0 %27 }
  0x85   :  { %v43_v13 = vpop.permute.xlu1 %42 }
  0x87   :  { %v33_v16 = vpop.permute.xlu0 %32 }
  0xd9   :  { %v137_v10 = vpop.f32.mrb[0].mxu0 }
  0xda   :  { %v111_v11 = vadd.f32 %v137_v10, %v38_v8  ;;  %v102_v12 = vpop.f32.mrb[1].mxu0 }
  0xdb   :  { %v103_v14 = vadd.f32 %v102_v12, %v28_v9  ;;  %v138_v15 = vpop.f32.mrb[2].mxu0 }
  0xdc   :  { %119 = vst [vmem:[%s204_s3 + $0x10] sm:$0xff] %v111_v11  ;;  %v114_v17 = vadd.f32 %v138_v15, %v43_v13  ;;  %v105_v18 = vpop.f32.mrb[3].mxu0 }
  0xdd   :  { %117 = vst [vmem:[%s204_s3] sm:$0xff] %v103_v14  ;;  %v106_v19 = vadd.f32 %v105_v18, %v33_v16 }
  0xde   :  { %120 = vst [vmem:[%s204_s3 + $0x18] sm:$0xff] %v114_v17 }
  0xdf   :  { %118 = vst [vmem:[%s204_s3 + $0x8] sm:$0xff] %v106_v19 }

// kernel: unet_forward.12
= control target key start
LH: loop header
LB: loop body
LE: loop exit
PB: predicated region body
PF: predicated region fallthrough
CT: control target
= control target key end

     0   :  { %s658_s9 = smov 127   ;;  %s659_s14 = smov 126   ;;  %v665_v5 = vmov 0   ;;  %vm74_vm0 = vcmask 1039360   ;;  %vm89_vm1 = vcmask 1031168   ;;  %vm104_vm2 = vcmask 965632   ;;  %s908_s0 = inlined_call_operand.vmem [shape: bf16[32,222], index: 0, kind: input, shape index: {}]   ;;  %s909_s2 = inlined_call_operand.vmem [shape: bf16[16,288], index: 2, kind: input, shape index: {}]   ;;  %s910_s1 = inlined_call_operand.vmem [shape: f32[1,200], index: 1, kind: input, shape index: {}]   ;;  %s911_s3 = inlined_call_operand.vmem [shape: f32[16,1], index: 3, kind: input, shape index: {}]   ;;  %s912_s4 = inlined_call_operand.vmem [shape: f32[16,1], index: 4, kind: input, shape index: {}]   ;;  %s913_s5 = inlined_call_operand.vmem [shape: bf16[16,144], index: 5, kind: input, shape index: {}]   ;;  %s914_s6 = inlined_call_operand.vmem [shape: f32[16,1], index: 6, kind: input, shape index: {}]   ;;  %s915_s7 = inlined_call_operand.vmem [shape: f32[16,1], index: 7, kind: input, shape index: {}]   ;;  %s916_s8 = inlined_call_operand.vmem [shape: f32[16,200], index: 8, kind: output, shape index: {}]  }
   0x1   :  { %v637_v0 = vld [vmem:[%s908_s0 + $0x10] ss:$8 sps:$4 sm:$0xff]   ;;  %v639_v1 = vld [vmem:[%s908_s0] ss:$8 sps:$4 sm:$0xff]   ;;  %v641_v2 = vld [vmem:[%s908_s0 + $0x14] ss:$8 sps:$4 sm:$0xff]   ;;  %284 = vmatprep.mubr.bf16.mxu1 %v665_v5  ;;  %635 = vset.pattern.permute.xlu1 %v665_v5  ;;  %v32_v56 = vlaneseq }
   0x2   :  { %70 = vrot.lane.b32.xlu1 %v637_v0, %s658_s9  ;;  %v642_v3 = vld [vmem:[%s908_s0 + $0x4] ss:$8 sps:$4 sm:$0xff]   ;;  %66 = vrot.lane.b32.xlu0 %v639_v1, %s658_s9  ;;  %s660_s0 = smov 118   ;;  %s661_s15 = smov 117   ;;  %vm119_vm3 = vcmask 957440   ;;  %vm134_vm4 = vcmask 949248  }
   0x3   :  { %209 = vmatprep.subr.bf16.mxu0 %v642_v3  ;;  %s662_s16 = smov 116   ;;  %s663_s17 = smov 108   ;;  %v645_v4 = vld [vmem:[%s909_s2 + $0x4] ss:$12 sps:$4 sm:$0xff]   ;;  %636 = vset.pattern.permute.xlu0 %v665_v5  ;;  %vm149_vm5 = vcmask 883712   ;;  %vm164_vm6 = vcmask 875520  }
   0x4   :  { %210 = vmatpush1.bf16.msra.mxu0 %v639_v1  ;;  %s664_s20 = smov 107   ;;  %241 = vmatprep.mubr.bf16.mxu0 %v645_v4  ;;  %s666_s21 = smov 106   ;;  %vm179_vm7 = vcmask 867328   ;;  %v643_v51 = vld [vmem:[%s909_s2] ss:$12 sps:$4 sm:$0xff]   ;;  %vm205_vm8 = vcmask 261120  }
   0x5   :  { %211 = vmatprep.subr.bf16.mxu0 %v641_v2  ;;  %v646_v55 = vld [vmem:[%s909_s2 + $0x8] ss:$12 sps:$4 sm:$0xff]   ;;  %v33_v57 = vshrl.u32 %v32_v56, 7  ;;  %v30_v61 = vld [vmem:[%s910_s1] sm:$0x3]  ;;  %vm299_vm9 = vcmask 588800  }
   0x6   :  { %72 = vrot.lane.b32.xlu1 %v641_v2, %s658_s9  ;;  %68 = vrot.lane.b32.xlu0 %v642_v3, %s658_s9  ;;  %vm380_vm10 = vcmask 89088   ;;  %vm382_vm11 = vcmask 769688   ;;  %vm396_vm12 = vcmask 1047640   ;;  %vm398_vm13 = vcmask 678912  }
   0x7   :  { %v38_v59 = vsub.s32 1, %v33_v57  ;;  %v34_v62 = vsub.s32 0, %v33_v57  ;;  %381 = vst.msk [vmem:[#allocation2] sm:$0xff] %vm380_vm10, %v665_v5  ;;  %vm471_vm14 = vcmask 130048  }
   0x8   :  { %212 = vmatpush1.bf16.msra.mxu0 %v637_v0  ;;  %383 = vst.msk [vmem:[#allocation2 + $0x8] sm:$0xff] %vm382_vm11, %v665_v5 }
   0xa   :  { %83 = vrot.lane.b32.xlu1 %v642_v3, %s659_s14  ;;  %81 = vrot.lane.b32.xlu0 %v639_v1, %s659_s14 }
   0xe   :  { %87 = vrot.lane.b32.xlu1 %v641_v2, %s659_s14  ;;  %85 = vrot.lane.b32.xlu0 %v637_v0, %s659_s14 }
  0x12   :  { %98 = vrot.lane.b32.xlu1 %v642_v3, %s660_s0  ;;  %96 = vrot.lane.b32.xlu0 %v639_v1, %s660_s0 }
  0x16   :  { %102 = vrot.lane.b32.xlu1 %v641_v2, %s660_s0  ;;  %100 = vrot.lane.b32.xlu0 %v637_v0, %s660_s0 }
  0x1a   :  { %113 = vrot.lane.b32.xlu1 %v642_v3, %s661_s15  ;;  %111 = vrot.lane.b32.xlu0 %v639_v1, %s661_s15 }
  0x1e   :  { %117 = vrot.lane.b32.xlu1 %v641_v2, %s661_s15  ;;  %115 = vrot.lane.b32.xlu0 %v637_v0, %s661_s15 }
  0x22   :  { %128 = vrot.lane.b32.xlu1 %v642_v3, %s662_s16  ;;  %126 = vrot.lane.b32.xlu0 %v639_v1, %s662_s16 }
  0x26   :  { %132 = vrot.lane.b32.xlu1 %v641_v2, %s662_s16  ;;  %130 = vrot.lane.b32.xlu0 %v637_v0, %s662_s16 }
  0x2a   :  { %143 = vrot.lane.b32.xlu1 %v642_v3, %s663_s17  ;;  %141 = vrot.lane.b32.xlu0 %v639_v1, %s663_s17 }
  0x2e   :  { %147 = vrot.lane.b32.xlu1 %v641_v2, %s663_s17  ;;  %145 = vrot.lane.b32.xlu0 %v637_v0, %s663_s17 }
  0x32   :  { %158 = vrot.lane.b32.xlu1 %v642_v3, %s664_s20  ;;  %156 = vrot.lane.b32.xlu0 %v639_v1, %s664_s20 }
  0x36   :  { %173 = vrot.lane.b32.xlu1 %v642_v3, %s666_s21  ;;  %171 = vrot.lane.b32.xlu0 %v639_v1, %s666_s21  ;;  %v790_v3 = vrot.slane %v30_v61, %v34_v62 }
  0x3a   :  { %162 = vrot.lane.b32.xlu1 %v641_v2, %s664_s20  ;;  %160 = vrot.lane.b32.xlu0 %v637_v0, %s664_s20 }
  0x3e   :  { %177 = vrot.lane.b32.xlu1 %v641_v2, %s666_s21  ;;  %175 = vrot.lane.b32.xlu0 %v637_v0, %s666_s21  ;;  %v788_v2 = vrot.slane %v30_v61, %v38_v59 }
  0x74   :  { %v71_v6 = vpop.permute.xlu1 %70  ;;  %v67_v7 = vpop.permute.xlu0 %66 }
  0x78   :  { %v73_v8 = vpop.permute.xlu1 %72  ;;  %v69_v9 = vpop.permute.xlu0 %68 }
  0x79   :  { %213 = vmatprep.subr.bf16.mxu0 %v69_v9  ;;  %v75_v10 = vsel %vm74_vm0, %v67_v7, %v69_v9  ;;  %v76_v13 = vsel %vm74_vm0, %v71_v6, %v73_v8 }
  0x7a   :  { %214 = vmatpush1.bf16.msra.mxu0 %v75_v10 }
  0x7b   :  { %215 = vmatprep.subr.bf16.mxu0 %v73_v8 }
  0x7c   :  { %v84_v11 = vpop.permute.xlu1 %83  ;;  %v82_v12 = vpop.permute.xlu0 %81 }
  0x7d   :  { %v90_v16 = vsel %vm89_vm1, %v82_v12, %v84_v11 }
  0x7e   :  { %216 = vmatpush1.bf16.msra.mxu0 %v76_v13 }
  0x7f   :  { %217 = vmatprep.subr.bf16.mxu0 %v84_v11 }
  0x80   :  { %v88_v14 = vpop.permute.xlu1 %87  ;;  %v86_v15 = vpop.permute.xlu0 %85 }
  0x81   :  { %v91_v19 = vsel %vm89_vm1, %v86_v15, %v88_v14 }
  0x82   :  { %218 = vmatpush1.bf16.msra.mxu0 %v90_v16 }
  0x83   :  { %219 = vmatprep.subr.bf16.mxu0 %v88_v14 }
  0x84   :  { %v99_v17 = vpop.permute.xlu1 %98  ;;  %v97_v18 = vpop.permute.xlu0 %96 }
  0x85   :  { %v105_v22 = vsel %vm104_vm2, %v97_v18, %v99_v17 }
  0x86   :  { %220 = vmatpush1.bf16.msra.mxu0 %v91_v19 }
  0x87   :  { %221 = vmatprep.subr.bf16.mxu0 %v99_v17 }
  0x88   :  { %v103_v20 = vpop.permute.xlu1 %102  ;;  %v101_v21 = vpop.permute.xlu0 %100 }
  0x89   :  { %v106_v25 = vsel %vm104_vm2, %v101_v21, %v103_v20 }
  0x8a   :  { %222 = vmatpush1.bf16.msra.mxu0 %v105_v22 }
  0x8b   :  { %223 = vmatprep.subr.bf16.mxu0 %v103_v20 }
  0x8c   :  { %v114_v23 = vpop.permute.xlu1 %113  ;;  %v112_v24 = vpop.permute.xlu0 %111 }
  0x8d   :  { %v120_v28 = vsel %vm119_vm3, %v112_v24, %v114_v23 }
  0x8e   :  { %224 = vmatpush1.bf16.msra.mxu0 %v106_v25 }
  0x8f   :  { %225 = vmatprep.subr.bf16.mxu0 %v114_v23 }
  0x90   :  { %v118_v26 = vpop.permute.xlu1 %117  ;;  %v116_v27 = vpop.permute.xlu0 %115 }
  0x91   :  { %v121_v31 = vsel %vm119_vm3, %v116_v27, %v118_v26 }
  0x92   :  { %226 = vmatpush1.bf16.msra.mxu0 %v120_v28 }
  0x93   :  { %227 = vmatprep.subr.bf16.mxu0 %v118_v26 }
  0x94   :  { %v129_v29 = vpop.permute.xlu1 %128  ;;  %v127_v30 = vpop.permute.xlu0 %126 }
  0x95   :  { %v135_v34 = vsel %vm134_vm4, %v127_v30, %v129_v29 }
  0x96   :  { %228 = vmatpush1.bf16.msra.mxu0 %v121_v31 }
  0x97   :  { %229 = vmatprep.subr.bf16.mxu0 %v129_v29 }
  0x98   :  { %v133_v32 = vpop.permute.xlu1 %132  ;;  %v131_v33 = vpop.permute.xlu0 %130 }
  0x99   :  { %v136_v37 = vsel %vm134_vm4, %v131_v33, %v133_v32 }
  0x9a   :  { %230 = vmatpush1.bf16.msra.mxu0 %v135_v34 }
  0x9b   :  { %231 = vmatprep.subr.bf16.mxu0 %v133_v32 }
  0x9c   :  { %v144_v35 = vpop.permute.xlu1 %143  ;;  %v142_v36 = vpop.permute.xlu0 %141 }
  0x9d   :  { %v150_v40 = vsel %vm149_vm5, %v142_v36, %v144_v35 }
  0x9e   :  { %232 = vmatpush1.bf16.msra.mxu0 %v136_v37 }
  0x9f   :  { %233 = vmatprep.subr.bf16.mxu0 %v144_v35 }
  0xa0   :  { %v148_v38 = vpop.permute.xlu1 %147  ;;  %v146_v39 = vpop.permute.xlu0 %145 }
  0xa1   :  { %v151_v43 = vsel %vm149_vm5, %v146_v39, %v148_v38 }
  0xa2   :  { %234 = vmatpush1.bf16.msra.mxu0 %v150_v40 }
  0xa3   :  { %235 = vmatprep.subr.bf16.mxu0 %v148_v38 }
  0xa4   :  { %v159_v41 = vpop.permute.xlu1 %158  ;;  %v157_v42 = vpop.permute.xlu0 %156 }
  0xa5   :  { %v165_v46 = vsel %vm164_vm6, %v157_v42, %v159_v41 }
  0xa6   :  { %236 = vmatpush1.bf16.msra.mxu0 %v151_v43 }
  0xa7   :  { %237 = vmatprep.subr.bf16.mxu0 %v159_v41 }
  0xa8   :  { %v174_v44 = vpop.permute.xlu1 %173  ;;  %v172_v45 = vpop.permute.xlu0 %171 }
  0xa9   :  { %252 = vmatprep.subr.bf16.mxu1 %v174_v44  ;;  %v180_v47 = vsel %vm179_vm7, %v172_v45, %v174_v44  ;;  %v330_v44 = vld [vmem:[%s911_s3] sm:$0xff] }
  0xaa   :  { %238 = vmatpush1.bf16.msra.mxu0 %v165_v46  ;;  %253 = vmatpush1.bf16.msra.mxu1 %v180_v47  ;;  %v338_v47 = vld [vmem:[%s912_s4] sm:$0xff] }
  0xac   :  { %v163_v48 = vpop.permute.xlu1 %162  ;;  %v161_v49 = vpop.permute.xlu0 %160 }
  0xad   :  { %239 = vmatprep.subr.bf16.mxu0 %v163_v48  ;;  %v166_v50 = vsel %vm164_vm6, %v161_v49, %v163_v48  ;;  %v331_v48 = vld [vmem:[%s911_s3 + $0x8] sm:$0xff]  ;;  %s667_s3 = smov 11  }
  0xae   :  { %240 = vmatpush1.bf16.msra.mxu0 %v166_v50 }
  0xb0   :  { %v178_v52 = vpop.permute.xlu1 %177  ;;  %v176_v53 = vpop.permute.xlu0 %175 }
  0xb1   :  { %254 = vmatprep.subr.bf16.mxu1 %v178_v52  ;;  %242 = vmatmul.mubr.bf16.vlgmr.msra.gmra.mrb[0].mxu0 %v643_v51  ;;  %v181_v54 = vsel %vm179_vm7, %v176_v53, %v178_v52  ;;  %v339_v53 = vld [vmem:[%s912_s4 + $0x8] sm:$0xff] }
  0xb2   :  { %255 = vmatpush1.bf16.msra.mxu1 %v181_v54 }
  0xb5   :  { %617 = vmatmul.mubr.msk.bf16.vlgmr.msra.gmra.mrb[0].mxu1 %vm205_vm8, %v646_v55 }
 0x184   :  { %v243_v58 = vpop.f32.mrb[0].mxu0 }
 0x185   :  { %v245_v60 = vpop.f32.mrb[1].mxu0 }
 0x186   :  { %v247_v63 = vpop.f32.mrb[2].mxu0 }
 0x187   :  { %v249_v0 = vpop.f32.mrb[3].mxu0 }
 0x188   :  { %v286_v1 = vpop.f32.mrb[0].mxu1 }
 0x189   :  { %v792_v4 = vadd.f32 %v286_v1, %v243_v58  ;;  %v288_v6 = vpop.f32.mrb[1].mxu1 }
 0x18a   :  { %v794_v7 = vadd.f32 %v288_v6, %v245_v60  ;;  %v290_v8 = vpop.f32.mrb[2].mxu1 }
 0x18b   :  { %v796_v9 = vadd.f32 %v290_v8, %v247_v63  ;;  %v292_v10 = vpop.f32.mrb[3].mxu1  ;;  %v295_v13 = vmul.f32 %v792_v4, %v790_v3 }
 0x18c   :  { %v296_v11 = vmul.f32 %v794_v7, %v788_v2  ;;  %v800_v12 = vadd.f32 %v292_v10, %v249_v0 }
 0x18d   :  { %v297_v17 = vmul.f32 %v796_v9, %v790_v3  ;;  %v308_v23 = vmul.f32 %v295_v13, %v295_v13 }
 0x18e   :  { %v298_v14 = vmul.f32 %v800_v12, %v788_v2  ;;  %v300_v15 = vsel %vm299_vm9, %v296_v11, 0.0  ;;  %v309_v16 = vmul.f32 %v296_v11, %v296_v11 }
 0x18f   :  { %v301_v18 = vadd.f32 %v300_v15, %v295_v13  ;;  %v310_v26 = vmul.f32 %v297_v17, %v297_v17 }
 0x190   :  { %v304_v19 = vsel %vm299_vm9, %v298_v14, 0.0  ;;  %v312_v20 = vsel %vm299_vm9, %v309_v16, 0.0  ;;  %v311_v21 = vmul.f32 %v298_v14, %v298_v14 }
 0x191   :  { %302 = vadd.xlane.f32.xlu0 %v301_v18  ;;  %v305_v22 = vadd.f32 %v304_v19, %v297_v17  ;;  %v313_v24 = vadd.f32 %v312_v20, %v308_v23 }
 0x192   :  { %v316_v25 = vsel %vm299_vm9, %v311_v21, 0.0  ;;  %v647_v21 = vld [vmem:[%s913_s5 + $0x4] ss:$8 sps:$4 sm:$0xff]  }
 0x193   :  { %306 = vadd.xlane.f32.xlu1 %v305_v22  ;;  %v317_v27 = vadd.f32 %v316_v25, %v310_v26  ;;  %620 = vmatprep.mubr.msk.bf16.mxu1 %vm471_vm14, %v647_v21  ;;  %v552_v21 = vld [vmem:[%s914_s6] sm:$0xff] }
 0x195   :  { %314 = vadd.xlane.f32.xlu0 %v313_v24 }
 0x199   :  { %318 = vadd.xlane.f32.xlu0 %v317_v27 }
 0x21e   :  { %v303_v28 = vpop.xlane.xlu0 %302 }
 0x21f   :  { %v320_v29 = vmul.f32 0.0078125, %v303_v28 }
 0x220   :  { %v307_v30 = vpop.xlane.xlu1 %306 }
 0x221   :  { %v324_v32 = vmul.f32 %v320_v29, %v320_v29  ;;  %v321_v33 = vmul.f32 0.0078125, %v307_v30 }
 0x222   :  { %v315_v31 = vpop.xlane.xlu0 %314 }
 0x223   :  { %v322_v34 = vmul.f32 0.0078125, %v315_v31  ;;  %v325_v37 = vmul.f32 %v321_v33, %v321_v33 }
 0x225   :  { %v326_v35 = vsub.f32 %v322_v34, %v324_v32 }
 0x226   :  { %v319_v36 = vpop.xlane.xlu0 %318 }
 0x227   :  { %v328_v38 = vmax.f32 %v326_v35, 0.0  ;;  %v323_v39 = vmul.f32 0.0078125, %v319_v36 }
 0x229   :  { %v332_v40 = vadd.f32 1e-05, %v328_v38  ;;  %v327_v41 = vsub.f32 %v323_v39, %v325_v37 }
 0x22b   :  { %650 = vrsqrt.f32 %v332_v40  ;;  %v329_v42 = vmax.f32 %v327_v41, 0.0 }
 0x22d   :  { %v333_v43 = vadd.f32 1e-05, %v329_v42 }
 0x22f   :  { %652 = vrsqrt.f32 %v333_v43 }
 0x235   :  { %v651_v45 = vpop.eup %650 }
 0x236   :  { %v336_v46 = vmul.f32 %v651_v45, %v330_v44 }
 0x238   :  { %346 = vperm.xlu1 %635, %v336_v46   ;;  %v340_v49 = vmul.f32 %v336_v46, %v320_v29  ;;  %v649_v46 = vld [vmem:[%s913_s5] ss:$8 sps:$4 sm:$0xff]  }
 0x239   :  { %v653_v50 = vpop.eup %652 }
 0x23a   :  { %v342_v51 = vsub.f32 %v338_v47, %v340_v49  ;;  %v337_v52 = vmul.f32 %v653_v50, %v331_v48 }
 0x23c   :  { %360 = vperm.xlu1 %635, %v342_v51   ;;  %351 = vperm.xlu0 %636, %v337_v52   ;;  %v341_v54 = vmul.f32 %v337_v52, %v321_v33 }
 0x23e   :  { %v343_v55 = vsub.f32 %v339_v53, %v341_v54 }
 0x240   :  { %365 = vperm.xlu1 %635, %v343_v55  }
 0x2b7   :  { %v347_v56 = vpop.permute.xlu1 %346 }
 0x2b8   :  { %v354_v57 = vmul.f32 %v347_v56, %v792_v4  ;;  %v355_v61 = vmul.f32 %v347_v56, %v794_v7 }
 0x2bb   :  { %v352_v58 = vpop.permute.xlu0 %351  ;;  %v361_v59 = vpop.permute.xlu1 %360 }
 0x2bc   :  { %v368_v60 = vadd.f32 %v361_v59, %v354_v57  ;;  %v356_v62 = vmul.f32 %v352_v58, %v796_v9  ;;  %v357_v63 = vmul.f32 %v352_v58, %v800_v12  ;;  %v369_v1 = vadd.f32 %v361_v59, %v355_v61 }
 0x2be   :  { %v372_v6 = vmax.f32 %v368_v60, 0.0  ;;  %v373_v4 = vmax.f32 %v369_v1, 0.0 }
 0x2bf   :  { %v366_v0 = vpop.permute.xlu1 %365 }
 0x2c0   :  { %v370_v8 = vadd.f32 %v366_v0, %v356_v62  ;;  %v371_v10 = vadd.f32 %v366_v0, %v357_v63  ;;  %v376_v14 = vmul.f32 %v372_v6, %v790_v3  ;;  %v377_v7 = vmul.f32 %v373_v4, %v788_v2 }
 0x2c2   :  { %v374_v11 = vmax.f32 %v370_v8, 0.0  ;;  %v375_v13 = vmax.f32 %v371_v10, 0.0 }
 0x2c4   :  { %v378_v15 = vmul.f32 %v374_v11, %v790_v3  ;;  %v379_v5 = vmul.f32 %v375_v13, %v788_v2 }
 0x2c6   :  { %v384_v16 = vpack.c.bf16 %v378_v15, %v376_v14  ;;  %v385_v9 = vpack.c.bf16 %v379_v5, %v377_v7 }
 0x2c8   :  { %388 = vrot.lane.b32.xlu1 %v384_v16, %s667_s3 }
 0x2cc   :  { %390 = vrot.lane.b32.xlu1 %v385_v9, %s667_s3 }
 0x33a   :  { %v389_v12 = vpop.permute.xlu1 %388 }
 0x33b   :  { %397 = vst.msk [vmem:[#allocation2] sm:$0xff] %vm396_vm12, %v389_v12 }
 0x33e   :  { %v391_v17 = vpop.permute.xlu1 %390 }
 0x33f   :  { %v393_v18 = vsel %vm380_vm10, %v389_v12, %v391_v17 }
 0x340   :  { %399 = vst.msk [vmem:[#allocation2 + $0x8] sm:$0xff] %vm398_vm13, %v393_v18 }
 0x342   :  { %v400_v19 = vld [vmem:[#allocation2] sm:$0xff] }
 0x343   :  { %418 = vrot.lane.b32.xlu0 %v400_v19, %s660_s0  ;;  %404 = vrot.lane.b32.xlu1 %v400_v19, %s658_s9 }
 0x347   :  { %425 = vrot.lane.b32.xlu0 %v400_v19, %s661_s15  ;;  %411 = vrot.lane.b32.xlu1 %v400_v19, %s659_s14  ;;  %v401_v20 = vld [vmem:[#allocation2 + $0x8] sm:$0xff] }
 0x348   :  { %475 = vmatprep.subr.bf16.mxu1 %v401_v20 }
 0x349   :  { %476 = vmatpush1.bf16.msra.mxu1 %v400_v19 }
 0x34b   :  { %432 = vrot.lane.b32.xlu0 %v400_v19, %s662_s16  ;;  %406 = vrot.lane.b32.xlu1 %v401_v20, %s658_s9 }
 0x34f   :  { %439 = vrot.lane.b32.xlu0 %v400_v19, %s663_s17  ;;  %413 = vrot.lane.b32.xlu1 %v401_v20, %s659_s14 }
 0x353   :  { %446 = vrot.lane.b32.xlu0 %v400_v19, %s664_s20  ;;  %420 = vrot.lane.b32.xlu1 %v401_v20, %s660_s0 }
 0x357   :  { %453 = vrot.lane.b32.xlu0 %v400_v19, %s666_s21  ;;  %427 = vrot.lane.b32.xlu1 %v401_v20, %s661_s15 }
 0x35b   :  { %434 = vrot.lane.b32.xlu1 %v401_v20, %s662_s16 }
 0x35f   :  { %441 = vrot.lane.b32.xlu1 %v401_v20, %s663_s17 }
 0x363   :  { %448 = vrot.lane.b32.xlu1 %v401_v20, %s664_s20 }
 0x367   :  { %455 = vrot.lane.b32.xlu1 %v401_v20, %s666_s21 }
 0x3b5   :  { %v405_v22 = vpop.permute.xlu1 %404  ;;  %v419_v24 = vpop.permute.xlu0 %418 }
 0x3b9   :  { %v412_v23 = vpop.permute.xlu1 %411  ;;  %v426_v27 = vpop.permute.xlu0 %425 }
 0x3bd   :  { %v407_v25 = vpop.permute.xlu1 %406  ;;  %v433_v32 = vpop.permute.xlu0 %432 }
 0x3be   :  { %v408_v26 = vsel %vm74_vm0, %v405_v22, %v407_v25  ;;  %477 = vmatprep.subr.bf16.mxu1 %v407_v25  ;;  %v553_v25 = vld [vmem:[%s914_s6 + $0x8] sm:$0xff] }
 0x3bf   :  { %478 = vmatpush1.bf16.msra.mxu1 %v408_v26 }
 0x3c1   :  { %v414_v28 = vpop.permute.xlu1 %413  ;;  %v440_v35 = vpop.permute.xlu0 %439 }
 0x3c2   :  { %v415_v29 = vsel %vm89_vm1, %v412_v23, %v414_v28  ;;  %479 = vmatprep.subr.bf16.mxu1 %v414_v28 }
 0x3c3   :  { %480 = vmatpush1.bf16.msra.mxu1 %v415_v29 }
 0x3c5   :  { %v421_v30 = vpop.permute.xlu1 %420  ;;  %v447_v40 = vpop.permute.xlu0 %446 }
 0x3c6   :  { %v422_v31 = vsel %vm104_vm2, %v419_v24, %v421_v30  ;;  %481 = vmatprep.subr.bf16.mxu1 %v421_v30  ;;  %v560_v24 = vld [vmem:[%s915_s7] sm:$0xff]  ;;  %v561_v30 = vld [vmem:[%s915_s7 + $0x8] sm:$0xff] }
 0x3c7   :  { %482 = vmatpush1.bf16.msra.mxu1 %v422_v31 }
 0x3c9   :  { %v428_v33 = vpop.permute.xlu1 %427  ;;  %v454_v43 = vpop.permute.xlu0 %453 }
 0x3ca   :  { %v429_v34 = vsel %vm119_vm3, %v426_v27, %v428_v33  ;;  %483 = vmatprep.subr.bf16.mxu1 %v428_v33 }
 0x3cb   :  { %484 = vmatpush1.bf16.msra.mxu1 %v429_v34 }
 0x3cd   :  { %v435_v36 = vpop.permute.xlu1 %434 }
 0x3ce   :  { %v436_v37 = vsel %vm134_vm4, %v433_v32, %v435_v36  ;;  %485 = vmatprep.subr.bf16.mxu1 %v435_v36 }
 0x3cf   :  { %486 = vmatpush1.bf16.msra.mxu1 %v436_v37 }
 0x3d1   :  { %v442_v38 = vpop.permute.xlu1 %441 }
 0x3d2   :  { %v443_v39 = vsel %vm149_vm5, %v440_v35, %v442_v38  ;;  %487 = vmatprep.subr.bf16.mxu1 %v442_v38 }
 0x3d3   :  { %488 = vmatpush1.bf16.msra.mxu1 %v443_v39 }
 0x3d5   :  { %v449_v41 = vpop.permute.xlu1 %448 }
 0x3d6   :  { %v450_v42 = vsel %vm164_vm6, %v447_v40, %v449_v41  ;;  %489 = vmatprep.subr.bf16.mxu1 %v449_v41 }
 0x3d7   :  { %490 = vmatpush1.bf16.msra.mxu1 %v450_v42 }
 0x3d9   :  { %v456_v44 = vpop.permute.xlu1 %455 }
 0x3da   :  { %v457_v45 = vsel %vm179_vm7, %v454_v43, %v456_v44  ;;  %491 = vmatprep.subr.bf16.mxu1 %v456_v44 }
 0x3db   :  { %492 = vmatpush1.bf16.msra.mxu1 %v457_v45 }
 0x3de   :  { %508 = vmatmul.mubr.bf16.vlgmr.msra.gmra.mrb[4].mxu1 %v649_v46 }
 0x4b1   :  { %v509_v47 = vpop.f32.mrb[4].mxu1 }
 0x4b2   :  { %v518_v48 = vmul.f32 %v509_v47, %v790_v3  ;;  %v511_v49 = vpop.f32.mrb[5].mxu1 }
 0x4b3   :  { %v519_v50 = vmul.f32 %v511_v49, %v788_v2  ;;  %v868_v51 = vpop.f32.mrb[6].mxu1 }
 0x4b4   :  { %v520_v52 = vmul.f32 %v868_v51, %v790_v3  ;;  %v515_v53 = vpop.f32.mrb[7].mxu1  ;;  %v530_v58 = vmul.f32 %v518_v48, %v518_v48 }
 0x4b5   :  { %v531_v54 = vmul.f32 %v519_v50, %v519_v50  ;;  %v521_v55 = vmul.f32 %v515_v53, %v788_v2  ;;  %v522_v56 = vsel %vm299_vm9, %v519_v50, 0.0 }
 0x4b6   :  { %v523_v57 = vadd.f32 %v522_v56, %v518_v48  ;;  %v532_v0 = vmul.f32 %v520_v52, %v520_v52 }
 0x4b7   :  { %v533_v59 = vmul.f32 %v521_v55, %v521_v55  ;;  %v526_v60 = vsel %vm299_vm9, %v521_v55, 0.0  ;;  %v534_v61 = vsel %vm299_vm9, %v531_v54, 0.0 }
 0x4b8   :  { %524 = vadd.xlane.f32.xlu0 %v523_v57  ;;  %v527_v62 = vadd.f32 %v526_v60, %v520_v52  ;;  %v535_v63 = vadd.f32 %v534_v61, %v530_v58 }
 0x4b9   :  { %v538_v1 = vsel %vm299_vm9, %v533_v59, 0.0 }
 0x4ba   :  { %528 = vadd.xlane.f32.xlu1 %v527_v62  ;;  %v539_v6 = vadd.f32 %v538_v1, %v532_v0 }
 0x4bc   :  { %536 = vadd.xlane.f32.xlu0 %v535_v63 }
 0x4c0   :  { %540 = vadd.xlane.f32.xlu0 %v539_v6 }
 0x545   :  { %v525_v8 = vpop.xlane.xlu0 %524 }
 0x546   :  { %v542_v10 = vmul.f32 0.0078125, %v525_v8 }
 0x547   :  { %v529_v11 = vpop.xlane.xlu1 %528 }
 0x548   :  { %v546_v4 = vmul.f32 %v542_v10, %v542_v10  ;;  %v543_v14 = vmul.f32 0.0078125, %v529_v11 }
 0x549   :  { %v537_v13 = vpop.xlane.xlu0 %536 }
 0x54a   :  { %v544_v15 = vmul.f32 0.0078125, %v537_v13  ;;  %v547_v7 = vmul.f32 %v543_v14, %v543_v14 }
 0x54c   :  { %v548_v5 = vsub.f32 %v544_v15, %v546_v4 }
 0x54d   :  { %v541_v16 = vpop.xlane.xlu0 %540 }
 0x54e   :  { %v550_v9 = vmax.f32 %v548_v5, 0.0  ;;  %v545_v12 = vmul.f32 0.0078125, %v541_v16 }
 0x550   :  { %v554_v17 = vadd.f32 1e-05, %v550_v9  ;;  %v549_v18 = vsub.f32 %v545_v12, %v547_v7 }
 0x552   :  { %654 = vrsqrt.f32 %v554_v17  ;;  %v551_v19 = vmax.f32 %v549_v18, 0.0 }
 0x554   :  { %v555_v20 = vadd.f32 1e-05, %v551_v19 }
 0x556   :  { %656 = vrsqrt.f32 %v555_v20 }
 0x55c   :  { %v655_v22 = vpop.eup %654 }
 0x55d   :  { %v558_v23 = vmul.f32 %v655_v22, %v552_v21 }
 0x55f   :  { %568 = vperm.xlu1 %635, %v558_v23   ;;  %v562_v26 = vmul.f32 %v558_v23, %v542_v10 }
 0x560   :  { %v657_v27 = vpop.eup %656 }
 0x561   :  { %v564_v28 = vsub.f32 %v560_v24, %v562_v26  ;;  %v559_v29 = vmul.f32 %v657_v27, %v553_v25 }
 0x563   :  { %582 = vperm.xlu1 %635, %v564_v28   ;;  %573 = vperm.xlu0 %636, %v559_v29   ;;  %v563_v31 = vmul.f32 %v559_v29, %v543_v14 }
 0x565   :  { %v565_v32 = vsub.f32 %v561_v30, %v563_v31 }
 0x567   :  { %587 = vperm.xlu1 %635, %v565_v32  }
 0x5de   :  { %v569_v33 = vpop.permute.xlu1 %568 }
 0x5df   :  { %v576_v34 = vmul.f32 %v569_v33, %v509_v47  ;;  %v577_v35 = vmul.f32 %v569_v33, %v511_v49 }
 0x5e2   :  { %v574_v36 = vpop.permute.xlu0 %573  ;;  %v583_v37 = vpop.permute.xlu1 %582 }
 0x5e3   :  { %v590_v38 = vadd.f32 %v583_v37, %v576_v34  ;;  %v591_v39 = vadd.f32 %v583_v37, %v577_v35  ;;  %v578_v40 = vmul.f32 %v574_v36, %v868_v51  ;;  %v579_v41 = vmul.f32 %v574_v36, %v515_v53 }
 0x5e5   :  { %v594_v42 = vmax.f32 %v590_v38, 0.0  ;;  %v595_v43 = vmax.f32 %v591_v39, 0.0 }
 0x5e6   :  { %v588_v44 = vpop.permute.xlu1 %587 }
 0x5e7   :  { %v598_v45 = vmul.f32 %v594_v42, %v790_v3  ;;  %v599_v46 = vmul.f32 %v595_v43, %v788_v2  ;;  %v592_v48 = vadd.f32 %v588_v44, %v578_v40  ;;  %v593_v50 = vadd.f32 %v588_v44, %v579_v41 }
 0x5e9   :  { %602 = vst [vmem:[%s916_s8] sm:$0xff] %v598_v45  ;;  %603 = vst.msk [vmem:[%s916_s8 + $0x8] sm:$0xff] %vm299_vm9, %v599_v46  ;;  %v596_v47 = vmax.f32 %v592_v48, 0.0  ;;  %v597_v49 = vmax.f32 %v593_v50, 0.0 }
 0x5eb   :  { %v600_v51 = vmul.f32 %v596_v47, %v790_v3  ;;  %v601_v52 = vmul.f32 %v597_v49, %v788_v2 }
 0x5ed   :  { %604 = vst [vmem:[%s916_s8 + $0x10] sm:$0xff] %v600_v51  ;;  %605 = vst.msk [vmem:[%s916_s8 + $0x18] sm:$0xff] %vm299_vm9, %v601_v52 }

// kernel: unet_forward.15
= control target key start
LH: loop header
LB: loop body
LE: loop exit
PB: predicated region body
PF: predicated region fallthrough
CT: control target
= control target key end

     0   :  { %vm38_vm0 = vcmask 1043456   ;;  %v161_v2 = vmov 0   ;;  %vm34_vm1 = vcmask 64512   ;;  %s204_s1 = inlined_call_operand.vmem [shape: bf16[8,512], index: 1, kind: input, shape index: {}]   ;;  %s205_s2 = inlined_call_operand.vmem [shape: f32[4,1], index: 2, kind: input, shape index: {}]   ;;  %s206_s0 = inlined_call_operand.vmem [shape: bf16[4,8], index: 0, kind: input, shape index: {}]   ;;  %s207_s3 = inlined_call_operand.vmem [shape: f32[4,512], index: 3, kind: output, shape index: {}]  }
   0x1   :  { %v16_v0 = vld [vmem:[%s204_s1] sm:$0xff]  ;;  %v17_v1 = vld [vmem:[%s204_s1 + $0x8] sm:$0xff]  ;;  %83 = vmatprep.mubr.bf16.mxu0 %v161_v2  ;;  %124 = vmatprep.mubr.bf16.mxu1 %v161_v2 }
   0x2   :  { %v148_v3 = vcombine.high %v16_v0, %v16_v0  ;;  %v150_v4 = vcombine.high %v17_v1, %v17_v1  ;;  %v147_v5 = vcombine.low %v16_v0, %v16_v0  ;;  %v149_v6 = vcombine.low %v17_v1, %v17_v1  ;;  %156 = vset.pattern.permute.xlu0 %v161_v2  ;;  %v18_v7 = vld [vmem:[%s205_s2] sm:$0xf] }
   0x3   :  { %21 = vperm.xlu0 %156, %v18_v7   ;;  %v15_v10 = vld [vmem:[%s206_s0] sm:$0x3] }
   0x4   :  { %151 = vmatprep.subr.msk.bf16.mxu0 %vm38_vm0, %v148_v3  ;;  %153 = vmatprep.subr.msk.bf16.mxu1 %vm38_vm0, %v150_v4  ;;  %v40_v8 = vsel %vm38_vm0, %v147_v5, 0  ;;  %v46_v9 = vsel %vm38_vm0, %v149_v6, 0 }
   0x5   :  { %52 = vmatpush1.bf16.msra.mxu0 %v40_v8  ;;  %93 = vmatpush1.bf16.msra.mxu1 %v46_v9 }
   0x8   :  { %152 = vmatmul.mubr.msk.bf16.vlgmr.msra.gmra.mrb[0].mxu0 %vm34_vm1, %v15_v10  ;;  %154 = vmatmul.mubr.msk.bf16.vlgmr.msra.gmra.mrb[0].mxu1 %vm34_vm1, %v15_v10 }
  0x82   :  { %v22_v11 = vpop.permute.xlu0 %21 }
  0xdb   :  { %v85_v12 = vpop.f32.mrb[0].mxu0  ;;  %v126_v13 = vpop.f32.mrb[0].mxu1 }
  0xdc   :  { %v86_v14 = vadd.f32 %v85_v12, %v22_v11  ;;  %v127_v15 = vadd.f32 %v126_v13, %v22_v11  ;;  %v87_v16 = vpop.f32.mrb[1].mxu0  ;;  %v128_v17 = vpop.f32.mrb[1].mxu1 }
  0xdd   :  { %v88_v18 = vadd.f32 %v87_v16, %v22_v11  ;;  %v129_v19 = vadd.f32 %v128_v17, %v22_v11  ;;  %v89_v20 = vpop.f32.mrb[2].mxu0  ;;  %v130_v21 = vpop.f32.mrb[2].mxu1 }
  0xde   :  { %v90_v22 = vpop.f32.mrb[3].mxu0  ;;  %v131_v23 = vpop.f32.mrb[3].mxu1 }
  0xdf   :  { %v137_v24 = vcombine.low %v86_v14, %v88_v18  ;;  %v138_v25 = vcombine.low %v127_v15, %v129_v19 }
  0xe1   :  { %141 = vst [vmem:[%s207_s3] sm:$0xff] %v137_v24  ;;  %142 = vst [vmem:[%s207_s3 + $0x8] sm:$0xff] %v138_v25 }

// kernel: unet_forward.14
= control target key start
LH: loop header
LB: loop body
LE: loop exit
PB: predicated region body
PF: predicated region fallthrough
CT: control target
= control target key end

     0   :  { %s1092_s9 = smov 127   ;;  %s1093_s14 = smov 126   ;;  %vm297_vm0 = vcmask 130048   ;;  %vm110_vm1 = vcmask 1039360   ;;  %vm134_vm2 = vcmask 1031168   ;;  %vm158_vm3 = vcmask 900096   ;;  %s1635_s0 = inlined_call_operand.vmem [shape: bf16[16,686], index: 0, kind: input, shape index: {}]   ;;  %s1636_s2 = inlined_call_operand.vmem [shape: bf16[8,144], index: 2, kind: input, shape index: {}]   ;;  %s1637_s1 = inlined_call_operand.vmem [shape: f32[1,648], index: 1, kind: input, shape index: {}]   ;;  %s1638_s3 = inlined_call_operand.vmem [shape: f32[8,1], index: 3, kind: input, shape index: {}]   ;;  %s1639_s4 = inlined_call_operand.vmem [shape: f32[8,1], index: 4, kind: input, shape index: {}]   ;;  %s1640_s5 = inlined_call_operand.vmem [shape: bf16[8,72], index: 5, kind: input, shape index: {}]   ;;  %s1641_s6 = inlined_call_operand.vmem [shape: f32[8,1], index: 6, kind: input, shape index: {}]   ;;  %s1642_s7 = inlined_call_operand.vmem [shape: f32[8,1], index: 7, kind: input, shape index: {}]   ;;  %s1643_s8 = inlined_call_operand.vmem [shape: f32[8,648], index: 8, kind: output, shape index: {}]  }
   0x1   :  { %v1073_v0 = vld [vmem:[%s1635_s0 + $0x4] ss:$24 sps:$4 sm:$0xff]   ;;  %v1075_v1 = vld [vmem:[%s1635_s0] ss:$24 sps:$4 sm:$0xff]   ;;  %s1094_s15 = smov 110   ;;  %s1095_s16 = smov 109  }
   0x2   :  { %100 = vrot.lane.b32.xlu0 %v1073_v0, %s1092_s9  ;;  %v1076_v2 = vld [vmem:[%s1635_s0 + $0x8] ss:$24 sps:$4 sm:$0xff]   ;;  %v1078_v3 = vld [vmem:[%s1635_s0 + $0xc] ss:$24 sps:$4 sm:$0xff]   ;;  %301 = vmatprep.subr.bf16.mxu0 %v1073_v0  ;;  %s1096_s17 = smov 108   ;;  %s1097_s18 = smov 92  }
   0x3   :  { %98 = vrot.lane.b32.xlu1 %v1075_v1, %s1092_s9  ;;  %302 = vmatpush1.bf16.msra.mxu0 %v1075_v1  ;;  %s1098_s19 = smov 91   ;;  %v1182_v4 = vld [vmem:[%s1636_s2] sm:$0xff]  ;;  %s1099_s22 = smov 90   ;;  %v1199_v6 = vld [vmem:[%s1635_s0 + $0x10] ss:$24 sps:$4 sm:$0xff]   ;;  %vm182_vm4 = vcmask 891904  }
   0x4   :  { %342 = vmatprep.subr.bf16.mxu1 %v1078_v3  ;;  %v1186_v5 = vcombine.high %v1182_v4, %v1182_v4  ;;  %v1208_v7 = vld [vmem:[%s1635_s0 + $0x14] ss:$24 sps:$4 sm:$0xff]   ;;  %vm206_vm5 = vcmask 883712   ;;  %vm230_vm6 = vcmask 752640   ;;  %vm254_vm7 = vcmask 744448  }
   0x5   :  { %343 = vmatpush1.bf16.msra.mxu1 %v1076_v2  ;;  %vm278_vm8 = vcmask 736256   ;;  %v1288_v48 = vcombine.low %v1182_v4, %v1182_v4  ;;  %vm434_vm9 = vcmask 64512   ;;  %vm499_vm10 = vcmask 150528  }
   0x6   :  { %102 = vrot.lane.b32.xlu0 %v1076_v2, %s1092_s9  ;;  %1040 = vmatprep.mubr.msk.bf16.mxu0 %vm297_vm0, %v1186_v5  ;;  %vm501_vm11 = vcmask 371928   ;;  %vm543_vm12 = vcmask 1043608   ;;  %vm544_vm13 = vcmask 1047556   ;;  %vm533_vm14 = vcmask 154624  }
   0x7   :  { %124 = vrot.lane.b32.xlu1 %v1073_v0, %s1093_s14  ;;  %1041 = vmatprep.mubr.msk.bf16.mxu1 %vm297_vm0, %v1186_v5  ;;  %vm545_vm15 = vmor %vm544_vm13, %vm543_vm12  ;;  %vm803_vm12 = vcmask 588800  }
   0xa   :  { %126 = vrot.lane.b32.xlu0 %v1076_v2, %s1093_s14 }
   0xb   :  { %122 = vrot.lane.b32.xlu1 %v1075_v1, %s1093_s14 }
   0xe   :  { %148 = vrot.lane.b32.xlu0 %v1073_v0, %s1094_s15 }
   0xf   :  { %150 = vrot.lane.b32.xlu1 %v1076_v2, %s1094_s15 }
  0x12   :  { %146 = vrot.lane.b32.xlu0 %v1075_v1, %s1094_s15 }
  0x13   :  { %172 = vrot.lane.b32.xlu1 %v1073_v0, %s1095_s16 }
  0x16   :  { %174 = vrot.lane.b32.xlu0 %v1076_v2, %s1095_s16 }
  0x17   :  { %170 = vrot.lane.b32.xlu1 %v1075_v1, %s1095_s16 }
  0x1a   :  { %196 = vrot.lane.b32.xlu0 %v1073_v0, %s1096_s17 }
  0x1b   :  { %198 = vrot.lane.b32.xlu1 %v1076_v2, %s1096_s17 }
  0x1e   :  { %194 = vrot.lane.b32.xlu0 %v1075_v1, %s1096_s17 }
  0x1f   :  { %220 = vrot.lane.b32.xlu1 %v1073_v0, %s1097_s18 }
  0x22   :  { %222 = vrot.lane.b32.xlu0 %v1076_v2, %s1097_s18 }
  0x23   :  { %218 = vrot.lane.b32.xlu1 %v1075_v1, %s1097_s18 }
  0x26   :  { %244 = vrot.lane.b32.xlu0 %v1073_v0, %s1098_s19 }
  0x27   :  { %246 = vrot.lane.b32.xlu1 %v1076_v2, %s1098_s19 }
  0x2a   :  { %242 = vrot.lane.b32.xlu0 %v1075_v1, %s1098_s19 }
  0x2b   :  { %268 = vrot.lane.b32.xlu1 %v1073_v0, %s1099_s22 }
  0x2e   :  { %270 = vrot.lane.b32.xlu0 %v1076_v2, %s1099_s22 }
  0x2f   :  { %266 = vrot.lane.b32.xlu1 %v1075_v1, %s1099_s22 }
  0x32   :  { %104 = vrot.lane.b32.xlu0 %v1078_v3, %s1092_s9 }
  0x33   :  { %106 = vrot.lane.b32.xlu1 %v1199_v6, %s1092_s9 }
  0x36   :  { %128 = vrot.lane.b32.xlu0 %v1078_v3, %s1093_s14 }
  0x37   :  { %130 = vrot.lane.b32.xlu1 %v1199_v6, %s1093_s14 }
  0x3a   :  { %108 = vrot.lane.b32.xlu0 %v1208_v7, %s1092_s9 }
  0x3b   :  { %152 = vrot.lane.b32.xlu1 %v1078_v3, %s1094_s15 }
  0x3e   :  { %154 = vrot.lane.b32.xlu0 %v1199_v6, %s1094_s15 }
  0x3f   :  { %132 = vrot.lane.b32.xlu1 %v1208_v7, %s1093_s14 }
  0x42   :  { %176 = vrot.lane.b32.xlu0 %v1078_v3, %s1095_s16 }
  0x43   :  { %178 = vrot.lane.b32.xlu1 %v1199_v6, %s1095_s16 }
  0x46   :  { %156 = vrot.lane.b32.xlu0 %v1208_v7, %s1094_s15 }
  0x47   :  { %200 = vrot.lane.b32.xlu1 %v1078_v3, %s1096_s17 }
  0x4a   :  { %202 = vrot.lane.b32.xlu0 %v1199_v6, %s1096_s17 }
  0x4b   :  { %180 = vrot.lane.b32.xlu1 %v1208_v7, %s1095_s16 }
  0x4e   :  { %224 = vrot.lane.b32.xlu0 %v1078_v3, %s1097_s18 }
  0x4f   :  { %226 = vrot.lane.b32.xlu1 %v1199_v6, %s1097_s18 }
  0x52   :  { %204 = vrot.lane.b32.xlu0 %v1208_v7, %s1096_s17 }
  0x53   :  { %248 = vrot.lane.b32.xlu1 %v1078_v3, %s1098_s19 }
  0x56   :  { %250 = vrot.lane.b32.xlu0 %v1199_v6, %s1098_s19 }
  0x57   :  { %228 = vrot.lane.b32.xlu1 %v1208_v7, %s1097_s18 }
  0x5a   :  { %272 = vrot.lane.b32.xlu0 %v1078_v3, %s1099_s22 }
  0x5b   :  { %274 = vrot.lane.b32.xlu1 %v1199_v6, %s1099_s22 }
  0x5e   :  { %252 = vrot.lane.b32.xlu0 %v1208_v7, %s1098_s19 }
  0x5f   :  { %276 = vrot.lane.b32.xlu1 %v1208_v7, %s1099_s22 }
  0x74   :  { %v101_v8 = vpop.permute.xlu0 %100 }
  0x75   :  { %v99_v9 = vpop.permute.xlu1 %98 }
  0x76   :  { %v111_v13 = vsel %vm110_vm1, %v99_v9, %v101_v8 }
  0x78   :  { %v1246_v10 = vpop.permute.xlu0 %102 }
  0x79   :  { %v125_v11 = vpop.permute.xlu1 %124  ;;  %v112_v12 = vsel %vm110_vm1, %v101_v8, %v1246_v10 }
  0x7a   :  { %303 = vmatprep.subr.bf16.mxu0 %v112_v12 }
  0x7b   :  { %304 = vmatpush1.bf16.msra.mxu0 %v111_v13 }
  0x7c   :  { %v1251_v14 = vpop.permute.xlu0 %126 }
  0x7d   :  { %v123_v15 = vpop.permute.xlu1 %122  ;;  %v136_v16 = vsel %vm134_vm2, %v125_v11, %v1251_v14 }
  0x7e   :  { %305 = vmatprep.subr.bf16.mxu0 %v136_v16  ;;  %v135_v17 = vsel %vm134_vm2, %v123_v15, %v125_v11 }
  0x7f   :  { %306 = vmatpush1.bf16.msra.mxu0 %v135_v17 }
  0x80   :  { %v149_v18 = vpop.permute.xlu0 %148 }
  0x81   :  { %v1256_v19 = vpop.permute.xlu1 %150 }
  0x82   :  { %v160_v20 = vsel %vm158_vm3, %v149_v18, %v1256_v19 }
  0x83   :  { %307 = vmatprep.subr.bf16.mxu0 %v160_v20 }
  0x84   :  { %v147_v21 = vpop.permute.xlu0 %146 }
  0x85   :  { %v173_v22 = vpop.permute.xlu1 %172  ;;  %v159_v23 = vsel %vm158_vm3, %v147_v21, %v149_v18 }
  0x86   :  { %308 = vmatpush1.bf16.msra.mxu0 %v159_v23 }
  0x88   :  { %v1261_v24 = vpop.permute.xlu0 %174 }
  0x89   :  { %v171_v25 = vpop.permute.xlu1 %170  ;;  %v184_v26 = vsel %vm182_vm4, %v173_v22, %v1261_v24 }
  0x8a   :  { %309 = vmatprep.subr.bf16.mxu0 %v184_v26  ;;  %v183_v27 = vsel %vm182_vm4, %v171_v25, %v173_v22 }
  0x8b   :  { %310 = vmatpush1.bf16.msra.mxu0 %v183_v27 }
  0x8c   :  { %v197_v28 = vpop.permute.xlu0 %196 }
  0x8d   :  { %v1266_v29 = vpop.permute.xlu1 %198 }
  0x8e   :  { %v208_v30 = vsel %vm206_vm5, %v197_v28, %v1266_v29 }
  0x8f   :  { %311 = vmatprep.subr.bf16.mxu0 %v208_v30 }
  0x90   :  { %v195_v31 = vpop.permute.xlu0 %194 }
  0x91   :  { %v221_v32 = vpop.permute.xlu1 %220  ;;  %v207_v33 = vsel %vm206_vm5, %v195_v31, %v197_v28 }
  0x92   :  { %312 = vmatpush1.bf16.msra.mxu0 %v207_v33  ;;  %v32_v33 = vlaneseq }
  0x94   :  { %v1271_v34 = vpop.permute.xlu0 %222 }
  0x95   :  { %v219_v35 = vpop.permute.xlu1 %218  ;;  %v232_v36 = vsel %vm230_vm6, %v221_v32, %v1271_v34 }
  0x96   :  { %313 = vmatprep.subr.bf16.mxu0 %v232_v36  ;;  %v231_v37 = vsel %vm230_vm6, %v219_v35, %v221_v32  ;;  %v30_v36 = vld [vmem:[%s1637_s1] sm:$0x3f] }
  0x97   :  { %314 = vmatpush1.bf16.msra.mxu0 %v231_v37 }
  0x98   :  { %v245_v38 = vpop.permute.xlu0 %244 }
  0x99   :  { %v1276_v39 = vpop.permute.xlu1 %246 }
  0x9a   :  { %v256_v40 = vsel %vm254_vm7, %v245_v38, %v1276_v39 }
  0x9b   :  { %315 = vmatprep.subr.bf16.mxu0 %v256_v40 }
  0x9c   :  { %v243_v41 = vpop.permute.xlu0 %242 }
  0x9d   :  { %v269_v42 = vpop.permute.xlu1 %268  ;;  %v255_v43 = vsel %vm254_vm7, %v243_v41, %v245_v38 }
  0x9e   :  { %316 = vmatpush1.bf16.msra.mxu0 %v255_v43 }
  0xa0   :  { %v1281_v44 = vpop.permute.xlu0 %270 }
  0xa1   :  { %v267_v45 = vpop.permute.xlu1 %266  ;;  %v280_v46 = vsel %vm278_vm8, %v269_v42, %v1281_v44 }
  0xa2   :  { %317 = vmatprep.subr.bf16.mxu0 %v280_v46  ;;  %v279_v47 = vsel %vm278_vm8, %v267_v45, %v269_v42 }
  0xa3   :  { %318 = vmatpush1.bf16.msra.mxu0 %v279_v47 }
  0xa4   :  { %v105_v49 = vpop.permute.xlu0 %104  ;;  %383 = vmatprep.subr.bf16.mxu0 %v1208_v7 }
  0xa5   :  { %v107_v50 = vpop.permute.xlu1 %106  ;;  %v113_v51 = vsel %vm110_vm1, %v1246_v10, %v105_v49 }
  0xa6   :  { %v114_v52 = vsel %vm110_vm1, %v105_v49, %v107_v50  ;;  %334 = vmatmul.mubr.bf16.vlgmr.msra.gmra.mrb[0].mxu0 %v1288_v48 }
  0xa7   :  { %344 = vmatprep.subr.bf16.mxu1 %v114_v52  ;;  %384 = vmatpush1.bf16.msra.mxu0 %v1199_v6 }
  0xa8   :  { %345 = vmatpush1.bf16.msra.mxu1 %v113_v51  ;;  %v129_v53 = vpop.permute.xlu0 %128  ;;  %1042 = vmatprep.mubr.msk.bf16.mxu0 %vm297_vm0, %v1186_v5  ;;  %vm535_vm0 = vcmask 1043456  }
  0xa9   :  { %v131_v54 = vpop.permute.xlu1 %130  ;;  %v137_v55 = vsel %vm134_vm2, %v1251_v14, %v129_v53 }
  0xaa   :  { %v138_v56 = vsel %vm134_vm2, %v129_v53, %v131_v54 }
  0xab   :  { %346 = vmatprep.subr.bf16.mxu1 %v138_v56 }
  0xac   :  { %347 = vmatpush1.bf16.msra.mxu1 %v137_v55  ;;  %v109_v57 = vpop.permute.xlu0 %108 }
  0xad   :  { %v115_v58 = vsel %vm110_vm1, %v107_v50, %v109_v57  ;;  %v153_v59 = vpop.permute.xlu1 %152  ;;  %385 = vmatprep.subr.bf16.mxu0 %v109_v57 }
  0xae   :  { %386 = vmatpush1.bf16.msra.mxu0 %v115_v58  ;;  %v161_v0 = vsel %vm158_vm3, %v1256_v19, %v153_v59 }
  0xb0   :  { %v155_v60 = vpop.permute.xlu0 %154 }
  0xb1   :  { %v133_v61 = vpop.permute.xlu1 %132  ;;  %v162_v62 = vsel %vm158_vm3, %v153_v59, %v155_v60 }
  0xb2   :  { %v139_v63 = vsel %vm134_vm2, %v131_v54, %v133_v61  ;;  %387 = vmatprep.subr.bf16.mxu0 %v133_v61  ;;  %348 = vmatprep.subr.bf16.mxu1 %v162_v62 }
  0xb3   :  { %388 = vmatpush1.bf16.msra.mxu0 %v139_v63  ;;  %349 = vmatpush1.bf16.msra.mxu1 %v161_v0 }
  0xb4   :  { %v177_v1 = vpop.permute.xlu0 %176 }
  0xb5   :  { %v179_v2 = vpop.permute.xlu1 %178  ;;  %v185_v3 = vsel %vm182_vm4, %v1261_v24, %v177_v1 }
  0xb6   :  { %v186_v4 = vsel %vm182_vm4, %v177_v1, %v179_v2 }
  0xb7   :  { %350 = vmatprep.subr.bf16.mxu1 %v186_v4 }
  0xb8   :  { %351 = vmatpush1.bf16.msra.mxu1 %v185_v3  ;;  %v157_v5 = vpop.permute.xlu0 %156 }
  0xb9   :  { %v163_v6 = vsel %vm158_vm3, %v155_v60, %v157_v5  ;;  %v201_v7 = vpop.permute.xlu1 %200  ;;  %389 = vmatprep.subr.bf16.mxu0 %v157_v5 }
  0xba   :  { %390 = vmatpush1.bf16.msra.mxu0 %v163_v6  ;;  %v209_v12 = vsel %vm206_vm5, %v1266_v29, %v201_v7 }
  0xbc   :  { %v203_v8 = vpop.permute.xlu0 %202 }
  0xbd   :  { %v181_v9 = vpop.permute.xlu1 %180  ;;  %v210_v10 = vsel %vm206_vm5, %v201_v7, %v203_v8 }
  0xbe   :  { %v187_v11 = vsel %vm182_vm4, %v179_v2, %v181_v9  ;;  %391 = vmatprep.subr.bf16.mxu0 %v181_v9  ;;  %352 = vmatprep.subr.bf16.mxu1 %v210_v10 }
  0xbf   :  { %392 = vmatpush1.bf16.msra.mxu0 %v187_v11  ;;  %353 = vmatpush1.bf16.msra.mxu1 %v209_v12 }
  0xc0   :  { %v225_v13 = vpop.permute.xlu0 %224 }
  0xc1   :  { %v227_v14 = vpop.permute.xlu1 %226  ;;  %v233_v15 = vsel %vm230_vm6, %v1271_v34, %v225_v13  ;;  %v33_v34 = vshrl.u32 %v32_v33, 7 }
  0xc2   :  { %v234_v16 = vsel %vm230_vm6, %v225_v13, %v227_v14 }
  0xc3   :  { %354 = vmatprep.subr.bf16.mxu1 %v234_v16  ;;  %v34_v35 = vsub.s32 0, %v33_v34  ;;  %v38_v37 = vsub.s32 1, %v33_v34  ;;  %v42_v50 = vsub.s32 2, %v33_v34  ;;  %v46_v51 = vsub.s32 3, %v33_v34 }
  0xc4   :  { %355 = vmatpush1.bf16.msra.mxu1 %v233_v15  ;;  %v205_v17 = vpop.permute.xlu0 %204  ;;  %v50_v54 = vsub.s32 4, %v33_v34  ;;  %v54_v56 = vsub.s32 5, %v33_v34 }
  0xc5   :  { %v211_v18 = vsel %vm206_vm5, %v203_v8, %v205_v17  ;;  %v249_v19 = vpop.permute.xlu1 %248  ;;  %393 = vmatprep.subr.bf16.mxu0 %v205_v17  ;;  %v1332_v38 = vrot.slane %v30_v36, %v34_v35  ;;  %v1344_v52 = vrot.slane %v30_v36, %v42_v50  ;;  %v1346_v53 = vrot.slane %v30_v36, %v46_v51 }
  0xc6   :  { %394 = vmatpush1.bf16.msra.mxu0 %v211_v18  ;;  %v257_v24 = vsel %vm254_vm7, %v1276_v39, %v249_v19  ;;  %v1334_v39 = vrot.slane %v30_v36, %v38_v37  ;;  %v1350_v0 = vrot.slane %v30_v36, %v50_v54  ;;  %v1352_v2 = vrot.slane %v30_v36, %v54_v56 }
  0xc8   :  { %v251_v20 = vpop.permute.xlu0 %250 }
  0xc9   :  { %v229_v21 = vpop.permute.xlu1 %228  ;;  %v258_v22 = vsel %vm254_vm7, %v249_v19, %v251_v20 }
  0xca   :  { %v235_v23 = vsel %vm230_vm6, %v227_v14, %v229_v21  ;;  %395 = vmatprep.subr.bf16.mxu0 %v229_v21  ;;  %356 = vmatprep.subr.bf16.mxu1 %v258_v22 }
  0xcb   :  { %396 = vmatpush1.bf16.msra.mxu0 %v235_v23  ;;  %357 = vmatpush1.bf16.msra.mxu1 %v257_v24 }
  0xcc   :  { %v273_v25 = vpop.permute.xlu0 %272 }
  0xcd   :  { %v275_v26 = vpop.permute.xlu1 %274  ;;  %v281_v27 = vsel %vm278_vm8, %v1281_v44, %v273_v25 }
  0xce   :  { %v282_v28 = vsel %vm278_vm8, %v273_v25, %v275_v26 }
  0xcf   :  { %358 = vmatprep.subr.bf16.mxu1 %v282_v28 }
  0xd0   :  { %359 = vmatpush1.bf16.msra.mxu1 %v281_v27  ;;  %v253_v29 = vpop.permute.xlu0 %252 }
  0xd1   :  { %v259_v30 = vsel %vm254_vm7, %v251_v20, %v253_v29  ;;  %397 = vmatprep.subr.bf16.mxu0 %v253_v29  ;;  %v277_v31 = vpop.permute.xlu1 %276  ;;  %v1100_v20 = vmov 0   ;;  %v458_v29 = vld [vmem:[%s1638_s3] sm:$0xff]  ;;  %s1101_s3 = smov 19  }
  0xd2   :  { %398 = vmatpush1.bf16.msra.mxu0 %v259_v30  ;;  %v283_v32 = vsel %vm278_vm8, %v275_v26, %v277_v31  ;;  %1071 = vset.pattern.permute.xlu0 %v1100_v20  ;;  %500 = vst.msk [vmem:[#allocation2] sm:$0xf] %vm499_vm10, %v1100_v20  ;;  %vm549_vm10 = vcmask 220164  }
  0xd3   :  { %375 = vmatmul.mubr.bf16.vlgmr.msra.gmra.mrb[0].mxu1 %v1288_v48  ;;  %399 = vmatprep.subr.bf16.mxu0 %v277_v31  ;;  %502 = vst.msk [vmem:[#allocation2 + $0x14] sm:$0xf] %vm501_vm11, %v1100_v20  ;;  %vm550_vm11 = vmor %vm549_vm10, %vm535_vm0 }
  0xd4   :  { %1072 = vset.pattern.permute.xlu1 %v1100_v20  ;;  %857 = vmatprep.mubr.bf16.mxu1 %v1100_v20 }
  0xd6   :  { %400 = vmatpush1.bf16.msra.mxu0 %v283_v32  ;;  %v462_v32 = vld [vmem:[%s1639_s4] sm:$0xff] }
  0xd9   :  { %416 = vmatmul.mubr.bf16.vlgmr.msra.gmra.mrb[4].mxu0 %v1288_v48 }
  0xda   :  { %939 = vmatprep.mubr.bf16.mxu0 %v1100_v20 }
 0x179   :  { %v1336_v40 = vpop.f32.mrb[0].mxu0 }
 0x17a   :  { %v424_v41 = vmul.f32 %v1336_v40, %v1332_v38  ;;  %v1340_v42 = vpop.f32.mrb[1].mxu0 }
 0x17b   :  { %v425_v43 = vmul.f32 %v1340_v42, %v1334_v39  ;;  %v339_v44 = vpop.f32.mrb[2].mxu0 }
 0x17c   :  { %v439_v45 = vmul.f32 %v424_v41, %v424_v41  ;;  %v340_v46 = vpop.f32.mrb[3].mxu0 }
 0x17d   :  { %v430_v47 = vadd.f32 %v425_v43, %v424_v41  ;;  %v440_v48 = vmul.f32 %v425_v43, %v425_v43 }
 0x17f   :  { %v445_v49 = vadd.f32 %v440_v48, %v439_v45 }
 0x1a6   :  { %v376_v55 = vpop.f32.mrb[0].mxu1 }
 0x1a7   :  { %v426_v57 = vmul.f32 %v376_v55, %v1344_v52  ;;  %v378_v58 = vpop.f32.mrb[1].mxu1 }
 0x1a8   :  { %v427_v59 = vmul.f32 %v378_v58, %v1346_v53  ;;  %v380_v60 = vpop.f32.mrb[2].mxu1 }
 0x1a9   :  { %v431_v61 = vadd.f32 %v430_v47, %v426_v57  ;;  %v441_v62 = vmul.f32 %v426_v57, %v426_v57  ;;  %v381_v63 = vpop.f32.mrb[3].mxu1 }
 0x1aa   :  { %v442_v1 = vmul.f32 %v427_v59, %v427_v59 }
 0x1ab   :  { %v446_v3 = vadd.f32 %v445_v49, %v441_v62  ;;  %v432_v4 = vadd.f32 %v431_v61, %v427_v59 }
 0x1ac   :  { %v417_v5 = vpop.f32.mrb[4].mxu0 }
 0x1ad   :  { %v428_v6 = vmul.f32 %v417_v5, %v1350_v0  ;;  %v419_v7 = vpop.f32.mrb[5].mxu0  ;;  %v447_v8 = vadd.f32 %v446_v3, %v442_v1 }
 0x1ae   :  { %v429_v9 = vmul.f32 %v419_v7, %v1352_v2  ;;  %v421_v10 = vpop.f32.mrb[6].mxu0 }
 0x1af   :  { %v443_v11 = vmul.f32 %v428_v6, %v428_v6  ;;  %v422_v12 = vpop.f32.mrb[7].mxu0  ;;  %v433_v13 = vadd.f32 %v432_v4, %v428_v6 }
 0x1b0   :  { %v444_v14 = vmul.f32 %v429_v9, %v429_v9  ;;  %v435_v15 = vsel %vm434_vm9, %v429_v9, 0.0 }
 0x1b1   :  { %v436_v16 = vadd.f32 %v435_v15, %v433_v13  ;;  %v448_v17 = vadd.f32 %v447_v8, %v443_v11 }
 0x1b2   :  { %v449_v18 = vsel %vm434_vm9, %v444_v14, 0.0 }
 0x1b3   :  { %437 = vadd.xlane.f32.xlu0 %v436_v16  ;;  %v450_v19 = vadd.f32 %v449_v18, %v448_v17 }
 0x1b5   :  { %451 = vadd.xlane.f32.xlu1 %v450_v19 }
 0x240   :  { %v438_v21 = vpop.xlane.xlu0 %437 }
 0x241   :  { %v453_v22 = vmul.f32 0.001953125, %v438_v21 }
 0x242   :  { %v452_v23 = vpop.xlane.xlu1 %451 }
 0x243   :  { %v455_v24 = vmul.f32 %v453_v22, %v453_v22  ;;  %v454_v25 = vmul.f32 0.001953125, %v452_v23 }
 0x245   :  { %v456_v26 = vsub.f32 %v454_v25, %v455_v24 }
 0x247   :  { %v457_v27 = vmax.f32 %v456_v26, 0.0 }
 0x249   :  { %v459_v28 = vadd.f32 1e-05, %v457_v27 }
 0x24b   :  { %1088 = vrsqrt.f32 %v459_v28 }
 0x255   :  { %v1089_v30 = vpop.eup %1088 }
 0x256   :  { %v461_v31 = vmul.f32 %v1089_v30, %v458_v29 }
 0x258   :  { %467 = vperm.xlu0 %1071, %v461_v31   ;;  %v463_v33 = vmul.f32 %v461_v31, %v453_v22 }
 0x25a   :  { %v464_v34 = vsub.f32 %v462_v32, %v463_v33 }
 0x25c   :  { %478 = vperm.xlu1 %1072, %v464_v34  }
 0x2d7   :  { %v468_v35 = vpop.permute.xlu0 %467 }
 0x2d8   :  { %v470_v36 = vmul.f32 %v468_v35, %v1336_v40  ;;  %v471_v37 = vmul.f32 %v468_v35, %v1340_v42  ;;  %v472_v41 = vmul.f32 %v468_v35, %v376_v55  ;;  %v473_v43 = vmul.f32 %v468_v35, %v378_v58 }
 0x2d9   :  { %v474_v45 = vmul.f32 %v468_v35, %v417_v5  ;;  %v475_v46 = vmul.f32 %v468_v35, %v419_v7 }
 0x2db   :  { %v479_v44 = vpop.permute.xlu1 %478 }
 0x2dc   :  { %v481_v47 = vadd.f32 %v479_v44, %v470_v36  ;;  %v482_v48 = vadd.f32 %v479_v44, %v471_v37  ;;  %v483_v49 = vadd.f32 %v479_v44, %v472_v41  ;;  %v484_v50 = vadd.f32 %v479_v44, %v473_v43 }
 0x2dd   :  { %v485_v51 = vadd.f32 %v479_v44, %v474_v45  ;;  %v486_v54 = vadd.f32 %v479_v44, %v475_v46 }
 0x2de   :  { %v487_v56 = vmax.f32 %v481_v47, 0.0  ;;  %v488_v57 = vmax.f32 %v482_v48, 0.0  ;;  %v489_v59 = vmax.f32 %v483_v49, 0.0  ;;  %v490_v60 = vmax.f32 %v484_v50, 0.0 }
 0x2df   :  { %v491_v61 = vmax.f32 %v485_v51, 0.0  ;;  %v492_v62 = vmax.f32 %v486_v54, 0.0 }
 0x2e0   :  { %v493_v40 = vmul.f32 %v487_v56, %v1332_v38  ;;  %v494_v42 = vmul.f32 %v488_v57, %v1334_v39  ;;  %v495_v55 = vmul.f32 %v489_v59, %v1344_v52  ;;  %v496_v58 = vmul.f32 %v490_v60, %v1346_v53 }
 0x2e1   :  { %v497_v63 = vmul.f32 %v491_v61, %v1350_v0  ;;  %v498_v1 = vmul.f32 %v492_v62, %v1352_v2 }
 0x2e2   :  { %v1058_v3 = vpack.c.bf16 %v494_v42, %v493_v40  ;;  %v1059_v4 = vpack.c.bf16 %v496_v58, %v495_v55 }
 0x2e3   :  { %v1060_v5 = vpack.c.bf16 %v498_v1, %v497_v63 }
 0x2e4   :  { %524 = vrot.lane.b32.xlu1 %v1058_v3, %s1101_s3 }
 0x2e8   :  { %526 = vrot.lane.b32.xlu1 %v1059_v4, %s1101_s3 }
 0x2ec   :  { %528 = vrot.lane.b32.xlu1 %v1060_v5, %s1101_s3 }
 0x356   :  { %v525_v6 = vpop.permute.xlu1 %524 }
 0x357   :  { %v530_v7 = vrot.slane %v525_v6, 4 }
 0x359   :  { %v534_v8 = vsel %vm533_vm14, %v530_v7, %v525_v6 }
 0x35a   :  { %546 = vst.msk [vmem:[#allocation2] sm:$0xff] %vm545_vm15, %v534_v8  ;;  %v527_v9 = vpop.permute.xlu1 %526 }
 0x35b   :  { %v531_v10 = vrot.slane %v527_v9, 4 }
 0x35d   :  { %v536_v11 = vsel %vm535_vm0, %v530_v7, %v531_v10 }
 0x35e   :  { %v537_v12 = vsel %vm533_vm14, %v536_v11, %v527_v9  ;;  %v529_v13 = vpop.permute.xlu1 %528 }
 0x35f   :  { %v532_v14 = vrot.slane %v529_v13, 4  ;;  %v1412_v21 = vcombine.low %v537_v12, %v537_v12  ;;  %v1444_v24 = vcombine.high %v537_v12, %v537_v12 }
 0x361   :  { %v552_v15 = vld [vmem:[#allocation2] sm:$0xff]  ;;  %v538_v16 = vsel %vm535_vm0, %v531_v10, %v532_v14 }
 0x362   :  { %v1383_v17 = vcombine.high %v552_v15, %v552_v15  ;;  %v539_v18 = vsel %vm533_vm14, %v538_v16, %v529_v13  ;;  %v1390_v19 = vcombine.low %v552_v15, %v552_v15 }
 0x363   :  { %551 = vst.msk [vmem:[#allocation2 + $0x10] sm:$0xff] %vm550_vm11, %v539_v18 }
 0x364   :  { %589 = vrot.lane.b32.xlu0 %v1383_v17, %s1093_s14  ;;  %572 = vrot.lane.b32.xlu1 %v1383_v17, %s1092_s9 }
 0x368   :  { %606 = vrot.lane.b32.xlu0 %v1383_v17, %s1094_s15  ;;  %570 = vrot.lane.b32.xlu1 %v1390_v19, %s1092_s9 }
 0x36a   :  { %v554_v22 = vld [vmem:[#allocation2 + $0x10] sm:$0xff] }
 0x36b   :  { %v1434_v23 = vcombine.low %v554_v22, %v554_v22  ;;  %v1458_v25 = vcombine.high %v554_v22, %v554_v22 }
 0x36c   :  { %587 = vrot.lane.b32.xlu0 %v1390_v19, %s1093_s14  ;;  %604 = vrot.lane.b32.xlu1 %v1390_v19, %s1094_s15 }
 0x370   :  { %623 = vrot.lane.b32.xlu0 %v1383_v17, %s1095_s16  ;;  %638 = vrot.lane.b32.xlu1 %v1390_v19, %s1096_s17 }
 0x374   :  { %640 = vrot.lane.b32.xlu0 %v1383_v17, %s1096_s17  ;;  %672 = vrot.lane.b32.xlu1 %v1390_v19, %s1098_s19 }
 0x378   :  { %621 = vrot.lane.b32.xlu0 %v1390_v19, %s1095_s16  ;;  %691 = vrot.lane.b32.xlu1 %v1383_v17, %s1099_s22 }
 0x37c   :  { %657 = vrot.lane.b32.xlu0 %v1383_v17, %s1097_s18  ;;  %574 = vrot.lane.b32.xlu1 %v1412_v21, %s1092_s9 }
 0x380   :  { %674 = vrot.lane.b32.xlu0 %v1383_v17, %s1098_s19  ;;  %591 = vrot.lane.b32.xlu1 %v1412_v21, %s1093_s14 }
 0x384   :  { %655 = vrot.lane.b32.xlu0 %v1390_v19, %s1097_s18  ;;  %608 = vrot.lane.b32.xlu1 %v1412_v21, %s1094_s15 }
 0x388   :  { %689 = vrot.lane.b32.xlu0 %v1390_v19, %s1099_s22  ;;  %625 = vrot.lane.b32.xlu1 %v1412_v21, %s1095_s16 }
 0x38c   :  { %693 = vrot.lane.b32.xlu0 %v1412_v21, %s1099_s22  ;;  %642 = vrot.lane.b32.xlu1 %v1412_v21, %s1096_s17 }
 0x390   :  { %659 = vrot.lane.b32.xlu1 %v1412_v21, %s1097_s18  ;;  %578 = vrot.lane.b32.xlu0 %v1434_v23, %s1092_s9 }
 0x394   :  { %676 = vrot.lane.b32.xlu1 %v1412_v21, %s1098_s19  ;;  %595 = vrot.lane.b32.xlu0 %v1434_v23, %s1093_s14 }
 0x398   :  { %576 = vrot.lane.b32.xlu1 %v1444_v24, %s1092_s9  ;;  %612 = vrot.lane.b32.xlu0 %v1434_v23, %s1094_s15 }
 0x39c   :  { %593 = vrot.lane.b32.xlu1 %v1444_v24, %s1093_s14  ;;  %627 = vrot.lane.b32.xlu0 %v1444_v24, %s1095_s16 }
 0x3a0   :  { %610 = vrot.lane.b32.xlu1 %v1444_v24, %s1094_s15  ;;  %644 = vrot.lane.b32.xlu0 %v1444_v24, %s1096_s17 }
 0x3a4   :  { %580 = vrot.lane.b32.xlu1 %v1458_v25, %s1092_s9  ;;  %597 = vrot.lane.b32.xlu0 %v1458_v25, %s1093_s14 }
 0x3a8   :  { %629 = vrot.lane.b32.xlu1 %v1434_v23, %s1095_s16  ;;  %661 = vrot.lane.b32.xlu0 %v1444_v24, %s1097_s18 }
 0x3ac   :  { %646 = vrot.lane.b32.xlu1 %v1434_v23, %s1096_s17  ;;  %678 = vrot.lane.b32.xlu0 %v1444_v24, %s1098_s19 }
 0x3b0   :  { %614 = vrot.lane.b32.xlu1 %v1458_v25, %s1094_s15  ;;  %631 = vrot.lane.b32.xlu0 %v1458_v25, %s1095_s16 }
 0x3b4   :  { %663 = vrot.lane.b32.xlu1 %v1434_v23, %s1097_s18  ;;  %665 = vrot.lane.b32.xlu0 %v1458_v25, %s1097_s18 }
 0x3b8   :  { %680 = vrot.lane.b32.xlu1 %v1434_v23, %s1098_s19  ;;  %695 = vrot.lane.b32.xlu0 %v1444_v24, %s1099_s22 }
 0x3bc   :  { %648 = vrot.lane.b32.xlu1 %v1458_v25, %s1096_s17  ;;  %699 = vrot.lane.b32.xlu0 %v1458_v25, %s1099_s22 }
 0x3c0   :  { %682 = vrot.lane.b32.xlu1 %v1458_v25, %s1098_s19 }
 0x3c4   :  { %697 = vrot.lane.b32.xlu1 %v1434_v23, %s1099_s22 }
 0x3d6   :  { %v590_v26 = vpop.permute.xlu0 %589  ;;  %v573_v27 = vpop.permute.xlu1 %572 }
 0x3da   :  { %v607_v28 = vpop.permute.xlu0 %606  ;;  %v571_v29 = vpop.permute.xlu1 %570 }
 0x3db   :  { %v582_v41 = vsel %vm110_vm1, %v571_v29, %v573_v27 }
 0x3dc   :  { %v708_v47 = vsel %vm535_vm0, %v1390_v19, %v582_v41 }
 0x3de   :  { %v588_v30 = vpop.permute.xlu0 %587  ;;  %v605_v31 = vpop.permute.xlu1 %604 }
 0x3df   :  { %v599_v50 = vsel %vm134_vm2, %v588_v30, %v590_v26  ;;  %v616_v51 = vsel %vm158_vm3, %v605_v31, %v607_v28  ;;  %v1539_v31 = vld [vmem:[%s1640_s5] sm:$0xf] }
 0x3e0   :  { %v732_v61 = vsel %vm535_vm0, %v599_v50, %v616_v51 }
 0x3e2   :  { %v624_v32 = vpop.permute.xlu0 %623  ;;  %v639_v33 = vpop.permute.xlu1 %638 }
 0x3e6   :  { %v641_v34 = vpop.permute.xlu0 %640  ;;  %v673_v35 = vpop.permute.xlu1 %672 }
 0x3e7   :  { %v650_v3 = vsel %vm206_vm5, %v639_v33, %v641_v34 }
 0x3ea   :  { %v622_v36 = vpop.permute.xlu0 %621  ;;  %v692_v37 = vpop.permute.xlu1 %691 }
 0x3eb   :  { %v633_v42 = vsel %vm182_vm4, %v622_v36, %v624_v32 }
 0x3ec   :  { %v756_v5 = vsel %vm535_vm0, %v633_v42, %v650_v3 }
 0x3ee   :  { %v658_v43 = vpop.permute.xlu0 %657  ;;  %v575_v44 = vpop.permute.xlu1 %574 }
 0x3ef   :  { %v583_v45 = vsel %vm110_vm1, %v573_v27, %v575_v44 }
 0x3f0   :  { %v712_v46 = vsel %vm535_vm0, %v1383_v17, %v583_v45 }
 0x3f1   :  { %825 = vmatprep.subr.bf16.mxu1 %v712_v46 }
 0x3f2   :  { %v675_v48 = vpop.permute.xlu0 %674  ;;  %826 = vmatpush1.bf16.msra.mxu1 %v708_v47  ;;  %v592_v49 = vpop.permute.xlu1 %591 }
 0x3f3   :  { %v600_v57 = vsel %vm134_vm2, %v590_v26, %v592_v49  ;;  %v684_v13 = vsel %vm254_vm7, %v673_v35, %v675_v48 }
 0x3f6   :  { %v656_v54 = vpop.permute.xlu0 %655  ;;  %v609_v56 = vpop.permute.xlu1 %608 }
 0x3f7   :  { %v617_v59 = vsel %vm158_vm3, %v607_v28, %v609_v56  ;;  %v667_v8 = vsel %vm230_vm6, %v656_v54, %v658_v43 }
 0x3f8   :  { %v736_v60 = vsel %vm535_vm0, %v600_v57, %v617_v59  ;;  %v780_v15 = vsel %vm535_vm0, %v667_v8, %v684_v13 }
 0x3f9   :  { %827 = vmatprep.subr.bf16.mxu1 %v736_v60 }
 0x3fa   :  { %v690_v62 = vpop.permute.xlu0 %689  ;;  %828 = vmatpush1.bf16.msra.mxu1 %v732_v61  ;;  %v1504_v40 = vpop.permute.xlu1 %625 }
 0x3fb   :  { %v634_v63 = vsel %vm182_vm4, %v624_v32, %v1504_v40  ;;  %v701_v16 = vsel %vm278_vm8, %v690_v62, %v692_v37 }
 0x3fc   :  { %v808_v26 = vsel %vm535_vm0, %v701_v16, 0 }
 0x3fe   :  { %v1507_v55 = vpop.permute.xlu0 %693  ;;  %v643_v58 = vpop.permute.xlu1 %642 }
 0x3ff   :  { %v651_v1 = vsel %vm206_vm5, %v641_v34, %v643_v58  ;;  %v702_v17 = vsel %vm278_vm8, %v692_v37, %v1507_v55 }
 0x400   :  { %v760_v4 = vsel %vm535_vm0, %v634_v63, %v651_v1 }
 0x401   :  { %829 = vmatprep.subr.bf16.mxu1 %v760_v4 }
 0x402   :  { %v579_v6 = vpop.permute.xlu0 %578  ;;  %830 = vmatpush1.bf16.msra.mxu1 %v756_v5  ;;  %v1515_v7 = vpop.permute.xlu1 %659 }
 0x403   :  { %v668_v11 = vsel %vm230_vm6, %v658_v43, %v1515_v7 }
 0x406   :  { %v596_v9 = vpop.permute.xlu0 %595  ;;  %v1518_v10 = vpop.permute.xlu1 %676 }
 0x407   :  { %v685_v12 = vsel %vm254_vm7, %v675_v48, %v1518_v10 }
 0x408   :  { %v784_v14 = vsel %vm535_vm0, %v668_v11, %v685_v12 }
 0x409   :  { %831 = vmatprep.subr.bf16.mxu1 %v784_v14 }
 0x40a   :  { %v613_v18 = vpop.permute.xlu0 %612  ;;  %832 = vmatpush1.bf16.msra.mxu1 %v780_v15  ;;  %v577_v19 = vpop.permute.xlu1 %576 }
 0x40b   :  { %v585_v22 = vsel %vm110_vm1, %v577_v19, %v579_v6  ;;  %1052 = vmatprep.subr.msk.bf16.mxu1 %vm535_vm0, %v702_v17  ;;  %v584_v27 = vsel %vm110_vm1, %v575_v44, %v577_v19 }
 0x40c   :  { %v720_v30 = vsel %vm535_vm0, %v1444_v24, %v585_v22  ;;  %v716_v32 = vsel %vm535_vm0, %v1412_v21, %v584_v27 }
 0x40e   :  { %v628_v28 = vpop.permute.xlu0 %627  ;;  %834 = vmatpush1.bf16.msra.mxu1 %v808_v26  ;;  %v594_v29 = vpop.permute.xlu1 %593 }
 0x40f   :  { %866 = vmatprep.subr.bf16.mxu1 %v720_v30  ;;  %v601_v24 = vsel %vm134_vm2, %v592_v49, %v594_v29  ;;  %v602_v35 = vsel %vm134_vm2, %v594_v29, %v596_v9  ;;  %v635_v57 = vsel %vm182_vm4, %v1504_v40, %v628_v28 }
 0x411   :  { %1053 = vmatmul.mubr.msk.bf16.vlgmr.msra.gmra.mrb[4].mxu1 %vm803_vm12, %v1539_v31 }
 0x412   :  { %v645_v33 = vpop.permute.xlu0 %644  ;;  %867 = vmatpush1.bf16.msra.mxu1 %v716_v32  ;;  %v611_v34 = vpop.permute.xlu1 %610  ;;  %898 = vmatprep.mubr.bf16.mxu1 %v1100_v20 }
 0x413   :  { %v618_v36 = vsel %vm158_vm3, %v609_v56, %v611_v34  ;;  %v619_v37 = vsel %vm158_vm3, %v611_v34, %v613_v18  ;;  %v652_v49 = vsel %vm206_vm5, %v643_v58, %v645_v33 }
 0x414   :  { %v744_v41 = vsel %vm535_vm0, %v602_v35, %v619_v37  ;;  %v740_v43 = vsel %vm535_vm0, %v601_v24, %v618_v36  ;;  %v764_v59 = vsel %vm535_vm0, %v635_v57, %v652_v49 }
 0x415   :  { %868 = vmatprep.subr.bf16.mxu1 %v744_v41 }
 0x416   :  { %v598_v44 = vpop.permute.xlu0 %597  ;;  %869 = vmatpush1.bf16.msra.mxu1 %v740_v43  ;;  %v581_v21 = vpop.permute.xlu1 %580 }
 0x417   :  { %v586_v45 = vsel %vm110_vm1, %v579_v6, %v581_v21  ;;  %v728_v20 = vsel %vm535_vm0, %v1458_v25, %v581_v21  ;;  %v603_v60 = vsel %vm134_vm2, %v596_v9, %v598_v44 }
 0x418   :  { %907 = vmatprep.subr.bf16.mxu0 %v728_v20  ;;  %v724_v46 = vsel %vm535_vm0, %v1434_v23, %v586_v45 }
 0x419   :  { %908 = vmatpush1.bf16.msra.mxu0 %v724_v46 }
 0x41a   :  { %v662_v47 = vpop.permute.xlu0 %661  ;;  %v630_v48 = vpop.permute.xlu1 %629 }
 0x41b   :  { %v636_v54 = vsel %vm182_vm4, %v628_v28, %v630_v48  ;;  %v669_v6 = vsel %vm230_vm6, %v1515_v7, %v662_v47 }
 0x41e   :  { %v679_v50 = vpop.permute.xlu0 %678  ;;  %v647_v51 = vpop.permute.xlu1 %646 }
 0x41f   :  { %v653_v56 = vsel %vm206_vm5, %v645_v33, %v647_v51  ;;  %v686_v1 = vsel %vm254_vm7, %v1518_v10, %v679_v50 }
 0x420   :  { %v768_v25 = vsel %vm535_vm0, %v636_v54, %v653_v56  ;;  %v788_v9 = vsel %vm535_vm0, %v669_v6, %v686_v1 }
 0x421   :  { %870 = vmatprep.subr.bf16.mxu1 %v768_v25 }
 0x422   :  { %871 = vmatpush1.bf16.msra.mxu1 %v764_v59  ;;  %v615_v23 = vpop.permute.xlu1 %614  ;;  %v632_v61 = vpop.permute.xlu0 %631 }
 0x423   :  { %v620_v62 = vsel %vm158_vm3, %v613_v18, %v615_v23  ;;  %v752_v42 = vsel %vm535_vm0, %v598_v44, %v615_v23  ;;  %v637_v12 = vsel %vm182_vm4, %v630_v48, %v632_v61 }
 0x424   :  { %909 = vmatprep.subr.bf16.mxu0 %v752_v42  ;;  %v748_v58 = vsel %vm535_vm0, %v603_v60, %v620_v62 }
 0x425   :  { %910 = vmatpush1.bf16.msra.mxu0 %v748_v58 }
 0x426   :  { %v664_v63 = vpop.permute.xlu1 %663  ;;  %v666_v40 = vpop.permute.xlu0 %665 }
 0x427   :  { %v670_v4 = vsel %vm230_vm6, %v662_v47, %v664_v63  ;;  %v671_v7 = vsel %vm230_vm6, %v664_v63, %v666_v40 }
 0x42a   :  { %v681_v3 = vpop.permute.xlu1 %680  ;;  %v696_v13 = vpop.permute.xlu0 %695 }
 0x42b   :  { %v687_v5 = vsel %vm254_vm7, %v679_v50, %v681_v3  ;;  %v703_v22 = vsel %vm278_vm8, %v1507_v55, %v696_v13 }
 0x42c   :  { %v792_v8 = vsel %vm535_vm0, %v670_v4, %v687_v5  ;;  %v814_v30 = vsel %vm535_vm0, %v703_v22, 0 }
 0x42d   :  { %872 = vmatprep.subr.bf16.mxu1 %v792_v8 }
 0x42e   :  { %873 = vmatpush1.bf16.msra.mxu1 %v788_v9  ;;  %v649_v11 = vpop.permute.xlu1 %648  ;;  %v700_v26 = vpop.permute.xlu0 %699 }
 0x42f   :  { %v654_v10 = vsel %vm206_vm5, %v647_v51, %v649_v11  ;;  %v776_v14 = vsel %vm535_vm0, %v632_v61, %v649_v11 }
 0x430   :  { %911 = vmatprep.subr.bf16.mxu0 %v776_v14  ;;  %v772_v15 = vsel %vm535_vm0, %v637_v12, %v654_v10  ;;  %v981_v14 = vld [vmem:[%s1641_s6] sm:$0xff] }
 0x431   :  { %912 = vmatpush1.bf16.msra.mxu0 %v772_v15 }
 0x432   :  { %v683_v16 = vpop.permute.xlu1 %682 }
 0x433   :  { %v688_v17 = vsel %vm254_vm7, %v681_v3, %v683_v16  ;;  %v800_v18 = vsel %vm535_vm0, %v666_v40, %v683_v16 }
 0x434   :  { %913 = vmatprep.subr.bf16.mxu0 %v800_v18  ;;  %v796_v19 = vsel %vm535_vm0, %v671_v7, %v688_v17  ;;  %v985_v7 = vld [vmem:[%s1642_s7] sm:$0xff] }
 0x435   :  { %914 = vmatpush1.bf16.msra.mxu0 %v796_v19 }
 0x436   :  { %1056 = vmatprep.subr.msk.bf16.mxu0 %vm535_vm0, %v700_v26  ;;  %v698_v27 = vpop.permute.xlu1 %697 }
 0x437   :  { %v704_v28 = vsel %vm278_vm8, %v696_v13, %v698_v27  ;;  %v705_v29 = vsel %vm278_vm8, %v698_v27, %v700_v26 }
 0x438   :  { %v820_v32 = vsel %vm535_vm0, %v705_v29, 0  ;;  %1054 = vmatprep.subr.msk.bf16.mxu1 %vm535_vm0, %v704_v28 }
 0x439   :  { %875 = vmatpush1.bf16.msra.mxu1 %v814_v30  ;;  %916 = vmatpush1.bf16.msra.mxu0 %v820_v32 }
 0x43c   :  { %1055 = vmatmul.mubr.msk.bf16.vlgmr.msra.gmra.mrb[8].mxu1 %vm803_vm12, %v1539_v31  ;;  %1057 = vmatmul.mubr.msk.bf16.vlgmr.msra.gmra.mrb[8].mxu0 %vm803_vm12, %v1539_v31 }
 0x4e4   :  { %v859_v55 = vpop.f32.mrb[4].mxu1 }
 0x4e5   :  { %v948_v33 = vmul.f32 %v859_v55, %v1332_v38  ;;  %v861_v34 = vpop.f32.mrb[5].mxu1 }
 0x4e6   :  { %v949_v24 = vmul.f32 %v861_v34, %v1334_v39  ;;  %v863_v35 = vpop.f32.mrb[6].mxu1 }
 0x4e7   :  { %v962_v36 = vmul.f32 %v948_v33, %v948_v33  ;;  %v864_v37 = vpop.f32.mrb[7].mxu1 }
 0x4e8   :  { %v954_v41 = vadd.f32 %v949_v24, %v948_v33  ;;  %v963_v43 = vmul.f32 %v949_v24, %v949_v24 }
 0x4ea   :  { %v968_v44 = vadd.f32 %v963_v43, %v962_v36 }
 0x50f   :  { %v900_v21 = vpop.f32.mrb[8].mxu1  ;;  %v941_v45 = vpop.f32.mrb[8].mxu0 }
 0x510   :  { %v950_v20 = vmul.f32 %v900_v21, %v1344_v52  ;;  %v902_v46 = vpop.f32.mrb[9].mxu1  ;;  %v952_v47 = vmul.f32 %v941_v45, %v1350_v0  ;;  %v943_v31 = vpop.f32.mrb[9].mxu0 }
 0x511   :  { %v951_v48 = vmul.f32 %v902_v46, %v1346_v53  ;;  %v904_v49 = vpop.f32.mrb[10].mxu1  ;;  %v953_v50 = vmul.f32 %v943_v31, %v1352_v2  ;;  %v945_v51 = vpop.f32.mrb[10].mxu0 }
 0x512   :  { %v955_v54 = vadd.f32 %v954_v41, %v950_v20  ;;  %v964_v56 = vmul.f32 %v950_v20, %v950_v20  ;;  %v905_v57 = vpop.f32.mrb[11].mxu1  ;;  %v946_v25 = vpop.f32.mrb[11].mxu0  ;;  %v966_v62 = vmul.f32 %v952_v47, %v952_v47 }
 0x513   :  { %v965_v59 = vmul.f32 %v951_v48, %v951_v48  ;;  %v967_v23 = vmul.f32 %v953_v50, %v953_v50  ;;  %v958_v42 = vsel %vm434_vm9, %v953_v50, 0.0 }
 0x514   :  { %v969_v60 = vadd.f32 %v968_v44, %v964_v56  ;;  %v956_v61 = vadd.f32 %v955_v54, %v951_v48 }
 0x515   :  { %v972_v40 = vsel %vm434_vm9, %v967_v23, 0.0 }
 0x516   :  { %v970_v58 = vadd.f32 %v969_v60, %v965_v59  ;;  %v957_v63 = vadd.f32 %v956_v61, %v952_v47 }
 0x518   :  { %v971_v1 = vadd.f32 %v970_v58, %v966_v62  ;;  %v959_v3 = vadd.f32 %v958_v42, %v957_v63 }
 0x51a   :  { %960 = vadd.xlane.f32.xlu1 %v959_v3  ;;  %v973_v4 = vadd.f32 %v972_v40, %v971_v1 }
 0x51c   :  { %974 = vadd.xlane.f32.xlu0 %v973_v4 }
 0x5a7   :  { %v961_v5 = vpop.xlane.xlu1 %960 }
 0x5a8   :  { %v976_v6 = vmul.f32 0.001953125, %v961_v5 }
 0x5a9   :  { %v975_v8 = vpop.xlane.xlu0 %974 }
 0x5aa   :  { %v978_v9 = vmul.f32 %v976_v6, %v976_v6  ;;  %v977_v11 = vmul.f32 0.001953125, %v975_v8 }
 0x5ac   :  { %v979_v12 = vsub.f32 %v977_v11, %v978_v9 }
 0x5ae   :  { %v980_v13 = vmax.f32 %v979_v12, 0.0 }
 0x5b0   :  { %v982_v10 = vadd.f32 1e-05, %v980_v13 }
 0x5b2   :  { %1090 = vrsqrt.f32 %v982_v10 }
 0x5bc   :  { %v1091_v15 = vpop.eup %1090 }
 0x5bd   :  { %v984_v16 = vmul.f32 %v1091_v15, %v981_v14 }
 0x5bf   :  { %990 = vperm.xlu0 %1071, %v984_v16   ;;  %v986_v17 = vmul.f32 %v984_v16, %v976_v6 }
 0x5c1   :  { %v987_v18 = vsub.f32 %v985_v7, %v986_v17 }
 0x5c3   :  { %1001 = vperm.xlu1 %1072, %v987_v18  }
 0x63e   :  { %v991_v19 = vpop.permute.xlu0 %990 }
 0x63f   :  { %v993_v22 = vmul.f32 %v991_v19, %v859_v55  ;;  %v994_v26 = vmul.f32 %v991_v19, %v861_v34  ;;  %v995_v27 = vmul.f32 %v991_v19, %v900_v21  ;;  %v996_v28 = vmul.f32 %v991_v19, %v902_v46 }
 0x640   :  { %v997_v29 = vmul.f32 %v991_v19, %v941_v45  ;;  %v998_v30 = vmul.f32 %v991_v19, %v943_v31 }
 0x642   :  { %v1002_v32 = vpop.permute.xlu1 %1001 }
 0x643   :  { %v1004_v33 = vadd.f32 %v1002_v32, %v993_v22  ;;  %v1005_v24 = vadd.f32 %v1002_v32, %v994_v26  ;;  %v1006_v35 = vadd.f32 %v1002_v32, %v995_v27  ;;  %v1007_v36 = vadd.f32 %v1002_v32, %v996_v28 }
 0x644   :  { %v1008_v37 = vadd.f32 %v1002_v32, %v997_v29  ;;  %v1009_v41 = vadd.f32 %v1002_v32, %v998_v30 }
 0x645   :  { %v1010_v43 = vmax.f32 %v1004_v33, 0.0  ;;  %v1011_v44 = vmax.f32 %v1005_v24, 0.0  ;;  %v1012_v20 = vmax.f32 %v1006_v35, 0.0  ;;  %v1013_v47 = vmax.f32 %v1007_v36, 0.0 }
 0x646   :  { %v1014_v48 = vmax.f32 %v1008_v37, 0.0  ;;  %v1015_v49 = vmax.f32 %v1009_v41, 0.0 }
 0x647   :  { %v1016_v55 = vmul.f32 %v1010_v43, %v1332_v38  ;;  %v1017_v34 = vmul.f32 %v1011_v44, %v1334_v39  ;;  %v1018_v21 = vmul.f32 %v1012_v20, %v1344_v52  ;;  %v1019_v45 = vmul.f32 %v1013_v47, %v1346_v53 }
 0x648   :  { %v1020_v46 = vmul.f32 %v1014_v48, %v1350_v0  ;;  %v1021_v31 = vmul.f32 %v1015_v49, %v1352_v2 }
 0x649   :  { %1022 = vst [vmem:[%s1643_s8] sm:$0xff] %v1016_v55  ;;  %1023 = vst [vmem:[%s1643_s8 + $0x8] sm:$0xff] %v1017_v34 }
 0x64a   :  { %1024 = vst [vmem:[%s1643_s8 + $0x10] sm:$0xff] %v1018_v21  ;;  %1025 = vst [vmem:[%s1643_s8 + $0x18] sm:$0xff] %v1019_v45 }
 0x64b   :  { %1026 = vst [vmem:[%s1643_s8 + $0x20] sm:$0xff] %v1020_v46  ;;  %1027 = vst.msk [vmem:[%s1643_s8 + $0x28] sm:$0xff] %vm434_vm9, %v1021_v31 }

</bundles_post_ra>
